<compile_context>
chip_gen: v7x
topology: tpu7x:2x2x1
jax: 0.10.0
libtpu: 0.0.40
codegen_flags: <defaults>
</compile_context>

<pallas_src>
import functools

import jax
import jax.numpy as jnp
from jax.experimental import pallas as pl
from jax.experimental.pallas import tpu as pltpu


def _dncnn_layer_kernel(x_ref, w_ref, b_ref, o_ref, act_ref,
                        *, H, W, C, F, depth, Wp, P):
    """One grid step = one conv layer of one image.

    x_ref:   (1, H, W, C)   input image (same block for every layer step)
    w_ref:   (1, 9, F, F)   this layer's folded 3x3 weights, bf16, tap ki*3+kj
    b_ref:   (1, 1, F)      this layer's folded bias, f32
    o_ref:   (1, H, W, C)   residual output; written at the last layer only
    act_ref: (R, F) f32     resident zero-padded activation, row pitch Wp
    """
    f32, bf16 = jnp.float32, jnp.bfloat16
    layer = pl.program_id(1)
    M = H * Wp                       # rows of the (padded) activation interior
    R = act_ref.shape[0]

    # ---- first layer: load the image into the resident buffer --------------
    @pl.when(layer == 0)
    def _load_input():
        # Zero the row halo, the zero pad columns and the padded channels in
        # one go, then write the image rows into lanes [0:C).
        act_ref[...] = jnp.zeros((R, F), f32)
        for h in range(H):           # static unroll; once per image, not per layer
            act_ref[P + h * Wp:P + h * Wp + W, 0:C] = x_ref[0, h].astype(f32)

    # ---- 3x3 'same' conv: 9 shifted flat windows x (F, F) MXU matmuls ------
    acc = jnp.zeros((M, F), f32)
    for ki in range(3):
        for kj in range(3):
            start = P + (ki - 1) * Wp + (kj - 1)          # static offset
            lhs = act_ref[start:start + M, :].astype(bf16)
            acc += jnp.dot(lhs, w_ref[0, 3 * ki + kj],
                           preferred_element_type=f32)
    acc += b_ref[0].astype(f32)                           # (M, F) + (1, F)

    # ---- hidden layers: ReLU, keep pad columns zero, stay in VMEM ----------
    @pl.when(layer < depth - 1)
    def _hidden():
        q = jax.lax.broadcasted_iota(jnp.int32, (M, 1), 0)
        in_image = (q % Wp) < W
        act_ref[P:P + M, :] = jnp.where(in_image, jnp.maximum(acc, 0.0), 0.0)

    # ---- last layer (no ReLU): fused residual  out = x - dncnn(x) ----------
    @pl.when(layer == depth - 1)
    def _store_output():
        y = acc.reshape(H, Wp, F)[:, :W, :C]              # (H, W, C)
        o_ref[0] = (x_ref[0].astype(f32) - y).astype(o_ref.dtype)


def _fold_layer(lyr):
    """Fold conv bias + inference-mode BatchNorm into (w * scale, shift)."""
    w = lyr["w"]                                          # (3, 3, cin, cout)
    cout = w.shape[-1]
    cb = lyr.get("conv_bias")
    cb = jnp.zeros((cout,), jnp.float32) if cb is None else cb
    bn = lyr.get("bn")
    if bn is None:
        scale = jnp.ones((cout,), jnp.float32)
        shift = cb
    else:
        scale = bn["gamma"] / jnp.sqrt(bn["var"] + bn["eps"])
        shift = bn["beta"] + (cb - bn["mean"]) * scale
    return w * scale[None, None, None, :], shift


def _fold_and_pad_params(layers, F):
    """Fold BN, zero-pad channels to F, stack: (D, 9, F, F) bf16 + (D, 1, F) f32."""
    ws, bs = [], []
    for lyr in layers:
        wf, shift = _fold_layer(lyr)
        cin, cout = wf.shape[2], wf.shape[3]
        wf = jnp.pad(wf, ((0, 0), (0, 0), (0, F - cin), (0, F - cout)))
        ws.append(wf.reshape(9, F, F))                    # tap-major: t = ki*3 + kj
        bs.append(jnp.pad(shift, (0, F - cout)).reshape(1, F))
    return (jnp.stack(ws).astype(jnp.bfloat16),
            jnp.stack(bs).astype(jnp.float32))


def dncnn_forward_nhwc(x, layers):
    """x: (N, H, W, C) NHWC -> residual output x - dncnn(x), same shape."""
    N, H, W, C = x.shape
    depth = len(layers)
    F = layers[0]["w"].shape[-1]
    assert depth >= 2 and F >= C
    assert W % 8 == 0, "W must be a multiple of 8 (sublane-aligned image rows)"

    w_all, b_all = _fold_and_pad_params(layers, F)

    Wp = ((W + 1) + 7) // 8 * 8      # row pitch: >= W+1 (zero pad columns), x8
    P = Wp + 8                       # first interior row (aligned, > Wp + 1)
    R = (H + 2) * Wp + 16            # interior + row halo + shifted-window slack

    kern = functools.partial(_dncnn_layer_kernel,
                             H=H, W=W, C=C, F=F, depth=depth, Wp=Wp, P=P)

    # Explicit scoped-VMEM budget (v5e default is only 16 MiB).
    act_bytes = R * F * 4
    io_bytes = 4 * H * W * C * 4                          # x + out, double-buffered
    wgt_bytes = 2 * (9 * F * F * 2 + F * 4)               # bf16 weights + f32 bias
    vmem_limit = max(int(1.5 * (act_bytes + io_bytes + wgt_bytes)), 16 << 20)

    return pl.pallas_call(
        kern,
        out_shape=jax.ShapeDtypeStruct((N, H, W, C), x.dtype),
        grid=(N, depth),
        in_specs=[
            pl.BlockSpec((1, H, W, C), lambda n, l: (n, 0, 0, 0)),   # image
            pl.BlockSpec((1, 9, F, F), lambda n, l: (l, 0, 0, 0)),   # layer weights
            pl.BlockSpec((1, 1, F), lambda n, l: (l, 0, 0)),         # layer bias
        ],
        out_specs=pl.BlockSpec((1, H, W, C), lambda n, l: (n, 0, 0, 0)),
        scratch_shapes=[pltpu.VMEM((R, F), jnp.float32)],
        compiler_params=pltpu.CompilerParams(
            dimension_semantics=("parallel", "arbitrary"),
            vmem_limit_bytes=vmem_limit),
    )(x, w_all, b_all)


def dncnn_forward(x_nchw, layers):
    x = jnp.transpose(x_nchw, (0, 2, 3, 1))               # NCHW -> NHWC
    y = dncnn_forward_nhwc(x, layers)
    return jnp.transpose(y, (0, 3, 1, 2))                 # NHWC -> NCHW


def init_dncnn_params(key, depth, features, img_channels, eps=1e-4):
    """Synthetic parameters mirroring DnCNN.__init__ / _initialize_weights.
    Conv weights use a fan-in-scaled normal stand-in for init.orthogonal_;
    BN gamma=1, beta=0 (as initialized), with non-trivial running statistics
    (as after training) so the inference-mode folding path is exercised."""
    layers = []
    keys = iter(jax.random.split(key, 3 * depth + 3))

    def conv_w(cin, cout):
        return (jax.random.normal(next(keys), (3, 3, cin, cout), jnp.float32)
                * jnp.sqrt(2.0 / (9.0 * cin)))

    # first layer: Conv(img_channels -> features, bias=True) + ReLU
    layers.append(dict(w=conv_w(img_channels, features),
                       conv_bias=jnp.zeros((features,), jnp.float32),
                       bn=None, relu=True))
    # middle layers: Conv(features -> features, bias=False) + BatchNorm + ReLU
    for _ in range(depth - 2):
        mean = 0.1 * jax.random.normal(next(keys), (features,), jnp.float32)
        var = 0.5 + jax.random.uniform(next(keys), (features,), jnp.float32)
        layers.append(dict(w=conv_w(features, features),
                           conv_bias=None,
                           bn=dict(gamma=jnp.ones((features,), jnp.float32),
                                   beta=jnp.zeros((features,), jnp.float32),
                                   mean=mean, var=var, eps=eps),
                           relu=True))
    # last layer: Conv(features -> img_channels, bias=False), no BN, no ReLU
    layers.append(dict(w=conv_w(features, img_channels),
                       conv_bias=None, bn=None, relu=False))
    return layers


def dncnn_reference(x_nchw, layers, *, fold=False, round_bf16=False):
    """Pure-JAX reference.  fold=False reproduces the PyTorch module exactly
    (unfused conv -> BatchNorm(eval) -> ReLU in f32); fold=True uses the same
    folded (scale, shift) parametrization as the kernel; round_bf16=True
    additionally mirrors the kernel's bf16 weight / matmul-input rounding."""
    f32 = jnp.float32
    rnd = ((lambda t: t.astype(jnp.bfloat16).astype(f32)) if round_bf16
           else (lambda t: t))
    x = jnp.transpose(x_nchw, (0, 2, 3, 1)).astype(f32)
    a = x
    for lyr in layers:
        if fold:
            w, b = _fold_layer(lyr)
            out = jax.lax.conv_general_dilated(
                rnd(a), rnd(w), (1, 1), "SAME",
                dimension_numbers=("NHWC", "HWIO", "NHWC"),
                precision=jax.lax.Precision.HIGHEST) + b
        else:
            out = jax.lax.conv_general_dilated(
                a, lyr["w"], (1, 1), "SAME",
                dimension_numbers=("NHWC", "HWIO", "NHWC"),
                precision=jax.lax.Precision.HIGHEST)
            if lyr["conv_bias"] is not None:
                out = out + lyr["conv_bias"]
            if lyr["bn"] is not None:
                bn = lyr["bn"]
                out = ((out - bn["mean"])
                       * (bn["gamma"] / jnp.sqrt(bn["var"] + bn["eps"]))
                       + bn["beta"])
        a = jnp.maximum(out, 0.0) if lyr["relu"] else out
    return jnp.transpose(x - a, (0, 3, 1, 2))


if __name__ == "__main__":
    key = jax.random.PRNGKey(0)
    k_x, k_p = jax.random.split(key)

    # Small config consistent with the module (default is depth=17, features=64).
    N, C, H, W = 2, 1, 16, 16
    depth, features = 6, 32

    x_nchw = jax.random.normal(k_x, (N, C, H, W), jnp.float32)
    layers = init_dncnn_params(k_p, depth, features, C)

    out = dncnn_forward(x_nchw, layers)
    jax.block_until_ready(out)
    assert out.shape == x_nchw.shape

    # (1) BN/bias folding is an identity w.r.t. the exact PyTorch-module math.
    ref_module = dncnn_reference(x_nchw, layers)
    ref_folded = dncnn_reference(x_nchw, layers, fold=True)
    fold_err = float(jnp.max(jnp.abs(ref_folded - ref_module)))
    assert fold_err < 1e-3, f"BN folding mismatch: {fold_err}"

    # (2) Kernel matches the folded reference with the same bf16 rounding.
    ref_kernel = dncnn_reference(x_nchw, layers, fold=True, round_bf16=True)
    err = float(jnp.max(jnp.abs(out - ref_kernel)))
    assert err < 1e-2, f"kernel mismatch vs reference: {err}"

    print("KERNEL_OK")
</pallas_src>

<mosaic_0001>
module attributes {stable_mosaic.version = 11 : i64} {
  func.func @_dncnn_layer_kernel(%arg0: i32, %arg1: i32, %arg2: memref<1x16x16x1xf32, #tpu.memory_space<vmem>>, %arg3: memref<1x9x32x32xbf16, #tpu.memory_space<vmem>>, %arg4: memref<1x1x32xf32, #tpu.memory_space<vmem>>, %arg5: memref<1x16x16x1xf32, #tpu.memory_space<vmem>>, %arg6: memref<448x32xf32, #tpu.memory_space<vmem>>) attributes {dimension_semantics = [#tpu.dimension_semantics<parallel>, #tpu.dimension_semantics<arbitrary>], iteration_bounds = array<i64: 2, 6>, scalar_prefetch = 0 : i64, scratch_operands = 1 : i64, tpu.core_type = #tpu.core_type<tc>, window_params = [{transform_indices = @transform_0, window_bounds = array<i64: 1, 16, 16, 1>}, {transform_indices = @transform_1, window_bounds = array<i64: 1, 9, 32, 32>}, {transform_indices = @transform_2, window_bounds = array<i64: 1, 1, 32>}, {transform_indices = @transform_3, window_bounds = array<i64: 1, 16, 16, 1>}]} {
    %c0_i32 = arith.constant 0 : i32
    %0 = arith.cmpi eq, %arg1, %c0_i32 : i32
    %1 = arith.extui %0 : i1 to i32
    %c0_i32_0 = arith.constant 0 : i32
    %2 = arith.cmpi ne, %1, %c0_i32_0 : i32
    scf.if %2 {
      %cst_54 = arith.constant 0.000000e+00 : f32
      %68 = vector.broadcast %cst_54 : f32 to vector<448x32xf32>
      %c0_55 = arith.constant 0 : index
      %c0_56 = arith.constant 0 : index
      %69 = vector.load %arg6[%c0_55, %c0_56] : memref<448x32xf32, #tpu.memory_space<vmem>>, vector<448x32xf32>
      tpu.vector_store %arg6[%c0_55, %c0_56], %68 {strides = array<i32>} : memref<448x32xf32, #tpu.memory_space<vmem>>, vector<448x32xf32>,
      %c0_57 = arith.constant 0 : index
      %c0_58 = arith.constant 0 : index
      %c0_59 = arith.constant 0 : index
      %c0_60 = arith.constant 0 : index
      %70 = vector.load %arg2[%c0_57, %c0_58, %c0_59, %c0_60] : memref<1x16x16x1xf32, #tpu.memory_space<vmem>>, vector<1x1x16x1xf32>
      %71 = vector.shape_cast %70 : vector<1x1x16x1xf32> to vector<16x1xf32>
      %c32_61 = arith.constant 32 : index
      %c0_62 = arith.constant 0 : index
      %72 = vector.load %arg6[%c32_61, %c0_62] : memref<448x32xf32, #tpu.memory_space<vmem>>, vector<16x1xf32>
      tpu.vector_store %arg6[%c32_61, %c0_62], %71 {strides = array<i32>} : memref<448x32xf32, #tpu.memory_space<vmem>>, vector<16x1xf32>,
      %c0_63 = arith.constant 0 : index
      %c1_64 = arith.constant 1 : index
      %c0_65 = arith.constant 0 : index
      %c0_66 = arith.constant 0 : index
      %73 = vector.load %arg2[%c0_63, %c1_64, %c0_65, %c0_66] : memref<1x16x16x1xf32, #tpu.memory_space<vmem>>, vector<1x1x16x1xf32>
      %74 = vector.shape_cast %73 : vector<1x1x16x1xf32> to vector<16x1xf32>
      %c56_67 = arith.constant 56 : index
      %c0_68 = arith.constant 0 : index
      %75 = vector.load %arg6[%c56_67, %c0_68] : memref<448x32xf32, #tpu.memory_space<vmem>>, vector<16x1xf32>
      tpu.vector_store %arg6[%c56_67, %c0_68], %74 {strides = array<i32>} : memref<448x32xf32, #tpu.memory_space<vmem>>, vector<16x1xf32>,
      %c0_69 = arith.constant 0 : index
      %c2_70 = arith.constant 2 : index
      %c0_71 = arith.constant 0 : index
      %c0_72 = arith.constant 0 : index
      %76 = vector.load %arg2[%c0_69, %c2_70, %c0_71, %c0_72] : memref<1x16x16x1xf32, #tpu.memory_space<vmem>>, vector<1x1x16x1xf32>
      %77 = vector.shape_cast %76 : vector<1x1x16x1xf32> to vector<16x1xf32>
      %c80 = arith.constant 80 : index
      %c0_73 = arith.constant 0 : index
      %78 = vector.load %arg6[%c80, %c0_73] : memref<448x32xf32, #tpu.memory_space<vmem>>, vector<16x1xf32>
      tpu.vector_store %arg6[%c80, %c0_73], %77 {strides = array<i32>} : memref<448x32xf32, #tpu.memory_space<vmem>>, vector<16x1xf32>,
      %c0_74 = arith.constant 0 : index
      %c3_75 = arith.constant 3 : index
      %c0_76 = arith.constant 0 : index
      %c0_77 = arith.constant 0 : index
      %79 = vector.load %arg2[%c0_74, %c3_75, %c0_76, %c0_77] : memref<1x16x16x1xf32, #tpu.memory_space<vmem>>, vector<1x1x16x1xf32>
      %80 = vector.shape_cast %79 : vector<1x1x16x1xf32> to vector<16x1xf32>
      %c104 = arith.constant 104 : index
      %c0_78 = arith.constant 0 : index
      %81 = vector.load %arg6[%c104, %c0_78] : memref<448x32xf32, #tpu.memory_space<vmem>>, vector<16x1xf32>
      tpu.vector_store %arg6[%c104, %c0_78], %80 {strides = array<i32>} : memref<448x32xf32, #tpu.memory_space<vmem>>, vector<16x1xf32>,
      %c0_79 = arith.constant 0 : index
      %c4_80 = arith.constant 4 : index
      %c0_81 = arith.constant 0 : index
      %c0_82 = arith.constant 0 : index
      %82 = vector.load %arg2[%c0_79, %c4_80, %c0_81, %c0_82] : memref<1x16x16x1xf32, #tpu.memory_space<vmem>>, vector<1x1x16x1xf32>
      %83 = vector.shape_cast %82 : vector<1x1x16x1xf32> to vector<16x1xf32>
      %c128 = arith.constant 128 : index
      %c0_83 = arith.constant 0 : index
      %84 = vector.load %arg6[%c128, %c0_83] : memref<448x32xf32, #tpu.memory_space<vmem>>, vector<16x1xf32>
      tpu.vector_store %arg6[%c128, %c0_83], %83 {strides = array<i32>} : memref<448x32xf32, #tpu.memory_space<vmem>>, vector<16x1xf32>,
      %c0_84 = arith.constant 0 : index
      %c5_85 = arith.constant 5 : index
      %c0_86 = arith.constant 0 : index
      %c0_87 = arith.constant 0 : index
      %85 = vector.load %arg2[%c0_84, %c5_85, %c0_86, %c0_87] : memref<1x16x16x1xf32, #tpu.memory_space<vmem>>, vector<1x1x16x1xf32>
      %86 = vector.shape_cast %85 : vector<1x1x16x1xf32> to vector<16x1xf32>
      %c152 = arith.constant 152 : index
      %c0_88 = arith.constant 0 : index
      %87 = vector.load %arg6[%c152, %c0_88] : memref<448x32xf32, #tpu.memory_space<vmem>>, vector<16x1xf32>
      tpu.vector_store %arg6[%c152, %c0_88], %86 {strides = array<i32>} : memref<448x32xf32, #tpu.memory_space<vmem>>, vector<16x1xf32>,
      %c0_89 = arith.constant 0 : index
      %c6_90 = arith.constant 6 : index
      %c0_91 = arith.constant 0 : index
      %c0_92 = arith.constant 0 : index
      %88 = vector.load %arg2[%c0_89, %c6_90, %c0_91, %c0_92] : memref<1x16x16x1xf32, #tpu.memory_space<vmem>>, vector<1x1x16x1xf32>
      %89 = vector.shape_cast %88 : vector<1x1x16x1xf32> to vector<16x1xf32>
      %c176 = arith.constant 176 : index
      %c0_93 = arith.constant 0 : index
      %90 = vector.load %arg6[%c176, %c0_93] : memref<448x32xf32, #tpu.memory_space<vmem>>, vector<16x1xf32>
      tpu.vector_store %arg6[%c176, %c0_93], %89 {strides = array<i32>} : memref<448x32xf32, #tpu.memory_space<vmem>>, vector<16x1xf32>,
      %c0_94 = arith.constant 0 : index
      %c7_95 = arith.constant 7 : index
      %c0_96 = arith.constant 0 : index
      %c0_97 = arith.constant 0 : index
      %91 = vector.load %arg2[%c0_94, %c7_95, %c0_96, %c0_97] : memref<1x16x16x1xf32, #tpu.memory_space<vmem>>, vector<1x1x16x1xf32>
      %92 = vector.shape_cast %91 : vector<1x1x16x1xf32> to vector<16x1xf32>
      %c200 = arith.constant 200 : index
      %c0_98 = arith.constant 0 : index
      %93 = vector.load %arg6[%c200, %c0_98] : memref<448x32xf32, #tpu.memory_space<vmem>>, vector<16x1xf32>
      tpu.vector_store %arg6[%c200, %c0_98], %92 {strides = array<i32>} : memref<448x32xf32, #tpu.memory_space<vmem>>, vector<16x1xf32>,
      %c0_99 = arith.constant 0 : index
      %c8_100 = arith.constant 8 : index
      %c0_101 = arith.constant 0 : index
      %c0_102 = arith.constant 0 : index
      %94 = vector.load %arg2[%c0_99, %c8_100, %c0_101, %c0_102] : memref<1x16x16x1xf32, #tpu.memory_space<vmem>>, vector<1x1x16x1xf32>
      %95 = vector.shape_cast %94 : vector<1x1x16x1xf32> to vector<16x1xf32>
      %c224 = arith.constant 224 : index
      %c0_103 = arith.constant 0 : index
      %96 = vector.load %arg6[%c224, %c0_103] : memref<448x32xf32, #tpu.memory_space<vmem>>, vector<16x1xf32>
      tpu.vector_store %arg6[%c224, %c0_103], %95 {strides = array<i32>} : memref<448x32xf32, #tpu.memory_space<vmem>>, vector<16x1xf32>,
      %c0_104 = arith.constant 0 : index
      %c9_105 = arith.constant 9 : index
      %c0_106 = arith.constant 0 : index
      %c0_107 = arith.constant 0 : index
      %97 = vector.load %arg2[%c0_104, %c9_105, %c0_106, %c0_107] : memref<1x16x16x1xf32, #tpu.memory_space<vmem>>, vector<1x1x16x1xf32>
      %98 = vector.shape_cast %97 : vector<1x1x16x1xf32> to vector<16x1xf32>
      %c248 = arith.constant 248 : index
      %c0_108 = arith.constant 0 : index
      %99 = vector.load %arg6[%c248, %c0_108] : memref<448x32xf32, #tpu.memory_space<vmem>>, vector<16x1xf32>
      tpu.vector_store %arg6[%c248, %c0_108], %98 {strides = array<i32>} : memref<448x32xf32, #tpu.memory_space<vmem>>, vector<16x1xf32>,
      %c0_109 = arith.constant 0 : index
      %c10 = arith.constant 10 : index
      %c0_110 = arith.constant 0 : index
      %c0_111 = arith.constant 0 : index
      %100 = vector.load %arg2[%c0_109, %c10, %c0_110, %c0_111] : memref<1x16x16x1xf32, #tpu.memory_space<vmem>>, vector<1x1x16x1xf32>
      %101 = vector.shape_cast %100 : vector<1x1x16x1xf32> to vector<16x1xf32>
      %c272 = arith.constant 272 : index
      %c0_112 = arith.constant 0 : index
      %102 = vector.load %arg6[%c272, %c0_112] : memref<448x32xf32, #tpu.memory_space<vmem>>, vector<16x1xf32>
      tpu.vector_store %arg6[%c272, %c0_112], %101 {strides = array<i32>} : memref<448x32xf32, #tpu.memory_space<vmem>>, vector<16x1xf32>,
      %c0_113 = arith.constant 0 : index
      %c11 = arith.constant 11 : index
      %c0_114 = arith.constant 0 : index
      %c0_115 = arith.constant 0 : index
      %103 = vector.load %arg2[%c0_113, %c11, %c0_114, %c0_115] : memref<1x16x16x1xf32, #tpu.memory_space<vmem>>, vector<1x1x16x1xf32>
      %104 = vector.shape_cast %103 : vector<1x1x16x1xf32> to vector<16x1xf32>
      %c296 = arith.constant 296 : index
      %c0_116 = arith.constant 0 : index
      %105 = vector.load %arg6[%c296, %c0_116] : memref<448x32xf32, #tpu.memory_space<vmem>>, vector<16x1xf32>
      tpu.vector_store %arg6[%c296, %c0_116], %104 {strides = array<i32>} : memref<448x32xf32, #tpu.memory_space<vmem>>, vector<16x1xf32>,
      %c0_117 = arith.constant 0 : index
      %c12 = arith.constant 12 : index
      %c0_118 = arith.constant 0 : index
      %c0_119 = arith.constant 0 : index
      %106 = vector.load %arg2[%c0_117, %c12, %c0_118, %c0_119] : memref<1x16x16x1xf32, #tpu.memory_space<vmem>>, vector<1x1x16x1xf32>
      %107 = vector.shape_cast %106 : vector<1x1x16x1xf32> to vector<16x1xf32>
      %c320 = arith.constant 320 : index
      %c0_120 = arith.constant 0 : index
      %108 = vector.load %arg6[%c320, %c0_120] : memref<448x32xf32, #tpu.memory_space<vmem>>, vector<16x1xf32>
      tpu.vector_store %arg6[%c320, %c0_120], %107 {strides = array<i32>} : memref<448x32xf32, #tpu.memory_space<vmem>>, vector<16x1xf32>,
      %c0_121 = arith.constant 0 : index
      %c13 = arith.constant 13 : index
      %c0_122 = arith.constant 0 : index
      %c0_123 = arith.constant 0 : index
      %109 = vector.load %arg2[%c0_121, %c13, %c0_122, %c0_123] : memref<1x16x16x1xf32, #tpu.memory_space<vmem>>, vector<1x1x16x1xf32>
      %110 = vector.shape_cast %109 : vector<1x1x16x1xf32> to vector<16x1xf32>
      %c344 = arith.constant 344 : index
      %c0_124 = arith.constant 0 : index
      %111 = vector.load %arg6[%c344, %c0_124] : memref<448x32xf32, #tpu.memory_space<vmem>>, vector<16x1xf32>
      tpu.vector_store %arg6[%c344, %c0_124], %110 {strides = array<i32>} : memref<448x32xf32, #tpu.memory_space<vmem>>, vector<16x1xf32>,
      %c0_125 = arith.constant 0 : index
      %c14 = arith.constant 14 : index
      %c0_126 = arith.constant 0 : index
      %c0_127 = arith.constant 0 : index
      %112 = vector.load %arg2[%c0_125, %c14, %c0_126, %c0_127] : memref<1x16x16x1xf32, #tpu.memory_space<vmem>>, vector<1x1x16x1xf32>
      %113 = vector.shape_cast %112 : vector<1x1x16x1xf32> to vector<16x1xf32>
      %c368 = arith.constant 368 : index
      %c0_128 = arith.constant 0 : index
      %114 = vector.load %arg6[%c368, %c0_128] : memref<448x32xf32, #tpu.memory_space<vmem>>, vector<16x1xf32>
      tpu.vector_store %arg6[%c368, %c0_128], %113 {strides = array<i32>} : memref<448x32xf32, #tpu.memory_space<vmem>>, vector<16x1xf32>,
      %c0_129 = arith.constant 0 : index
      %c15 = arith.constant 15 : index
      %c0_130 = arith.constant 0 : index
      %c0_131 = arith.constant 0 : index
      %115 = vector.load %arg2[%c0_129, %c15, %c0_130, %c0_131] : memref<1x16x16x1xf32, #tpu.memory_space<vmem>>, vector<1x1x16x1xf32>
      %116 = vector.shape_cast %115 : vector<1x1x16x1xf32> to vector<16x1xf32>
      %c392 = arith.constant 392 : index
      %c0_132 = arith.constant 0 : index
      %117 = vector.load %arg6[%c392, %c0_132] : memref<448x32xf32, #tpu.memory_space<vmem>>, vector<16x1xf32>
      tpu.vector_store %arg6[%c392, %c0_132], %116 {strides = array<i32>} : memref<448x32xf32, #tpu.memory_space<vmem>>, vector<16x1xf32>,
    } else {
    }
    %cst = arith.constant 0.000000e+00 : f32
    %3 = vector.broadcast %cst : f32 to vector<384x32xf32>
    %c7 = arith.constant 7 : index
    %c0 = arith.constant 0 : index
    %4 = vector.load %arg6[%c7, %c0] : memref<448x32xf32, #tpu.memory_space<vmem>>, vector<384x32xf32>
    %5 = arith.truncf %4 : vector<384x32xf32> to vector<384x32xbf16>
    %c0_1 = arith.constant 0 : index
    %c0_2 = arith.constant 0 : index
    %c0_3 = arith.constant 0 : index
    %c0_4 = arith.constant 0 : index
    %6 = vector.load %arg3[%c0_1, %c0_2, %c0_3, %c0_4] : memref<1x9x32x32xbf16, #tpu.memory_space<vmem>>, vector<1x1x32x32xbf16>
    %7 = vector.shape_cast %6 : vector<1x1x32x32xbf16> to vector<32x32xbf16>
    %cst_5 = arith.constant dense<0.000000e+00> : vector<384x32xf32>
    %8 = tpu.matmul %5, %7, %cst_5 {dimension_numbers = #tpu.dot_dimension_numbers<[1], [0], [0], [1], [0, 0, 1, 1], [], []>} : vector<384x32xbf16>, vector<32x32xbf16>, vector<384x32xf32> -> vector<384x32xf32>
    %9 = arith.addf %3, %8 : vector<384x32xf32>
    %c8 = arith.constant 8 : index
    %c0_6 = arith.constant 0 : index
    %10 = vector.load %arg6[%c8, %c0_6] : memref<448x32xf32, #tpu.memory_space<vmem>>, vector<384x32xf32>
    %11 = arith.truncf %10 : vector<384x32xf32> to vector<384x32xbf16>
    %c0_7 = arith.constant 0 : index
    %c1 = arith.constant 1 : index
    %c0_8 = arith.constant 0 : index
    %c0_9 = arith.constant 0 : index
    %12 = vector.load %arg3[%c0_7, %c1, %c0_8, %c0_9] : memref<1x9x32x32xbf16, #tpu.memory_space<vmem>>, vector<1x1x32x32xbf16>
    %13 = vector.shape_cast %12 : vector<1x1x32x32xbf16> to vector<32x32xbf16>
    %cst_10 = arith.constant dense<0.000000e+00> : vector<384x32xf32>
    %14 = tpu.matmul %11, %13, %cst_10 {dimension_numbers = #tpu.dot_dimension_numbers<[1], [0], [0], [1], [0, 0, 1, 1], [], []>} : vector<384x32xbf16>, vector<32x32xbf16>, vector<384x32xf32> -> vector<384x32xf32>
    %15 = arith.addf %9, %14 : vector<384x32xf32>
    %c9 = arith.constant 9 : index
    %c0_11 = arith.constant 0 : index
    %16 = vector.load %arg6[%c9, %c0_11] : memref<448x32xf32, #tpu.memory_space<vmem>>, vector<384x32xf32>
    %17 = arith.truncf %16 : vector<384x32xf32> to vector<384x32xbf16>
    %c0_12 = arith.constant 0 : index
    %c2 = arith.constant 2 : index
    %c0_13 = arith.constant 0 : index
    %c0_14 = arith.constant 0 : index
    %18 = vector.load %arg3[%c0_12, %c2, %c0_13, %c0_14] : memref<1x9x32x32xbf16, #tpu.memory_space<vmem>>, vector<1x1x32x32xbf16>
    %19 = vector.shape_cast %18 : vector<1x1x32x32xbf16> to vector<32x32xbf16>
    %cst_15 = arith.constant dense<0.000000e+00> : vector<384x32xf32>
    %20 = tpu.matmul %17, %19, %cst_15 {dimension_numbers = #tpu.dot_dimension_numbers<[1], [0], [0], [1], [0, 0, 1, 1], [], []>} : vector<384x32xbf16>, vector<32x32xbf16>, vector<384x32xf32> -> vector<384x32xf32>
    %21 = arith.addf %15, %20 : vector<384x32xf32>
    %c31 = arith.constant 31 : index
    %c0_16 = arith.constant 0 : index
    %22 = vector.load %arg6[%c31, %c0_16] : memref<448x32xf32, #tpu.memory_space<vmem>>, vector<384x32xf32>
    %23 = arith.truncf %22 : vector<384x32xf32> to vector<384x32xbf16>
    %c0_17 = arith.constant 0 : index
    %c3 = arith.constant 3 : index
    %c0_18 = arith.constant 0 : index
    %c0_19 = arith.constant 0 : index
    %24 = vector.load %arg3[%c0_17, %c3, %c0_18, %c0_19] : memref<1x9x32x32xbf16, #tpu.memory_space<vmem>>, vector<1x1x32x32xbf16>
    %25 = vector.shape_cast %24 : vector<1x1x32x32xbf16> to vector<32x32xbf16>
    %cst_20 = arith.constant dense<0.000000e+00> : vector<384x32xf32>
    %26 = tpu.matmul %23, %25, %cst_20 {dimension_numbers = #tpu.dot_dimension_numbers<[1], [0], [0], [1], [0, 0, 1, 1], [], []>} : vector<384x32xbf16>, vector<32x32xbf16>, vector<384x32xf32> -> vector<384x32xf32>
    %27 = arith.addf %21, %26 : vector<384x32xf32>
    %c32 = arith.constant 32 : index
    %c0_21 = arith.constant 0 : index
    %28 = vector.load %arg6[%c32, %c0_21] : memref<448x32xf32, #tpu.memory_space<vmem>>, vector<384x32xf32>
    %29 = arith.truncf %28 : vector<384x32xf32> to vector<384x32xbf16>
    %c0_22 = arith.constant 0 : index
    %c4 = arith.constant 4 : index
    %c0_23 = arith.constant 0 : index
    %c0_24 = arith.constant 0 : index
    %30 = vector.load %arg3[%c0_22, %c4, %c0_23, %c0_24] : memref<1x9x32x32xbf16, #tpu.memory_space<vmem>>, vector<1x1x32x32xbf16>
    %31 = vector.shape_cast %30 : vector<1x1x32x32xbf16> to vector<32x32xbf16>
    %cst_25 = arith.constant dense<0.000000e+00> : vector<384x32xf32>
    %32 = tpu.matmul %29, %31, %cst_25 {dimension_numbers = #tpu.dot_dimension_numbers<[1], [0], [0], [1], [0, 0, 1, 1], [], []>} : vector<384x32xbf16>, vector<32x32xbf16>, vector<384x32xf32> -> vector<384x32xf32>
    %33 = arith.addf %27, %32 : vector<384x32xf32>
    %c33 = arith.constant 33 : index
    %c0_26 = arith.constant 0 : index
    %34 = vector.load %arg6[%c33, %c0_26] : memref<448x32xf32, #tpu.memory_space<vmem>>, vector<384x32xf32>
    %35 = arith.truncf %34 : vector<384x32xf32> to vector<384x32xbf16>
    %c0_27 = arith.constant 0 : index
    %c5 = arith.constant 5 : index
    %c0_28 = arith.constant 0 : index
    %c0_29 = arith.constant 0 : index
    %36 = vector.load %arg3[%c0_27, %c5, %c0_28, %c0_29] : memref<1x9x32x32xbf16, #tpu.memory_space<vmem>>, vector<1x1x32x32xbf16>
    %37 = vector.shape_cast %36 : vector<1x1x32x32xbf16> to vector<32x32xbf16>
    %cst_30 = arith.constant dense<0.000000e+00> : vector<384x32xf32>
    %38 = tpu.matmul %35, %37, %cst_30 {dimension_numbers = #tpu.dot_dimension_numbers<[1], [0], [0], [1], [0, 0, 1, 1], [], []>} : vector<384x32xbf16>, vector<32x32xbf16>, vector<384x32xf32> -> vector<384x32xf32>
    %39 = arith.addf %33, %38 : vector<384x32xf32>
    %c55 = arith.constant 55 : index
    %c0_31 = arith.constant 0 : index
    %40 = vector.load %arg6[%c55, %c0_31] : memref<448x32xf32, #tpu.memory_space<vmem>>, vector<384x32xf32>
    %41 = arith.truncf %40 : vector<384x32xf32> to vector<384x32xbf16>
    %c0_32 = arith.constant 0 : index
    %c6 = arith.constant 6 : index
    %c0_33 = arith.constant 0 : index
    %c0_34 = arith.constant 0 : index
    %42 = vector.load %arg3[%c0_32, %c6, %c0_33, %c0_34] : memref<1x9x32x32xbf16, #tpu.memory_space<vmem>>, vector<1x1x32x32xbf16>
    %43 = vector.shape_cast %42 : vector<1x1x32x32xbf16> to vector<32x32xbf16>
    %cst_35 = arith.constant dense<0.000000e+00> : vector<384x32xf32>
    %44 = tpu.matmul %41, %43, %cst_35 {dimension_numbers = #tpu.dot_dimension_numbers<[1], [0], [0], [1], [0, 0, 1, 1], [], []>} : vector<384x32xbf16>, vector<32x32xbf16>, vector<384x32xf32> -> vector<384x32xf32>
    %45 = arith.addf %39, %44 : vector<384x32xf32>
    %c56 = arith.constant 56 : index
    %c0_36 = arith.constant 0 : index
    %46 = vector.load %arg6[%c56, %c0_36] : memref<448x32xf32, #tpu.memory_space<vmem>>, vector<384x32xf32>
    %47 = arith.truncf %46 : vector<384x32xf32> to vector<384x32xbf16>
    %c0_37 = arith.constant 0 : index
    %c7_38 = arith.constant 7 : index
    %c0_39 = arith.constant 0 : index
    %c0_40 = arith.constant 0 : index
    %48 = vector.load %arg3[%c0_37, %c7_38, %c0_39, %c0_40] : memref<1x9x32x32xbf16, #tpu.memory_space<vmem>>, vector<1x1x32x32xbf16>
    %49 = vector.shape_cast %48 : vector<1x1x32x32xbf16> to vector<32x32xbf16>
    %cst_41 = arith.constant dense<0.000000e+00> : vector<384x32xf32>
    %50 = tpu.matmul %47, %49, %cst_41 {dimension_numbers = #tpu.dot_dimension_numbers<[1], [0], [0], [1], [0, 0, 1, 1], [], []>} : vector<384x32xbf16>, vector<32x32xbf16>, vector<384x32xf32> -> vector<384x32xf32>
    %51 = arith.addf %45, %50 : vector<384x32xf32>
    %c57 = arith.constant 57 : index
    %c0_42 = arith.constant 0 : index
    %52 = vector.load %arg6[%c57, %c0_42] : memref<448x32xf32, #tpu.memory_space<vmem>>, vector<384x32xf32>
    %53 = arith.truncf %52 : vector<384x32xf32> to vector<384x32xbf16>
    %c0_43 = arith.constant 0 : index
    %c8_44 = arith.constant 8 : index
    %c0_45 = arith.constant 0 : index
    %c0_46 = arith.constant 0 : index
    %54 = vector.load %arg3[%c0_43, %c8_44, %c0_45, %c0_46] : memref<1x9x32x32xbf16, #tpu.memory_space<vmem>>, vector<1x1x32x32xbf16>
    %55 = vector.shape_cast %54 : vector<1x1x32x32xbf16> to vector<32x32xbf16>
    %cst_47 = arith.constant dense<0.000000e+00> : vector<384x32xf32>
    %56 = tpu.matmul %53, %55, %cst_47 {dimension_numbers = #tpu.dot_dimension_numbers<[1], [0], [0], [1], [0, 0, 1, 1], [], []>} : vector<384x32xbf16>, vector<32x32xbf16>, vector<384x32xf32> -> vector<384x32xf32>
    %57 = arith.addf %51, %56 : vector<384x32xf32>
    %c0_48 = arith.constant 0 : index
    %c0_49 = arith.constant 0 : index
    %c0_50 = arith.constant 0 : index
    %58 = vector.load %arg4[%c0_48, %c0_49, %c0_50] : memref<1x1x32xf32, #tpu.memory_space<vmem>>, vector<1x1x32xf32>
    %59 = vector.shape_cast %58 : vector<1x1x32xf32> to vector<1x32xf32>
    %60 = vector.broadcast %59 : vector<1x32xf32> to vector<384x32xf32>
    %61 = arith.addf %57, %60 : vector<384x32xf32>
    %c5_i32 = arith.constant 5 : i32
    %62 = arith.cmpi slt, %arg1, %c5_i32 : i32
    %63 = arith.extui %62 : i1 to i32
    %c0_i32_51 = arith.constant 0 : i32
    %64 = arith.cmpi ne, %63, %c0_i32_51 : i32
    scf.if %64 {
      %68 = tpu.iota {dimensions = array<i32: 0>} : vector<384x1xi32>
      %c24_i32 = arith.constant 24 : i32
      %c0_i32_54 = arith.constant 0 : i32
      %69 = arith.cmpi eq, %c24_i32, %c0_i32_54 : i32
      %c1_i32 = arith.constant 1 : i32
      %70 = arith.select %69, %c1_i32, %c24_i32 : i32
      %71 = vector.broadcast %70 : i32 to vector<384x1xi32>
      %72 = arith.remsi %68, %71 : vector<384x1xi32>
      %c0_i32_55 = arith.constant 0 : i32
      %73 = vector.broadcast %c0_i32_55 : i32 to vector<384x1xi32>
      %74 = arith.cmpi ne, %72, %73 : vector<384x1xi32>
      %c0_i32_56 = arith.constant 0 : i32
      %75 = vector.broadcast %c0_i32_56 : i32 to vector<384x1xi32>
      %76 = arith.cmpi slt, %72, %75 : vector<384x1xi32>
      %c0_i32_57 = arith.constant 0 : i32
      %77 = arith.cmpi slt, %70, %c0_i32_57 : i32
      %78 = vector.broadcast %77 : i1 to vector<384x1xi1>
      %79 = vector.broadcast %78 : vector<384x1xi1> to vector<384x1xi1>
      %80 = arith.xori %76, %79 : vector<384x1xi1>
      %81 = arith.andi %80, %74 : vector<384x1xi1>
      %82 = vector.broadcast %70 : i32 to vector<384x1xi32>
      %83 = arith.addi %72, %82 : vector<384x1xi32>
      %84 = arith.select %81, %83, %72 : vector<384x1xi1>, vector<384x1xi32>
      %c16_i32 = arith.constant 16 : i32
      %85 = vector.broadcast %c16_i32 : i32 to vector<384x1xi32>
      %86 = arith.cmpi slt, %84, %85 : vector<384x1xi32>
      %cst_58 = arith.constant 0.000000e+00 : f32
      %87 = vector.broadcast %cst_58 : f32 to vector<384x32xf32>
      %88 = arith.maximumf %61, %87 : vector<384x32xf32>
      %cst_59 = arith.constant 0.000000e+00 : f32
      %89 = vector.shape_cast %86 : vector<384x1xi1> to vector<384x1xi1>
      %90 = vector.broadcast %89 : vector<384x1xi1> to vector<384x32xi1>
      %91 = vector.broadcast %cst_59 : f32 to vector<384x32xf32>
      %92 = arith.select %90, %88, %91 : vector<384x32xi1>, vector<384x32xf32>
      %c32_60 = arith.constant 32 : index
      %c0_61 = arith.constant 0 : index
      %93 = vector.load %arg6[%c32_60, %c0_61] : memref<448x32xf32, #tpu.memory_space<vmem>>, vector<384x32xf32>
      tpu.vector_store %arg6[%c32_60, %c0_61], %92 {strides = array<i32>} : memref<448x32xf32, #tpu.memory_space<vmem>>, vector<384x32xf32>,
    } else {
    }
    %c5_i32_52 = arith.constant 5 : i32
    %65 = arith.cmpi eq, %arg1, %c5_i32_52 : i32
    %66 = arith.extui %65 : i1 to i32
    %c0_i32_53 = arith.constant 0 : i32
    %67 = arith.cmpi ne, %66, %c0_i32_53 : i32
    scf.if %67 {
      %68 = vector.shape_cast %61 : vector<384x32xf32> to vector<16x24x32xf32>
      %69 = vector.extract_strided_slice %68 {offsets = [0, 0, 0], sizes = [16, 16, 1], strides = [1, 1, 1]} : vector<16x24x32xf32> to vector<16x16x1xf32>
      %c0_54 = arith.constant 0 : index
      %c0_55 = arith.constant 0 : index
      %c0_56 = arith.constant 0 : index
      %c0_57 = arith.constant 0 : index
      %70 = vector.load %arg2[%c0_54, %c0_55, %c0_56, %c0_57] : memref<1x16x16x1xf32, #tpu.memory_space<vmem>>, vector<1x16x16x1xf32>
      %71 = vector.shape_cast %70 : vector<1x16x16x1xf32> to vector<16x16x1xf32>
      %72 = arith.subf %71, %69 : vector<16x16x1xf32>
      %c0_58 = arith.constant 0 : index
      %c0_59 = arith.constant 0 : index
      %c0_60 = arith.constant 0 : index
      %c0_61 = arith.constant 0 : index
      %73 = vector.load %arg5[%c0_58, %c0_59, %c0_60, %c0_61] : memref<1x16x16x1xf32, #tpu.memory_space<vmem>>, vector<1x16x16x1xf32>
      %74 = vector.shape_cast %73 : vector<1x16x16x1xf32> to vector<16x16x1xf32>
      %75 = vector.shape_cast %72 : vector<16x16x1xf32> to vector<1x16x16x1xf32>
      tpu.vector_store %arg5[%c0_58, %c0_59, %c0_60, %c0_61], %75 {strides = array<i32>} : memref<1x16x16x1xf32, #tpu.memory_space<vmem>>, vector<1x16x16x1xf32>,
    } else {
    }
    return
  }
  func.func @transform_0(%arg0: i32, %arg1: i32) -> (i32, i32, i32, i32) {
    %c0_i32 = arith.constant 0 : i32
    %c0_i32_0 = arith.constant 0 : i32
    %c0_i32_1 = arith.constant 0 : i32
    %c0_i32_2 = arith.constant 0 : i32
    return %arg0, %c0_i32, %c0_i32_0, %c0_i32_1 : i32, i32, i32, i32
  }
  func.func @transform_1(%arg0: i32, %arg1: i32) -> (i32, i32, i32, i32) {
    %c0_i32 = arith.constant 0 : i32
    %c0_i32_0 = arith.constant 0 : i32
    %c0_i32_1 = arith.constant 0 : i32
    %c0_i32_2 = arith.constant 0 : i32
    return %arg1, %c0_i32, %c0_i32_0, %c0_i32_1 : i32, i32, i32, i32
  }
  func.func @transform_2(%arg0: i32, %arg1: i32) -> (i32, i32, i32) {
    %c0_i32 = arith.constant 0 : i32
    %c0_i32_0 = arith.constant 0 : i32
    %c0_i32_1 = arith.constant 0 : i32
    return %arg1, %c0_i32, %c0_i32_0 : i32, i32, i32
  }
  func.func @transform_3(%arg0: i32, %arg1: i32) -> (i32, i32, i32, i32) {
    %c0_i32 = arith.constant 0 : i32
    %c0_i32_0 = arith.constant 0 : i32
    %c0_i32_1 = arith.constant 0 : i32
    %c0_i32_2 = arith.constant 0 : i32
    return %arg0, %c0_i32, %c0_i32_0, %c0_i32_1 : i32, i32, i32, i32
  }
}

</mosaic_0001>

<bundles_post_ra>
// kernel: tpu_custom_call.1
= control target key start
LH: loop header
LB: loop body
LE: loop exit
PB: predicated region body
PF: predicated region fallthrough
CT: control target
= control target key end

     0   :  { %8 = vsyncpa [#allocation4], 0  ;;  %s9016_s0 = inlined_call_operand.vmem [shape: f32[2,16,16,1], index: 0, kind: input, shape index: {}]   ;;  %s9017_s1 = inlined_call_operand.hbm [shape: bf16[6,9,32,32], index: 1, kind: input, shape index: {}]   ;;  %s9018_s2 = inlined_call_operand.vmem [shape: f32[6,1,32], index: 2, kind: input, shape index: {}]   ;;  %s9019_s3 = inlined_call_operand.vmem [shape: f32[2,16,16,1], index: 3, kind: output, shape index: {}]  }
   0x1   :  { %10 = vsyncpa [#allocation4 + $0x1], 0  ;;  %s7272_s12 = smov 0   ;;  %s7274_s13 = smov 0  }
   0x2   :  { %s7276_s14 = smov 0   ;;  %s7278_s15 = smov 0  }
   0x3   :  { %s7280_s16 = smov 0   ;;  %s7282_s17 = smov 0  }
   0x4   :  { %s7284_s18 = smov 0   ;;  %s7286_s19 = smov 0  }
   0x5 LB: > { %s5553_s20 = sadd.s32 4294967295, %s7246_s19   ;;  %s25_s21 = sadd.s32 1, %s7238_s17  ;;  %s7246_s19 = sphi %s7286_s19, %s16_s19   ;;  %s7242_s18 = sphi %s7284_s18, %s9260_s18   ;;  %s7238_s17 = sphi %s7282_s17, %s9259_s17   ;;  %s7234_s16 = sphi %s7280_s16, %s9258_s16   ;;  %s7230_s15 = sphi %s7278_s15, %s9257_s15   ;;  %s7226_s14 = sphi %s7276_s14, %s9256_s14   ;;  %s7222_s13 = sphi %s7274_s13, %s9255_s13   ;;  %s7218_s12 = sphi %s7272_s12, %s9254_s12  }
   0x6   : > { %p26_p0 = scmp.ge.s32.totalorder %s25_s21, 6  ;;  %s28_s22 = sadd.s32 1, %s7242_s18 }
   0x7   : > { %s61_s23 = sadd.s32 1, %s7226_s14  ;;  %p68_p1 = scmp.ne.s32.totalorder %s7226_s14, %s7222_s13 }
   0x8   : > { %s9262_s21 = smov (%p26_p0, %s25_s21), 0  ;;  %s9264_s22 = smov (!%p26_p0, %s28_s22), %s7242_s18 }
   0x9   : > { %s58_s24 = ssub.s32 %s7238_s17, %s9262_s21  ;;  %p69_p2 = scmp.eq.s32.totalorder %s7246_s19, 0 }
   0xa   : > { %p30_p3 = scmp.ge.s32.totalorder %s9264_s22, 2  ;;  %p59_p4 = scmp.eq.s32.totalorder %s58_s24, 0 }
   0xb   : > { %p70_p5 = por %p69_p2, %p68_p1  ;;  %p74_p6 = scmp.ne.s32.totalorder %s7222_s13, %s7218_s12 }
   0xc   : > { %s9266_s22 = smov (%p30_p3, %s9264_s22), 0  ;;  %p75_p7 = scmp.eq.s32.totalorder %s5553_s20, 0 }
   0xd   : > { %s7326_s25 = scalar_select %p59_p4, %s7226_s14, %s61_s23  }
   0xe   : > { %p7062_p8 = scmp.lt.s32.totalorder %s7246_s19, 12  ;;  %s158_s26 = sand.u32 1, %s7226_s14  }
   0xf   : > { %p7330_p9 = por %p75_p7, %p74_p6  ;;  %s6957_s28 = smul.u32 144, %s158_s26 }
  0x10   : > { %p7334_p10 = pnand %p7062_p8, %p70_p5  ;;  %s6958_s30 = smul.u32 2304, %s7238_s17 }
  0x11   : > { %s162_s7 = scalar_lea.vmem [#allocation3], %s6957_s28  ;;  %s7346_s9 = scalar_lea.sflag [#allocation4], %s158_s26 }
  0x12   : > { %s7342_s6 = scalar_lea.hbm %s9017_s1, %s6958_s30  ;;  %s169_s8 = sshll.u32 %s162_s7, 4  ;;  %s7344_s8 = int_to_ptr.vmem [resolvable:$true] %s169_s8 }
  0x13   : > { %s7150_s10 = scalar_lea.hbm %s7342_s6, 2304  ;;  %p7152_p12 = pneg %p7334_p10 }
  0x14   : > { %p7151_p11 = scmp.ne.s32.totalorder %s7342_s6, %s7150_s10  ;;  %s7155_s20 = scalar_lea.hbm %s9017_s1, 13824 }
  0x15   : > { %p7156_p1 = scmp.lt.u32.totalorder %s7342_s6, %s9017_s1  ;;  %p7157_p2 = scmp.lt.u32.totalorder %s7155_s20, %s7150_s10 }
  0x16   : > { %p7153_p13 = pnand %p7152_p12, %p7151_p11  ;;  %p7159_p4 = scmp.lt.u32.totalorder %s7150_s10, %s7342_s6 }
  0x17   : > { %p7158_p3 = por %p7157_p2, %p7156_p1 }
  0x18   : > { %p7154_p0 = pneg %p7153_p13 }
  0x19   : > { %p7160_p5 = por %p7159_p4, %p7158_p3 }
  0x1b   : > { %p7161_p6 = pnand %p7160_p5, %p7154_p0 }
  0x1d   : > { %7164 = shalt.err (!%p7161_p6)
}
  0x1e   : > { %s7165_s26 = scalar_lea.vmem %s7344_s8, 2304  ;;  %s7248_s28 = smov [#allocation3]  }
  0x1f   : > { %p7166_p7 = scmp.ne.s32.totalorder %s7344_s8, %s7165_s26  ;;  %s7170_s30 = sshll.u32 %s7248_s28, 4  ;;  %s7171_s30 = int_to_ptr.vmem [resolvable:$false] %s7170_s30 }
  0x20   : > { %s7172_s4 = scalar_lea.vmem %s7171_s30, 4608  ;;  %p7173_p13 = scmp.lt.s32.totalorder %s7344_s8, %s7171_s30 }
  0x21   : > { %p7168_p8 = pnand %p7166_p7, %p7152_p12  ;;  %p7174_p1 = scmp.lt.s32.totalorder %s7172_s4, %s7165_s26 }
  0x23   : > { %p7169_p11 = pneg %p7168_p8  ;;  %p7175_p2 = por %p7174_p1, %p7173_p13 }
  0x25   : > { %p7176_p3 = pnand %p7175_p2, %p7169_p11 }
  0x27   : > { %7179 = shalt.err (!%p7176_p3)
}
  0x28   : > { %s7249_s5 = smov 64   ;;  %s7250_s7 = smov 4  }
  0x29   : > { %7061 = dma.hbm_to_vmem [thread:$0]  (!%p7334_p10), %s7342_s6, 2304, %s7344_s8, %s7346_s9, %s7249_s5, %s7249_s5, %s7250_s7  }
  0x2a   : > { %p5558_p12 = scmp.ge.s32.totalorder %s7246_s19, 1  ;;  %p183_p0 = scmp.lt.s32.totalorder %s7246_s19, 13 }
  0x2c   : > { %p184_p4 = pnand %p5558_p12, %p183_p0 }
  0x2e   : > { %187 = sbr.rel (%p184_p4) target bundleno = 940 (0x3ac), region = 32 }
  0x35   : > { %s189_s10 = sand.u32 1, %s7222_s13  }
  0x36   : > { %s6959_s11 = smul.u32 144, %s189_s10  ;;  %s190_s12 = scalar_lea.sflag [#allocation4], %s189_s10 }
  0x38   : > { %s7377_s20 = scalar_lea.vmem [#allocation3], %s6959_s11 }
  0x39   : > { %7213 = dma.done.wait (%p7330_p9), %s190_s12, 2304  }
  0x3a   : > { %7215 = vsyncadd (%p7330_p9), %s190_s12, 4294964992  ;;  %p224_p10 = scmp.lt.s32.totalorder %s7234_s16, 1  ;;  %p229_p5 = scmp.lt.s32.totalorder %s7230_s15, 5 }
  0x3b   : > { %p5563_p9 = scmp.ne.s32.totalorder %s7230_s15, 0 }
  0x3c   : > { %s9268_s16 = smov (!%p224_p10, %s7234_s16), 1  ;;  %vm242_vm0 = vcmask (!%p5563_p9), 261120   ;;  %vm301_vm1 = vcmask (!%p5563_p9), 7168   ;;  %v7251_v3 = vmov (!%p5563_p9), 0.0  }
  0x3d   : > { %s7387_s29 = scalar_select %p229_p5, %s7230_s15, 5 }
  0x3e   : > { %s5865_s6 = sshll.u32 %s9268_s16, 8  ;;  %241 = sbr.rel (%p5563_p9) target bundleno = 107 (0x6b), region = 40  ;;  %247 = vst.msk [vmem:[#allocation2 + $0x20] sm:$0xff] (!%p5563_p9), %vm242_vm0, %v7251_v3  ;;  %243 = vst.msk [vmem:[#allocation2] sm:$0xff] (!%p5563_p9), %vm242_vm0, %v7251_v3 }
  0x3f   : > { %s7392_s23 = scalar_lea.vmem %s9016_s0, %s5865_s6  ;;  %s231_s27 = scalar_lea.vmem %s9018_s2, %s7387_s29  ;;  %244 = vst.msk [vmem:[#allocation2 + $0x8] sm:$0xff] (!%p5563_p9), %vm242_vm0, %v7251_v3  ;;  %245 = vst.msk [vmem:[#allocation2 + $0x10] sm:$0xff] (!%p5563_p9), %vm242_vm0, %v7251_v3 }
  0x40   : > { %s7401_s4 = scalar_lea.vmem %s9019_s3, %s5865_s6  ;;  %v7405_v0 = vld [vmem:[%s7392_s23] sm:$0xff] (!%p5563_p9)  ;;  %v7408_v1 = vld [vmem:[%s7392_s23 + $0x8] sm:$0xff] (!%p5563_p9)  ;;  %v7411_v2 = vld [vmem:[%s7392_s23 + $0x10] sm:$0xff] (!%p5563_p9)  ;;  %246 = vst.msk [vmem:[#allocation2 + $0x18] sm:$0xff] (!%p5563_p9), %vm242_vm0, %v7251_v3 }
  0x41   : > { %248 = vst.msk [vmem:[#allocation2 + $0x28] sm:$0xff] (!%p5563_p9), %vm242_vm0, %v7251_v3  ;;  %249 = vst.msk [vmem:[#allocation2 + $0x30] sm:$0xff] (!%p5563_p9), %vm242_vm0, %v7251_v3  ;;  %v5565_v4 = vld [vmem:[%s7392_s23 + $0x18] sm:$0xff] (!%p5563_p9)  ;;  %v5566_v5 = vld [vmem:[%s7392_s23 + $0x20] sm:$0xff] (!%p5563_p9) }
  0x42   : > { %250 = vst.msk [vmem:[#allocation2 + $0x38] sm:$0xff] (!%p5563_p9), %vm242_vm0, %v7251_v3  ;;  %251 = vst.msk [vmem:[#allocation2 + $0x40] sm:$0xff] (!%p5563_p9), %vm242_vm0, %v7251_v3  ;;  %v5567_v6 = vld [vmem:[%s7392_s23 + $0x28] sm:$0xff] (!%p5563_p9)  ;;  %v5568_v7 = vld [vmem:[%s7392_s23 + $0x30] sm:$0xff] (!%p5563_p9) }
  0x43   : > { %252 = vst.msk [vmem:[#allocation2 + $0x48] sm:$0xff] (!%p5563_p9), %vm242_vm0, %v7251_v3  ;;  %253 = vst.msk [vmem:[#allocation2 + $0x50] sm:$0xff] (!%p5563_p9), %vm242_vm0, %v7251_v3  ;;  %v5569_v8 = vld [vmem:[%s7392_s23 + $0x38] sm:$0xff] (!%p5563_p9)  ;;  %v5570_v9 = vld [vmem:[%s7392_s23 + $0x40] sm:$0xff] (!%p5563_p9) }
  0x44   : > { %254 = vst.msk [vmem:[#allocation2 + $0x58] sm:$0xff] (!%p5563_p9), %vm242_vm0, %v7251_v3  ;;  %255 = vst.msk [vmem:[#allocation2 + $0x60] sm:$0xff] (!%p5563_p9), %vm242_vm0, %v7251_v3  ;;  %v5571_v10 = vld [vmem:[%s7392_s23 + $0x48] sm:$0xff] (!%p5563_p9)  ;;  %v5572_v11 = vld [vmem:[%s7392_s23 + $0x50] sm:$0xff] (!%p5563_p9) }
  0x45   : > { %256 = vst.msk [vmem:[#allocation2 + $0x68] sm:$0xff] %vm242_vm0, %v7251_v3  ;;  %257 = vst.msk [vmem:[#allocation2 + $0x70] sm:$0xff] %vm242_vm0, %v7251_v3  ;;  %v5573_v12 = vld [vmem:[%s7392_s23 + $0x58] sm:$0xff]  ;;  %v5574_v13 = vld [vmem:[%s7392_s23 + $0x60] sm:$0xff] }
  0x46   : > { %258 = vst.msk [vmem:[#allocation2 + $0x78] sm:$0xff] %vm242_vm0, %v7251_v3  ;;  %259 = vst.msk [vmem:[#allocation2 + $0x80] sm:$0xff] %vm242_vm0, %v7251_v3  ;;  %v5575_v14 = vld [vmem:[%s7392_s23 + $0x68] sm:$0xff]  ;;  %v5576_v15 = vld [vmem:[%s7392_s23 + $0x70] sm:$0xff] }
  0x47   : > { %260 = vst.msk [vmem:[#allocation2 + $0x88] sm:$0xff] %vm242_vm0, %v7251_v3  ;;  %261 = vst.msk [vmem:[#allocation2 + $0x90] sm:$0xff] %vm242_vm0, %v7251_v3  ;;  %v5577_v16 = vld [vmem:[%s7392_s23 + $0x78] sm:$0xff]  ;;  %v5578_v17 = vld [vmem:[%s7392_s23 + $0x80] sm:$0xff] }
  0x48   : > { %262 = vst.msk [vmem:[#allocation2 + $0x98] sm:$0xff] %vm242_vm0, %v7251_v3  ;;  %263 = vst.msk [vmem:[#allocation2 + $0xa0] sm:$0xff] %vm242_vm0, %v7251_v3  ;;  %v5579_v18 = vld [vmem:[%s7392_s23 + $0x88] sm:$0xff]  ;;  %v5580_v19 = vld [vmem:[%s7392_s23 + $0x90] sm:$0xff] }
  0x49   : > { %264 = vst.msk [vmem:[#allocation2 + $0xa8] sm:$0xff] %vm242_vm0, %v7251_v3  ;;  %265 = vst.msk [vmem:[#allocation2 + $0xb0] sm:$0xff] %vm242_vm0, %v7251_v3  ;;  %v5581_v20 = vld [vmem:[%s7392_s23 + $0x98] sm:$0xff]  ;;  %v5582_v21 = vld [vmem:[%s7392_s23 + $0xa0] sm:$0xff] }
  0x4a   : > { %266 = vst.msk [vmem:[#allocation2 + $0xb8] sm:$0xff] %vm242_vm0, %v7251_v3  ;;  %267 = vst.msk [vmem:[#allocation2 + $0xc0] sm:$0xff] %vm242_vm0, %v7251_v3  ;;  %v5583_v22 = vld [vmem:[%s7392_s23 + $0xa8] sm:$0xff]  ;;  %v5584_v23 = vld [vmem:[%s7392_s23 + $0xb0] sm:$0xff] }
  0x4b   : > { %268 = vst.msk [vmem:[#allocation2 + $0xc8] sm:$0xff] %vm242_vm0, %v7251_v3  ;;  %269 = vst.msk [vmem:[#allocation2 + $0xd0] sm:$0xff] %vm242_vm0, %v7251_v3  ;;  %v5585_v24 = vld [vmem:[%s7392_s23 + $0xb8] sm:$0xff]  ;;  %v5586_v25 = vld [vmem:[%s7392_s23 + $0xc0] sm:$0xff] }
  0x4c   : > { %270 = vst.msk [vmem:[#allocation2 + $0xd8] sm:$0xff] %vm242_vm0, %v7251_v3  ;;  %271 = vst.msk [vmem:[#allocation2 + $0xe0] sm:$0xff] %vm242_vm0, %v7251_v3  ;;  %v5587_v26 = vld [vmem:[%s7392_s23 + $0xc8] sm:$0xff]  ;;  %v5588_v27 = vld [vmem:[%s7392_s23 + $0xd0] sm:$0xff] }
  0x4d   : > { %272 = vst.msk [vmem:[#allocation2 + $0xe8] sm:$0xff] %vm242_vm0, %v7251_v3  ;;  %273 = vst.msk [vmem:[#allocation2 + $0xf0] sm:$0xff] %vm242_vm0, %v7251_v3  ;;  %v5589_v28 = vld [vmem:[%s7392_s23 + $0xd8] sm:$0xff]  ;;  %v5590_v29 = vld [vmem:[%s7392_s23 + $0xe0] sm:$0xff] }
  0x4e   : > { %274 = vst.msk [vmem:[#allocation2 + $0xf8] sm:$0xff] %vm242_vm0, %v7251_v3  ;;  %275 = vst.msk [vmem:[#allocation2 + $0x100] sm:$0xff] %vm242_vm0, %v7251_v3  ;;  %v5591_v30 = vld [vmem:[%s7392_s23 + $0xe8] sm:$0xff]  ;;  %v5592_v31 = vld [vmem:[%s7392_s23 + $0xf0] sm:$0xff] }
  0x4f   : > { %276 = vst.msk [vmem:[#allocation2 + $0x108] sm:$0xff] %vm242_vm0, %v7251_v3  ;;  %277 = vst.msk [vmem:[#allocation2 + $0x110] sm:$0xff] %vm242_vm0, %v7251_v3  ;;  %v5593_v32 = vld [vmem:[%s7392_s23 + $0xf8] sm:$0xff] }
  0x50   : > { %278 = vst.msk [vmem:[#allocation2 + $0x118] sm:$0xff] %vm242_vm0, %v7251_v3  ;;  %279 = vst.msk [vmem:[#allocation2 + $0x120] sm:$0xff] %vm242_vm0, %v7251_v3 }
  0x51   : > { %280 = vst.msk [vmem:[#allocation2 + $0x128] sm:$0xff] %vm242_vm0, %v7251_v3  ;;  %281 = vst.msk [vmem:[#allocation2 + $0x130] sm:$0xff] %vm242_vm0, %v7251_v3 }
  0x52   : > { %282 = vst.msk [vmem:[#allocation2 + $0x138] sm:$0xff] %vm242_vm0, %v7251_v3  ;;  %283 = vst.msk [vmem:[#allocation2 + $0x140] sm:$0xff] %vm242_vm0, %v7251_v3 }
  0x53   : > { %284 = vst.msk [vmem:[#allocation2 + $0x148] sm:$0xff] %vm242_vm0, %v7251_v3  ;;  %285 = vst.msk [vmem:[#allocation2 + $0x150] sm:$0xff] %vm242_vm0, %v7251_v3 }
  0x54   : > { %286 = vst.msk [vmem:[#allocation2 + $0x158] sm:$0xff] %vm242_vm0, %v7251_v3  ;;  %287 = vst.msk [vmem:[#allocation2 + $0x160] sm:$0xff] %vm242_vm0, %v7251_v3 }
  0x55   : > { %288 = vst.msk [vmem:[#allocation2 + $0x168] sm:$0xff] %vm242_vm0, %v7251_v3  ;;  %289 = vst.msk [vmem:[#allocation2 + $0x170] sm:$0xff] %vm242_vm0, %v7251_v3 }
  0x56   : > { %290 = vst.msk [vmem:[#allocation2 + $0x178] sm:$0xff] %vm242_vm0, %v7251_v3  ;;  %291 = vst.msk [vmem:[#allocation2 + $0x180] sm:$0xff] %vm242_vm0, %v7251_v3 }
  0x57   : > { %292 = vst.msk [vmem:[#allocation2 + $0x188] sm:$0xff] %vm242_vm0, %v7251_v3  ;;  %293 = vst.msk [vmem:[#allocation2 + $0x190] sm:$0xff] %vm242_vm0, %v7251_v3 }
  0x58   : > { %294 = vst.msk [vmem:[#allocation2 + $0x198] sm:$0xff] %vm242_vm0, %v7251_v3  ;;  %295 = vst.msk [vmem:[#allocation2 + $0x1a0] sm:$0xff] %vm242_vm0, %v7251_v3 }
  0x59   : > { %296 = vst.msk [vmem:[#allocation2 + $0x1a8] sm:$0xff] %vm242_vm0, %v7251_v3  ;;  %297 = vst.msk [vmem:[#allocation2 + $0x1b0] sm:$0xff] %vm242_vm0, %v7251_v3 }
  0x5a   : > { %298 = vst.msk [vmem:[#allocation2 + $0x1b8] sm:$0xff] %vm242_vm0, %v7251_v3 }
  0x5b   : > { %302 = vst.msk [vmem:[#allocation2 + $0x20] sm:$0xff] %vm301_vm1, %v7405_v0  ;;  %303 = vst.msk [vmem:[#allocation2 + $0x28] sm:$0xff] %vm301_vm1, %v7408_v1 }
  0x5c   : > { %307 = vst.msk [vmem:[#allocation2 + $0x38] sm:$0xff] %vm301_vm1, %v7411_v2  ;;  %308 = vst.msk [vmem:[#allocation2 + $0x40] sm:$0xff] %vm301_vm1, %v5565_v4 }
  0x5d   : > { %312 = vst.msk [vmem:[#allocation2 + $0x50] sm:$0xff] %vm301_vm1, %v5566_v5  ;;  %313 = vst.msk [vmem:[#allocation2 + $0x58] sm:$0xff] %vm301_vm1, %v5567_v6 }
  0x5e   : > { %317 = vst.msk [vmem:[#allocation2 + $0x68] sm:$0xff] %vm301_vm1, %v5568_v7  ;;  %318 = vst.msk [vmem:[#allocation2 + $0x70] sm:$0xff] %vm301_vm1, %v5569_v8 }
  0x5f   : > { %322 = vst.msk [vmem:[#allocation2 + $0x80] sm:$0xff] %vm301_vm1, %v5570_v9  ;;  %323 = vst.msk [vmem:[#allocation2 + $0x88] sm:$0xff] %vm301_vm1, %v5571_v10 }
  0x60   : > { %327 = vst.msk [vmem:[#allocation2 + $0x98] sm:$0xff] %vm301_vm1, %v5572_v11  ;;  %328 = vst.msk [vmem:[#allocation2 + $0xa0] sm:$0xff] %vm301_vm1, %v5573_v12 }
  0x61   : > { %332 = vst.msk [vmem:[#allocation2 + $0xb0] sm:$0xff] %vm301_vm1, %v5574_v13  ;;  %333 = vst.msk [vmem:[#allocation2 + $0xb8] sm:$0xff] %vm301_vm1, %v5575_v14 }
  0x62   : > { %337 = vst.msk [vmem:[#allocation2 + $0xc8] sm:$0xff] %vm301_vm1, %v5576_v15  ;;  %338 = vst.msk [vmem:[#allocation2 + $0xd0] sm:$0xff] %vm301_vm1, %v5577_v16 }
  0x63   : > { %342 = vst.msk [vmem:[#allocation2 + $0xe0] sm:$0xff] %vm301_vm1, %v5578_v17  ;;  %343 = vst.msk [vmem:[#allocation2 + $0xe8] sm:$0xff] %vm301_vm1, %v5579_v18 }
  0x64   : > { %347 = vst.msk [vmem:[#allocation2 + $0xf8] sm:$0xff] %vm301_vm1, %v5580_v19  ;;  %348 = vst.msk [vmem:[#allocation2 + $0x100] sm:$0xff] %vm301_vm1, %v5581_v20 }
  0x65   : > { %352 = vst.msk [vmem:[#allocation2 + $0x110] sm:$0xff] %vm301_vm1, %v5582_v21  ;;  %353 = vst.msk [vmem:[#allocation2 + $0x118] sm:$0xff] %vm301_vm1, %v5583_v22 }
  0x66   : > { %357 = vst.msk [vmem:[#allocation2 + $0x128] sm:$0xff] %vm301_vm1, %v5584_v23  ;;  %358 = vst.msk [vmem:[#allocation2 + $0x130] sm:$0xff] %vm301_vm1, %v5585_v24 }
  0x67   : > { %362 = vst.msk [vmem:[#allocation2 + $0x140] sm:$0xff] %vm301_vm1, %v5586_v25  ;;  %363 = vst.msk [vmem:[#allocation2 + $0x148] sm:$0xff] %vm301_vm1, %v5587_v26 }
  0x68   : > { %367 = vst.msk [vmem:[#allocation2 + $0x158] sm:$0xff] %vm301_vm1, %v5588_v27  ;;  %368 = vst.msk [vmem:[#allocation2 + $0x160] sm:$0xff] %vm301_vm1, %v5589_v28 }
  0x69   : > { %372 = vst.msk [vmem:[#allocation2 + $0x170] sm:$0xff] %vm301_vm1, %v5590_v29  ;;  %373 = vst.msk [vmem:[#allocation2 + $0x178] sm:$0xff] %vm301_vm1, %v5591_v30 }
  0x6a   : > { %377 = vst.msk [vmem:[#allocation2 + $0x188] sm:$0xff] %vm301_vm1, %v5592_v31  ;;  %378 = vst.msk [vmem:[#allocation2 + $0x190] sm:$0xff] %vm301_vm1, %v5593_v32 }
  0x6b PF: > { %v7130_v33 = vld [vmem:[%s7377_s20 + $0x10] sm:$0xff]   ;;  %v7535_v34 = vld [vmem:[%s7377_s20 + $0x40] sm:$0xff]   ;;  %v7132_v35 = vld [vmem:[%s7377_s20 + $0x18] sm:$0xff]   ;;  %vm544_vm2 = vcmask 261120   ;;  %p5861_p6 = scmp.ge.s32.totalorder %s7230_s15, 5 }
  0x6c   : > { %6101 = vmatprep.subr.bf16.mxu1 %v7130_v33  ;;  %6309 = vmatprep.subr.bf16.mxu0 %v7535_v34  ;;  %v7133_v36 = vld [vmem:[%s7377_s20 + $0x48] sm:$0xff]   ;;  %v456_v38 = vld [vmem:[#allocation2 + $0x10] sm:$0xff]  ;;  %v2019_v39 = vld [vmem:[#allocation2 + $0x20] sm:$0xff] }
  0x6d   : > { %6102 = vmatpush3.bf16.msra.mxu1 %v7130_v33  ;;  %6310 = vmatpush3.bf16.msra.mxu0 %v7535_v34  ;;  %v455_v37 = vld [vmem:[#allocation2 + $0x8] sm:$0xff]  ;;  %v457_v42 = vld [vmem:[#allocation2 + $0x18] sm:$0xff]  ;;  %v7134_v45 = vld [vmem:[%s7377_s20] sm:$0xff]  }
  0x6e   : > { %6103 = vmatprep.subr.bf16.mxu1 %v7132_v35  ;;  %6311 = vmatprep.subr.bf16.mxu0 %v7133_v36  ;;  %v503_v40 = vpack.c.bf16 %v456_v38, %v455_v37  ;;  %v2020_v41 = vld [vmem:[#allocation2 + $0x28] sm:$0xff]  ;;  %v504_v44 = vpack.c.bf16 %v2019_v39, %v457_v42  ;;  %v2021_v46 = vld [vmem:[#allocation2 + $0x30] sm:$0xff]  ;;  %v2030_v2 = vld [vmem:[#allocation2 + $0x78] sm:$0xff] }
  0x6f   : > { %v2067_v43 = vpack.c.bf16 %v2020_v41, %v2019_v39  ;;  %v2022_v47 = vld [vmem:[#allocation2 + $0x38] sm:$0xff]  ;;  %v7135_v49 = vld [vmem:[%s7377_s20 + $0x50] sm:$0xff]   ;;  %v505_v50 = vpack.c.bf16 %v2021_v46, %v2020_v41  ;;  %v7559_v0 = vld [vmem:[%s7377_s20 + $0x60] sm:$0xff]  }
  0x70   : > { %6105 = vmatprep.mubr.msk.bf16.mxu1 %vm544_vm2, %v503_v40  ;;  %v2068_v48 = vpack.c.bf16 %v2022_v47, %v2021_v46  ;;  %v7545_v51 = vld [vmem:[#allocation2 + $0x40] sm:$0xff]  ;;  %v2024_v52 = vld [vmem:[#allocation2 + $0x48] sm:$0xff]  ;;  %v2025_v54 = vld [vmem:[#allocation2 + $0x50] sm:$0xff] }
  0x71   : > { %6104 = vmatpush3.bf16.msra.mxu1 %v7132_v35  ;;  %6312 = vmatpush3.bf16.msra.mxu0 %v7133_v36  ;;  %v2069_v53 = vpack.c.bf16 %v2024_v52, %v7545_v51  ;;  %v2026_v55 = vld [vmem:[#allocation2 + $0x58] sm:$0xff]  ;;  %v2027_v56 = vld [vmem:[#allocation2 + $0x60] sm:$0xff]  ;;  %v506_v59 = vpack.c.bf16 %v7545_v51, %v2022_v47  ;;  %v507_v61 = vpack.c.bf16 %v2025_v54, %v2024_v52  ;;  %v2029_v1 = vld [vmem:[#allocation2 + $0x70] sm:$0xff] }
  0x72   : > { %6313 = vmatprep.mubr.msk.bf16.mxu0 %vm544_vm2, %v2067_v43  ;;  %6153 = vmatprep.subr.bf16.mxu1 %v7134_v45  ;;  %v2028_v57 = vld [vmem:[#allocation2 + $0x68] sm:$0xff]  ;;  %v2070_v60 = vpack.c.bf16 %v2026_v55, %v2025_v54  ;;  %v2031_v3 = vld [vmem:[#allocation2 + $0x80] sm:$0xff]  ;;  %v508_v5 = vpack.c.bf16 %v2027_v56, %v2026_v55  ;;  %v2072_v6 = vpack.c.bf16 %v2030_v2, %v2029_v1  ;;  %v2033_v9 = vld [vmem:[#allocation2 + $0x90] sm:$0xff] }
  0x73   : > { %6361 = vmatprep.subr.bf16.mxu0 %v7135_v49  ;;  %v7136_v58 = vld [vmem:[%s7377_s20 + $0x58] sm:$0xff]   ;;  %v2071_v62 = vpack.c.bf16 %v2028_v57, %v2027_v56  ;;  %v7137_v63 = vld [vmem:[%s7377_s20 + $0x8] sm:$0xff]   ;;  %v509_v7 = vpack.c.bf16 %v2029_v1, %v2028_v57  ;;  %v2035_v11 = vld [vmem:[#allocation2 + $0xa0] sm:$0xff]  ;;  %v510_v13 = vpack.c.bf16 %v2031_v3, %v2030_v2 }
  0x74   : > { %6106 = vmatmul.mubr.msk.bf16.vlgmr.msra.gmra.mrb[0].mxu1 %vm544_vm2, %v504_v44  ;;  %6314 = vmatmul.mubr.msk.bf16.vlgmr.msra.gmra.mrb[0].mxu0 %vm544_vm2, %v2068_v48  ;;  %v2032_v4 = vld [vmem:[#allocation2 + $0x88] sm:$0xff]  ;;  %v2034_v10 = vld [vmem:[#allocation2 + $0x98] sm:$0xff]  ;;  %v7571_v17 = vld [vmem:[%s7377_s20 + $0x20] sm:$0xff]  }
  0x75   : > { %6154 = vmatpush3.bf16.msra.mxu1 %v7134_v45  ;;  %6362 = vmatpush3.bf16.msra.mxu0 %v7135_v49  ;;  %v2073_v8 = vpack.c.bf16 %v2032_v4, %v2031_v3  ;;  %v2036_v12 = vld [vmem:[#allocation2 + $0xa8] sm:$0xff]  ;;  %v2074_v14 = vpack.c.bf16 %v2034_v10, %v2033_v9  ;;  %v511_v15 = vpack.c.bf16 %v2033_v9, %v2032_v4  ;;  %v2037_v18 = vld [vmem:[#allocation2 + $0xb0] sm:$0xff]  ;;  %v2038_v19 = vld [vmem:[#allocation2 + $0xb8] sm:$0xff] }
  0x76   : > { %6109 = vmatprep.mubr.msk.bf16.mxu1 %vm544_vm2, %v505_v50  ;;  %6317 = vmatprep.mubr.msk.bf16.mxu0 %vm544_vm2, %v2069_v53  ;;  %v2075_v16 = vpack.c.bf16 %v2036_v12, %v2035_v11  ;;  %v2039_v20 = vld [vmem:[#allocation2 + $0xc0] sm:$0xff]  ;;  %v2040_v21 = vld [vmem:[#allocation2 + $0xc8] sm:$0xff]  ;;  %v512_v22 = vpack.c.bf16 %v2035_v11, %v2034_v10  ;;  %v2076_v23 = vpack.c.bf16 %v2038_v19, %v2037_v18  ;;  %v2041_v26 = vld [vmem:[#allocation2 + $0xd0] sm:$0xff] }
  0x77   : > { %6363 = vmatprep.subr.bf16.mxu0 %v7136_v58  ;;  %6155 = vmatprep.subr.bf16.mxu1 %v7137_v63  ;;  %v513_v24 = vpack.c.bf16 %v2037_v18, %v2036_v12  ;;  %v2077_v25 = vpack.c.bf16 %v2040_v21, %v2039_v20  ;;  %v2042_v27 = vld [vmem:[#allocation2 + $0xd8] sm:$0xff]  ;;  %v7579_v28 = vld [vmem:[#allocation2 + $0x21] sm:$0xff]  ;;  %v7581_v29 = vld [vmem:[#allocation2 + $0x29] sm:$0xff]  ;;  %v514_v30 = vpack.c.bf16 %v2039_v20, %v2038_v19 }
  0x78   : > { %v2078_v31 = vpack.c.bf16 %v2042_v27, %v2041_v26  ;;  %v515_v32 = vpack.c.bf16 %v2041_v26, %v2040_v21  ;;  %v2501_v33 = vpack.c.bf16 %v7581_v29, %v7579_v28  ;;  %v7586_v35 = vld [vmem:[#allocation2 + $0xe0] sm:$0xff]  ;;  %v7588_v36 = vld [vmem:[#allocation2 + $0x31] sm:$0xff]  ;;  %v483_v38 = vld [vmem:[#allocation2 + $0xe8] sm:$0xff] }
  0x79   : > { %6364 = vmatpush3.bf16.msra.mxu0 %v7136_v58  ;;  %6156 = vmatpush3.bf16.msra.mxu1 %v7137_v63  ;;  %9080 = vst [vmem:[#allocation6_spill] sm:$0xff] %v7586_v35  ;;  %v7592_v37 = vld [vmem:[#allocation2 + $0x39] sm:$0xff]  ;;  %v484_v39 = vld [vmem:[#allocation2 + $0xf0] sm:$0xff]  ;;  %v7595_v40 = vld [vmem:[#allocation2 + $0x41] sm:$0xff]  ;;  %v516_v42 = vpack.c.bf16 %v7586_v35, %v2042_v27 }
  0x7a   : > { %6413 = vmatprep.subr.bf16.mxu0 %v7559_v0  ;;  %6205 = vmatprep.subr.bf16.mxu1 %v7571_v17  ;;  %v7597_v41 = vld [vmem:[#allocation2 + $0x49] sm:$0xff]  ;;  %v2502_v43 = vpack.c.bf16 %v7592_v37, %v7588_v36  ;;  %v7602_v44 = vpack.c.bf16 %v484_v39, %v483_v38  ;;  %v485_v47 = vld [vmem:[#allocation2 + $0xf8] sm:$0xff]  ;;  %v486_v48 = vld [vmem:[#allocation2 + $0x100] sm:$0xff] }
  0x7b   : > { %v2503_v45 = vpack.c.bf16 %v7597_v41, %v7595_v40  ;;  %v7140_v46 = vld [vmem:[%s7377_s20 + $0x68] sm:$0xff]   ;;  %v488_v53 = vld [vmem:[#allocation2 + $0x110] sm:$0xff]  ;;  %v7624_v57 = vpack.c.bf16 %v486_v48, %v485_v47  ;;  %v494_v10 = vld [vmem:[#allocation2 + $0x140] sm:$0xff] }
  0x7c   : > { %6110 = vmatmul.mubr.msk.bf16.gmra.mrb[4].mxu1 %vm544_vm2, %v506_v59  ;;  %6318 = vmatmul.mubr.msk.bf16.gmra.mrb[4].mxu0 %vm544_vm2, %v2070_v60  ;;  %9081 = vst [vmem:[#allocation7_spill] sm:$0xff] %v7602_v44  ;;  %v7608_v49 = vld [vmem:[#allocation2 + $0x51] sm:$0xff]  ;;  %v7613_v50 = vld [vmem:[#allocation2 + $0x59] sm:$0xff]  ;;  %v487_v52 = vld [vmem:[#allocation2 + $0x108] sm:$0xff] }
  0x7d   : > { %6113 = vmatprep.mubr.msk.bf16.mxu1 %vm544_vm2, %v507_v61  ;;  %6321 = vmatprep.mubr.msk.bf16.mxu0 %vm544_vm2, %v2071_v62  ;;  %v7617_v54 = vld [vmem:[#allocation2 + $0x61] sm:$0xff]  ;;  %v7619_v55 = vld [vmem:[#allocation2 + $0x69] sm:$0xff]  ;;  %9082 = vst [vmem:[#allocation8_spill] sm:$0xff] %v7624_v57  ;;  %v2504_v58 = vpack.c.bf16 %v7613_v50, %v7608_v49  ;;  %v7628_v59 = vpack.c.bf16 %v488_v53, %v487_v52  ;;  %v489_v61 = vld [vmem:[#allocation2 + $0x118] sm:$0xff] }
  0x7e   : > { %v7622_v56 = vld [vmem:[%s7377_s20 + $0x70] sm:$0xff]   ;;  %v2505_v60 = vpack.c.bf16 %v7619_v55, %v7617_v54  ;;  %v491_v1 = vld [vmem:[#allocation2 + $0x128] sm:$0xff]  ;;  %v493_v9 = vld [vmem:[#allocation2 + $0x138] sm:$0xff] }
  0x7f   : > { %9083 = vst [vmem:[#allocation9_spill] sm:$0xff] %v7628_v59  ;;  %v490_v62 = vld [vmem:[#allocation2 + $0x120] sm:$0xff]  ;;  %v7638_v63 = vld [vmem:[#allocation2 + $0x71] sm:$0xff]  ;;  %v7645_v4 = vld [vmem:[#allocation2 + $0x89] sm:$0xff]  ;;  %v7673_v20 = vpack.c.bf16 %v494_v10, %v493_v9 }
  0x80   : > { %v492_v2 = vld [vmem:[#allocation2 + $0x130] sm:$0xff]  ;;  %v7643_v3 = vld [vmem:[#allocation2 + $0x81] sm:$0xff]  ;;  %v501_v47 = vld [vmem:[#allocation2 + $0x178] sm:$0xff] }
  0x81   : > { %v7660_v11 = vld [vmem:[#allocation2 + $0x91] sm:$0xff]  ;;  %v7669_v18 = vld [vmem:[#allocation2 + $0xa1] sm:$0xff]  ;;  %v7671_v19 = vld [vmem:[#allocation2 + $0xa9] sm:$0xff]  ;;  %9086 = vst [vmem:[#allocation12_spill] sm:$0xff] %v7673_v20 }
  0x82   : > { %v7686_v26 = vld [vmem:[#allocation2 + $0xb1] sm:$0xff]  ;;  %v7695_v38 = vld [vmem:[#allocation2 + $0xc1] sm:$0xff]  ;;  %v7697_v39 = vld [vmem:[#allocation2 + $0xc9] sm:$0xff] }
  0x83   : > { %v502_v48 = vld [vmem:[#allocation2 + $0x180] sm:$0xff]  ;;  %v7712_v52 = vld [vmem:[#allocation2 + $0xd1] sm:$0xff] }
  0x84   : > { %6114 = vmatmul.mubr.msk.bf16.gmra.mrb[8].mxu1 %vm544_vm2, %v508_v5  ;;  %6322 = vmatmul.mubr.msk.bf16.gmra.mrb[8].mxu0 %vm544_vm2, %v2072_v6  ;;  %v7647_v5 = vpack.c.bf16 %v490_v62, %v489_v61  ;;  %v7715_v53 = vld [vmem:[#allocation2 + $0xd9] sm:$0xff]  ;;  %v7717_v61 = vld [vmem:[#allocation2 + $0xe1] sm:$0xff]  ;;  %v7719_v62 = vld [vmem:[#allocation2 + $0xe9] sm:$0xff] }
  0x85   : > { %6117 = vmatprep.mubr.msk.bf16.mxu1 %vm544_vm2, %v509_v7  ;;  %6325 = vmatprep.mubr.msk.bf16.mxu0 %vm544_vm2, %v2073_v8  ;;  %v7651_v7 = vpack.c.bf16 %v492_v2, %v491_v1  ;;  %v2507_v8 = vpack.c.bf16 %v7645_v4, %v7643_v3  ;;  %v7721_v1 = vpack.c.bf16 %v502_v48, %v501_v47  ;;  %v381_v9 = vld [vmem:[#allocation2 + $0x17] sm:$0xff]  ;;  %v7731_v10 = vld [vmem:[#allocation2 + $0x1f] sm:$0xff] }
  0x86   : > { %9084 = vst [vmem:[#allocation10_spill] sm:$0xff] %v7647_v5  ;;  %v2512_v2 = vpack.c.bf16 %v7715_v53, %v7712_v52  ;;  %9091 = vst [vmem:[#allocation17_spill] sm:$0xff] %v7731_v10  ;;  %v7141_v47 = vld [vmem:[%s7377_s20 + $0x28] sm:$0xff]  }
  0x87   : > { %9085 = vst [vmem:[#allocation11_spill] sm:$0xff] %v7651_v7  ;;  %9090 = vst [vmem:[#allocation16_spill] sm:$0xff] %v7721_v1  ;;  %v7755_v48 = vld [vmem:[#allocation2 + $0x37] sm:$0xff] }
  0x88   : > { %9094 = vst [vmem:[#allocation20_spill] sm:$0xff] %v7755_v48  ;;  %v7796_v27 = vld [vmem:[#allocation2 + $0x57] sm:$0xff] }
  0x89   : > { %9098 = vst [vmem:[#allocation24_spill] sm:$0xff] %v7796_v27  ;;  %v7800_v12 = vld [vmem:[#allocation2 + $0x131] sm:$0xff] }
  0x8c   : > { %6118 = vmatmul.mubr.msk.bf16.gmra.mrb[12].mxu1 %vm544_vm2, %v510_v13  ;;  %6326 = vmatmul.mubr.msk.bf16.gmra.mrb[12].mxu0 %vm544_vm2, %v2074_v14  ;;  %v7665_v13 = vld [vmem:[#allocation2 + $0x99] sm:$0xff]  ;;  %v495_v14 = vld [vmem:[#allocation2 + $0x148] sm:$0xff] }
  0x8d   : > { %6121 = vmatprep.mubr.msk.bf16.mxu1 %vm544_vm2, %v511_v15  ;;  %6329 = vmatprep.mubr.msk.bf16.mxu0 %vm544_vm2, %v2075_v16  ;;  %v496_v15 = vld [vmem:[#allocation2 + $0x150] sm:$0xff]  ;;  %v2508_v21 = vpack.c.bf16 %v7665_v13, %v7660_v11  ;;  %v7798_v16 = vld [vmem:[#allocation2 + $0x5f] sm:$0xff] }
  0x8e   : > { %9099 = vst [vmem:[#allocation25_spill] sm:$0xff] %v7798_v16 }
  0x94   : > { %6122 = vmatmul.mubr.msk.bf16.gmra.mrb[16].mxu1 %vm544_vm2, %v512_v22  ;;  %6330 = vmatmul.mubr.msk.bf16.gmra.mrb[16].mxu0 %vm544_vm2, %v2076_v23  ;;  %v7677_v22 = vpack.c.bf16 %v496_v15, %v495_v14  ;;  %v2509_v23 = vpack.c.bf16 %v7671_v19, %v7669_v18  ;;  %v7734_v14 = vld [vmem:[#allocation2 + $0xf1] sm:$0xff]  ;;  %v7736_v15 = vld [vmem:[#allocation2 + $0xf9] sm:$0xff] }
  0x95   : > { %6125 = vmatprep.mubr.msk.bf16.mxu1 %vm544_vm2, %v513_v24  ;;  %6333 = vmatprep.mubr.msk.bf16.mxu0 %vm544_vm2, %v2077_v25  ;;  %v497_v24 = vld [vmem:[#allocation2 + $0x158] sm:$0xff]  ;;  %v498_v25 = vld [vmem:[#allocation2 + $0x160] sm:$0xff] }
  0x96   : > { %9087 = vst [vmem:[#allocation13_spill] sm:$0xff] %v7677_v22 }
  0x9c   : > { %6126 = vmatmul.mubr.msk.bf16.gmra.mrb[20].mxu1 %vm544_vm2, %v514_v30  ;;  %6334 = vmatmul.mubr.msk.bf16.gmra.mrb[20].mxu0 %vm544_vm2, %v2078_v31  ;;  %v7691_v30 = vld [vmem:[#allocation2 + $0xb9] sm:$0xff]  ;;  %v499_v31 = vld [vmem:[#allocation2 + $0x168] sm:$0xff] }
  0x9d   : > { %6129 = vmatprep.mubr.msk.bf16.mxu1 %vm544_vm2, %v515_v32  ;;  %6365 = vmatprep.mubr.msk.bf16.mxu0 %vm544_vm2, %v2501_v33  ;;  %v500_v32 = vld [vmem:[#allocation2 + $0x170] sm:$0xff] }
  0xa4   : > { %6130 = vmatmul.mubr.msk.bf16.gmra.mrb[24].mxu1 %vm544_vm2, %v516_v42  ;;  %6366 = vmatmul.mubr.msk.bf16.vlgmr.msra.gmra.mrb[0].mxu0 %vm544_vm2, %v2502_v43  ;;  %v7699_v42 = vpack.c.bf16 %v498_v25, %v497_v24  ;;  %v2510_v43 = vpack.c.bf16 %v7691_v30, %v7686_v26  ;;  %v7742_v24 = vld [vmem:[#allocation2 + $0x101] sm:$0xff]  ;;  %v7744_v25 = vld [vmem:[#allocation2 + $0x109] sm:$0xff] }
  0xa5   : > { %6133 = vmatprep.mubr.msk.bf16.mxu1 %vm544_vm2, %v7602_v44  ;;  %6414 = vmatpush3.bf16.msra.mxu0 %v7559_v0  ;;  %v7641_v0 = vld [vmem:[#allocation2 + $0x79] sm:$0xff]  ;;  %v7877_v44 = vld [vmem:[#allocation2 + $0x181] sm:$0xff] }
  0xa6   : > { %6369 = vmatprep.mubr.msk.bf16.mxu0 %vm544_vm2, %v2503_v45  ;;  %6415 = vmatprep.subr.bf16.mxu0 %v7140_v46  ;;  %v2506_v6 = vpack.c.bf16 %v7641_v0, %v7638_v63  ;;  %9088 = vst [vmem:[#allocation14_spill] sm:$0xff] %v7699_v42  ;;  %v7703_v45 = vpack.c.bf16 %v500_v32, %v499_v31  ;;  %9114 = vst [vmem:[#allocation40_spill] sm:$0xff] %v7877_v44 }
  0xa7   : > { %v428_v31 = vpack.c.bf16 %v7731_v10, %v381_v9  ;;  %v2514_v32 = vpack.c.bf16 %v7736_v15, %v7734_v14  ;;  %v7772_v9 = vld [vmem:[%s7377_s20 + $0x30] sm:$0xff]  }
  0xa8   : > { %9089 = vst [vmem:[#allocation15_spill] sm:$0xff] %v7703_v45 }
  0xa9   : > { %6416 = vmatpush3.bf16.msra.mxu0 %v7140_v46  ;;  %v2511_v46 = vpack.c.bf16 %v7697_v39, %v7695_v38 }
  0xaa   : > { %6465 = vmatprep.subr.bf16.mxu0 %v7622_v56 }
  0xac   : > { %6134 = vmatmul.mubr.msk.bf16.gmra.mrb[28].mxu1 %vm544_vm2, %v7624_v57  ;;  %6370 = vmatmul.mubr.msk.bf16.gmra.mrb[4].mxu0 %vm544_vm2, %v2504_v58  ;;  %v379_v58 = vld [vmem:[#allocation2 + $0x7] sm:$0xff]  ;;  %v7875_v57 = vld [vmem:[#allocation2 + $0xaf] sm:$0xff] }
  0xad   : > { %6137 = vmatprep.mubr.msk.bf16.mxu1 %vm544_vm2, %v7628_v59  ;;  %6373 = vmatprep.mubr.msk.bf16.mxu0 %vm544_vm2, %v2505_v60  ;;  %v380_v60 = vld [vmem:[#allocation2 + $0xf] sm:$0xff]  ;;  %v7843_v59 = vld [vmem:[#allocation2 + $0x161] sm:$0xff]  ;;  %9113 = vst [vmem:[#allocation39_spill] sm:$0xff] %v7875_v57 }
  0xae   : > { %9107 = vst [vmem:[#allocation33_spill] sm:$0xff] %v7843_v59 }
  0xb4   : > { %6138 = vmatmul.mubr.msk.bf16.gmra.mrb[32].mxu1 %vm544_vm2, %v7647_v5  ;;  %6374 = vmatmul.mubr.msk.bf16.gmra.mrb[8].mxu0 %vm544_vm2, %v2506_v6  ;;  %v427_v6 = vpack.c.bf16 %v380_v60, %v379_v58  ;;  %v7759_v58 = vld [vmem:[#allocation2 + $0x3f] sm:$0xff]  ;;  %v7761_v60 = vld [vmem:[#allocation2 + $0x111] sm:$0xff] }
  0xb5   : > { %6141 = vmatprep.mubr.msk.bf16.mxu1 %vm544_vm2, %v7651_v7  ;;  %6377 = vmatprep.mubr.msk.bf16.mxu0 %vm544_vm2, %v2507_v8  ;;  %v2513_v8 = vpack.c.bf16 %v7719_v62, %v7717_v61  ;;  %9095 = vst [vmem:[#allocation21_spill] sm:$0xff] %v7759_v58  ;;  %v7841_v5 = vld [vmem:[#allocation2 + $0x8f] sm:$0xff] }
  0xb6   : > { %9106 = vst [vmem:[#allocation32_spill] sm:$0xff] %v7841_v5 }
  0xbc   : > { %6142 = vmatmul.mubr.msk.bf16.gmra.mrb[36].mxu1 %vm544_vm2, %v7673_v20  ;;  %6378 = vmatmul.mubr.msk.bf16.gmra.mrb[12].mxu0 %vm544_vm2, %v2508_v21  ;;  %v7738_v21 = vld [vmem:[#allocation2 + $0x27] sm:$0xff] }
  0xbd   : > { %6145 = vmatprep.mubr.msk.bf16.mxu1 %vm544_vm2, %v7677_v22  ;;  %6381 = vmatprep.mubr.msk.bf16.mxu0 %vm544_vm2, %v2509_v23  ;;  %9092 = vst [vmem:[#allocation18_spill] sm:$0xff] %v7738_v21  ;;  %v7740_v23 = vld [vmem:[#allocation2 + $0x2f] sm:$0xff]  ;;  %v7815_v22 = vpack.c.bf16 %v7798_v16, %v7796_v27  ;;  %v7830_v16 = vld [vmem:[#allocation2 + $0x77] sm:$0xff]  ;;  %v7832_v27 = vld [vmem:[#allocation2 + $0x7f] sm:$0xff] }
  0xbe   : > { %9093 = vst [vmem:[#allocation19_spill] sm:$0xff] %v7740_v23  ;;  %9102 = vst [vmem:[#allocation28_spill] sm:$0xff] %v7830_v16 }
  0xbf   : > { %9103 = vst [vmem:[#allocation29_spill] sm:$0xff] %v7832_v27 }
  0xc4   : > { %6146 = vmatmul.mubr.msk.bf16.gmra.mrb[40].mxu1 %vm544_vm2, %v7699_v42  ;;  %6382 = vmatmul.mubr.msk.bf16.gmra.mrb[16].mxu0 %vm544_vm2, %v2510_v43  ;;  %v429_v43 = vpack.c.bf16 %v7740_v23, %v7738_v21  ;;  %v7809_v42 = vld [vmem:[#allocation2 + $0x141] sm:$0xff]  ;;  %v7868_v23 = vld [vmem:[#allocation2 + $0x171] sm:$0xff] }
  0xc5   : > { %6149 = vmatprep.mubr.msk.bf16.mxu1 %vm544_vm2, %v7703_v45  ;;  %6385 = vmatprep.mubr.msk.bf16.mxu0 %vm544_vm2, %v2511_v46  ;;  %v2515_v46 = vpack.c.bf16 %v7744_v25, %v7742_v24  ;;  %v7807_v45 = vld [vmem:[#allocation2 + $0x6f] sm:$0xff] }
  0xc6   : > { %9101 = vst [vmem:[#allocation27_spill] sm:$0xff] %v7807_v45 }
  0xcc   : > { %6150 = vmatmul.mubr.msk.bf16.gmra.mrb[44].mxu1 %vm544_vm2, %v7721_v1  ;;  %6386 = vmatmul.mubr.msk.bf16.gmra.mrb[20].mxu0 %vm544_vm2, %v2512_v2  ;;  %v7763_v2 = vld [vmem:[#allocation2 + $0x119] sm:$0xff]  ;;  %v7805_v1 = vld [vmem:[#allocation2 + $0x67] sm:$0xff] }
  0xcd   : > { %6157 = vmatprep.mubr.msk.bf16.mxu1 %vm544_vm2, %v427_v6  ;;  %6389 = vmatprep.mubr.msk.bf16.mxu0 %vm544_vm2, %v2513_v8  ;;  %v7767_v6 = vld [vmem:[#allocation2 + $0x47] sm:$0xff]  ;;  %v7769_v8 = vld [vmem:[#allocation2 + $0x4f] sm:$0xff]  ;;  %9100 = vst [vmem:[#allocation26_spill] sm:$0xff] %v7805_v1 }
  0xce   : > { %9096 = vst [vmem:[#allocation22_spill] sm:$0xff] %v7767_v6  ;;  %9097 = vst [vmem:[#allocation23_spill] sm:$0xff] %v7769_v8 }
  0xd4   : > { %6158 = vmatmul.mubr.msk.bf16.vlgmr.msra.gmra.mrb[0].mxu1 %vm544_vm2, %v428_v31  ;;  %6390 = vmatmul.mubr.msk.bf16.gmra.mrb[24].mxu0 %vm544_vm2, %v2514_v32  ;;  %v7774_v31 = vld [vmem:[#allocation2 + $0x121] sm:$0xff]  ;;  %v7776_v32 = vld [vmem:[#allocation2 + $0x129] sm:$0xff] }
  0xd5   : > { %6206 = vmatpush3.bf16.msra.mxu1 %v7571_v17  ;;  %6161 = vmatprep.mubr.msk.bf16.mxu1 %vm544_vm2, %v429_v43  ;;  %v7780_v17 = vpack.c.bf16 %v7759_v58, %v7755_v48  ;;  %v2516_v43 = vpack.c.bf16 %v7763_v2, %v7761_v60  ;;  %v2517_v33 = vpack.c.bf16 %v7776_v32, %v7774_v31 }
  0xd6   : > { %6393 = vmatprep.mubr.msk.bf16.mxu0 %vm544_vm2, %v2515_v46  ;;  %6207 = vmatprep.subr.bf16.mxu1 %v7141_v47  ;;  %v7786_v46 = vpack.c.bf16 %v7769_v8, %v7767_v6  ;;  %v7834_v8 = vld [vmem:[#allocation2 + $0x151] sm:$0xff]  ;;  %v7849_v6 = vpack.c.bf16 %v7832_v27, %v7830_v16  ;;  %v7866_v16 = vld [vmem:[#allocation2 + $0x9f] sm:$0xff] }
  0xd7   : > { %v7864_v27 = vld [vmem:[#allocation2 + $0x97] sm:$0xff]  ;;  %9110 = vst [vmem:[#allocation36_spill] sm:$0xff] %v7866_v16 }
  0xd8   : > { %9109 = vst [vmem:[#allocation35_spill] sm:$0xff] %v7864_v27  ;;  %v436_v21 = vpack.c.bf16 %v7866_v16, %v7864_v27  ;;  %v2500_v16 = vld [vmem:[#allocation2 + $0x199] sm:$0xff]  ;;  %v7894_v27 = vld [vmem:[#allocation2 + $0xc7] sm:$0xff] }
  0xd9   : > { %6208 = vmatpush3.bf16.msra.mxu1 %v7141_v47  ;;  %v7803_v47 = vld [vmem:[#allocation2 + $0x139] sm:$0xff]  ;;  %9116 = vst [vmem:[#allocation42_spill] sm:$0xff] %v7894_v27 }
  0xda   : > { %6257 = vmatprep.subr.bf16.mxu1 %v7772_v9  ;;  %v2518_v20 = vpack.c.bf16 %v7803_v47, %v7800_v12 }
  0xdc   : > { %6162 = vmatmul.mubr.msk.bf16.gmra.mrb[4].mxu1 %vm544_vm2, %v7780_v17  ;;  %6394 = vmatmul.mubr.msk.bf16.gmra.mrb[28].mxu0 %vm544_vm2, %v2516_v43  ;;  %v7811_v43 = vld [vmem:[#allocation2 + $0x149] sm:$0xff] }
  0xdd   : > { %6165 = vmatprep.mubr.msk.bf16.mxu1 %vm544_vm2, %v7786_v46  ;;  %6397 = vmatprep.mubr.msk.bf16.mxu0 %vm544_vm2, %v2517_v33  ;;  %v7821_v33 = vpack.c.bf16 %v7807_v45, %v7805_v1  ;;  %v2519_v7 = vpack.c.bf16 %v7811_v43, %v7809_v42  ;;  %v7837_v45 = vld [vmem:[#allocation2 + $0x159] sm:$0xff]  ;;  %v7839_v1 = vld [vmem:[#allocation2 + $0x87] sm:$0xff] }
  0xde   : > { %9104 = vst [vmem:[#allocation30_spill] sm:$0xff] %v7837_v45  ;;  %9105 = vst [vmem:[#allocation31_spill] sm:$0xff] %v7839_v1  ;;  %v2520_v58 = vpack.c.bf16 %v7837_v45, %v7834_v8  ;;  %v2499_v45 = vld [vmem:[#allocation2 + $0x191] sm:$0xff] }
  0xe4   : > { %6166 = vmatmul.mubr.msk.bf16.gmra.mrb[8].mxu1 %vm544_vm2, %v7815_v22  ;;  %6398 = vmatmul.mubr.msk.bf16.gmra.mrb[32].mxu0 %vm544_vm2, %v2518_v20  ;;  %v7845_v20 = vld [vmem:[#allocation2 + $0x169] sm:$0xff] }
  0xe5   : > { %6169 = vmatprep.mubr.msk.bf16.mxu1 %vm544_vm2, %v7821_v33  ;;  %6401 = vmatprep.mubr.msk.bf16.mxu0 %vm544_vm2, %v2519_v7  ;;  %9108 = vst [vmem:[#allocation34_spill] sm:$0xff] %v7845_v20  ;;  %v7855_v7 = vpack.c.bf16 %v7841_v5, %v7839_v1  ;;  %v2521_v48 = vpack.c.bf16 %v7845_v20, %v7843_v59  ;;  %v7871_v5 = vld [vmem:[#allocation2 + $0x179] sm:$0xff]  ;;  %v7873_v1 = vld [vmem:[#allocation2 + $0xa7] sm:$0xff] }
  0xe6   : > { %9111 = vst [vmem:[#allocation37_spill] sm:$0xff] %v7871_v5  ;;  %9112 = vst [vmem:[#allocation38_spill] sm:$0xff] %v7873_v1  ;;  %v2522_v10 = vpack.c.bf16 %v7871_v5, %v7868_v23  ;;  %v437_v35 = vpack.c.bf16 %v7875_v57, %v7873_v1  ;;  %v7889_v20 = vld [vmem:[#allocation2 + $0xb7] sm:$0xff]  ;;  %v7891_v59 = vld [vmem:[#allocation2 + $0xbf] sm:$0xff]  ;;  %v2524_v1 = vpack.c.bf16 %v2500_v16, %v2499_v45 }
  0xe7   : > { %9115 = vst [vmem:[#allocation41_spill] sm:$0xff] %v7891_v59  ;;  %v7896_v57 = vld [vmem:[#allocation2 + $0xcf] sm:$0xff]  ;;  %v7911_v5 = vld [vmem:[#allocation2 + $0xe7] sm:$0xff] }
  0xe8   : > { %9117 = vst [vmem:[#allocation43_spill] sm:$0xff] %v7896_v57  ;;  %9120 = vst [vmem:[#allocation46_spill] sm:$0xff] %v7911_v5  ;;  %v7913_v16 = vld [vmem:[#allocation2 + $0xef] sm:$0xff] }
  0xe9   : > { %9121 = vst [vmem:[#allocation47_spill] sm:$0xff] %v7913_v16 }
  0xec   : > { %6170 = vmatmul.mubr.msk.bf16.gmra.mrb[12].mxu1 %vm544_vm2, %v7849_v6  ;;  %6402 = vmatmul.mubr.msk.bf16.gmra.mrb[36].mxu0 %vm544_vm2, %v2520_v58  ;;  %v2498_v58 = vld [vmem:[#allocation2 + $0x189] sm:$0xff] }
  0xed   : > { %6173 = vmatprep.mubr.msk.bf16.mxu1 %vm544_vm2, %v7855_v7  ;;  %6405 = vmatprep.mubr.msk.bf16.mxu0 %vm544_vm2, %v2521_v48  ;;  %v2523_v48 = vpack.c.bf16 %v2498_v58, %v7877_v44  ;;  %v438_v58 = vpack.c.bf16 %v7891_v59, %v7889_v20  ;;  %v7907_v44 = vld [vmem:[#allocation2 + $0xdf] sm:$0xff]  ;;  %v7972_v59 = vld [vmem:[#allocation2 + $0x14f] sm:$0xff] }
  0xee   : > { %9119 = vst [vmem:[#allocation45_spill] sm:$0xff] %v7907_v44  ;;  %9133 = vst [vmem:[#allocation59_spill] sm:$0xff] %v7972_v59 }
  0xf4   : > { %6174 = vmatmul.mubr.msk.bf16.gmra.mrb[16].mxu1 %vm544_vm2, %v436_v21  ;;  %6406 = vmatmul.mubr.msk.bf16.gmra.mrb[40].mxu0 %vm544_vm2, %v2522_v10  ;;  %v439_v10 = vpack.c.bf16 %v7896_v57, %v7894_v27  ;;  %v7144_v57 = vld [vmem:[%s7377_s20 + $0x78] sm:$0xff]  }
  0xf5   : > { %6177 = vmatprep.mubr.msk.bf16.mxu1 %vm544_vm2, %v437_v35  ;;  %6409 = vmatprep.mubr.msk.bf16.mxu0 %vm544_vm2, %v2523_v48  ;;  %v7905_v48 = vld [vmem:[#allocation2 + $0xd7] sm:$0xff]  ;;  %v7926_v27 = vld [vmem:[#allocation2 + $0xff] sm:$0xff] }
  0xf6   : > { %9118 = vst [vmem:[#allocation44_spill] sm:$0xff] %v7905_v48  ;;  %v440_v45 = vpack.c.bf16 %v7907_v44, %v7905_v48  ;;  %9123 = vst [vmem:[#allocation49_spill] sm:$0xff] %v7926_v27  ;;  %v7931_v44 = vld [vmem:[#allocation2 + $0x107] sm:$0xff] }
  0xf7   : > { %9124 = vst [vmem:[#allocation50_spill] sm:$0xff] %v7931_v44 }
  0xfc   : > { %6178 = vmatmul.mubr.msk.bf16.gmra.mrb[20].mxu1 %vm544_vm2, %v438_v58  ;;  %6410 = vmatmul.mubr.msk.bf16.gmra.mrb[44].mxu0 %vm544_vm2, %v2524_v1  ;;  %v441_v1 = vpack.c.bf16 %v7913_v16, %v7911_v5  ;;  %v7933_v16 = vld [vmem:[#allocation2 + $0x10f] sm:$0xff] }
  0xfd   : > { %6181 = vmatprep.mubr.msk.bf16.mxu1 %vm544_vm2, %v439_v10  ;;  %6417 = vmatprep.mubr.msk.bf16.mxu0 %vm544_vm2, %v7780_v17  ;;  %v7924_v17 = vld [vmem:[#allocation2 + $0xf7] sm:$0xff]  ;;  %9125 = vst [vmem:[#allocation51_spill] sm:$0xff] %v7933_v16  ;;  %v443_v48 = vpack.c.bf16 %v7933_v16, %v7931_v44  ;;  %v7955_v16 = vld [vmem:[#allocation2 + $0x12f] sm:$0xff] }
  0xfe   : > { %9122 = vst [vmem:[#allocation48_spill] sm:$0xff] %v7924_v17  ;;  %v7936_v5 = vld [vmem:[%s7377_s20 + $0x80] sm:$0xff]   ;;  %9129 = vst [vmem:[#allocation55_spill] sm:$0xff] %v7955_v16 }
 0x104   : > { %6182 = vmatmul.mubr.msk.bf16.gmra.mrb[24].mxu1 %vm544_vm2, %v440_v45  ;;  %6418 = vmatmul.mubr.msk.bf16.vlgmr.msra.gmra.mrb[0].mxu0 %vm544_vm2, %v7786_v46  ;;  %v442_v46 = vpack.c.bf16 %v7926_v27, %v7924_v17  ;;  %v7953_v27 = vld [vmem:[#allocation2 + $0x127] sm:$0xff] }
 0x105   : > { %6185 = vmatprep.mubr.msk.bf16.mxu1 %vm544_vm2, %v441_v1  ;;  %6466 = vmatpush3.bf16.msra.mxu0 %v7622_v56  ;;  %v7947_v56 = vld [vmem:[#allocation2 + $0x117] sm:$0xff]  ;;  %9128 = vst [vmem:[#allocation54_spill] sm:$0xff] %v7953_v27  ;;  %v445_v44 = vpack.c.bf16 %v7955_v16, %v7953_v27  ;;  %v7970_v17 = vld [vmem:[#allocation2 + $0x147] sm:$0xff] }
 0x106   : > { %6421 = vmatprep.mubr.msk.bf16.mxu0 %vm544_vm2, %v7815_v22  ;;  %6467 = vmatprep.subr.bf16.mxu0 %v7144_v57  ;;  %9126 = vst [vmem:[#allocation52_spill] sm:$0xff] %v7947_v56  ;;  %v7949_v22 = vld [vmem:[#allocation2 + $0x11f] sm:$0xff]  ;;  %9132 = vst [vmem:[#allocation58_spill] sm:$0xff] %v7970_v17  ;;  %v447_v27 = vpack.c.bf16 %v7972_v59, %v7970_v17  ;;  %v1151_v17 = vld [vmem:[#allocation2 + $0x9] sm:$0xff] }
 0x107   : > { %9127 = vst [vmem:[#allocation53_spill] sm:$0xff] %v7949_v22 }
 0x109   : > { %6468 = vmatpush3.bf16.msra.mxu0 %v7144_v57  ;;  %v444_v57 = vpack.c.bf16 %v7949_v22, %v7947_v56  ;;  %v7983_v22 = vld [vmem:[#allocation2 + $0x15f] sm:$0xff]  ;;  %v7988_v56 = vld [vmem:[#allocation2 + $0x16f] sm:$0xff] }
 0x10a   : > { %6517 = vmatprep.subr.bf16.mxu0 %v7936_v5  ;;  %9135 = vst [vmem:[#allocation61_spill] sm:$0xff] %v7983_v22  ;;  %9137 = vst [vmem:[#allocation63_spill] sm:$0xff] %v7988_v56 }
 0x10c   : > { %6186 = vmatmul.mubr.msk.bf16.gmra.mrb[28].mxu1 %vm544_vm2, %v442_v46  ;;  %6422 = vmatmul.mubr.msk.bf16.gmra.mrb[4].mxu0 %vm544_vm2, %v7821_v33  ;;  %v7965_v33 = vld [vmem:[#allocation2 + $0x137] sm:$0xff] }
 0x10d   : > { %6189 = vmatprep.mubr.msk.bf16.mxu1 %vm544_vm2, %v443_v48  ;;  %6425 = vmatprep.mubr.msk.bf16.mxu0 %vm544_vm2, %v7849_v6  ;;  %9130 = vst [vmem:[#allocation56_spill] sm:$0xff] %v7965_v33  ;;  %v7967_v6 = vld [vmem:[#allocation2 + $0x13f] sm:$0xff] }
 0x10e   : > { %9131 = vst [vmem:[#allocation57_spill] sm:$0xff] %v7967_v6  ;;  %v446_v16 = vpack.c.bf16 %v7967_v6, %v7965_v33  ;;  %v1152_v33 = vld [vmem:[#allocation2 + $0x11] sm:$0xff] }
 0x114   : > { %6190 = vmatmul.mubr.msk.bf16.gmra.mrb[32].mxu1 %vm544_vm2, %v444_v57  ;;  %6426 = vmatmul.mubr.msk.bf16.gmra.mrb[8].mxu0 %vm544_vm2, %v7855_v7  ;;  %v7981_v7 = vld [vmem:[#allocation2 + $0x157] sm:$0xff] }
 0x115   : > { %6193 = vmatprep.mubr.msk.bf16.mxu1 %vm544_vm2, %v445_v44  ;;  %6429 = vmatprep.mubr.msk.bf16.mxu0 %vm544_vm2, %v436_v21  ;;  %9134 = vst [vmem:[#allocation60_spill] sm:$0xff] %v7981_v7  ;;  %v7986_v21 = vld [vmem:[#allocation2 + $0x167] sm:$0xff]  ;;  %v448_v6 = vpack.c.bf16 %v7983_v22, %v7981_v7  ;;  %v1199_v7 = vpack.c.bf16 %v1152_v33, %v1151_v17  ;;  %v3329_v17 = vld [vmem:[#allocation2 + $0x78] sm:$0xff] }
 0x116   : > { %9136 = vst [vmem:[#allocation62_spill] sm:$0xff] %v7986_v21  ;;  %v449_v59 = vpack.c.bf16 %v7988_v56, %v7986_v21  ;;  %v7145_v21 = vld [vmem:[%s7377_s20 + $0x38] sm:$0xff]  }
 0x117   : > { %v3335_v33 = vld [vmem:[#allocation2 + $0xa8] sm:$0xff] }
 0x11c   : > { %6194 = vmatmul.mubr.msk.bf16.gmra.mrb[36].mxu1 %vm544_vm2, %v446_v16  ;;  %6430 = vmatmul.mubr.msk.bf16.gmra.mrb[12].mxu0 %vm544_vm2, %v437_v35  ;;  %v7997_v35 = vld [vmem:[#allocation2 + $0x177] sm:$0xff] }
 0x11d   : > { %6197 = vmatprep.mubr.msk.bf16.mxu1 %vm544_vm2, %v447_v27  ;;  %6433 = vmatprep.mubr.msk.bf16.mxu0 %vm544_vm2, %v438_v58  ;;  %v7999_v58 = vld [vmem:[#allocation2 + $0x17f] sm:$0xff] }
 0x11e   : > { %v450_v22 = vpack.c.bf16 %v7999_v58, %v7997_v35 }
 0x124   : > { %6198 = vmatmul.mubr.msk.bf16.gmra.mrb[40].mxu1 %vm544_vm2, %v448_v6  ;;  %6434 = vmatmul.mubr.msk.bf16.gmra.mrb[16].mxu0 %vm544_vm2, %v439_v10  ;;  %v1153_v10 = vld [vmem:[#allocation2 + $0x19] sm:$0xff] }
 0x125   : > { %6201 = vmatprep.mubr.msk.bf16.mxu1 %vm544_vm2, %v449_v59  ;;  %6437 = vmatprep.mubr.msk.bf16.mxu0 %vm544_vm2, %v440_v45  ;;  %v1200_v56 = vpack.c.bf16 %v7579_v28, %v1153_v10  ;;  %v9138_v45 = vpack.c.bf16 %v7588_v36, %v7581_v29  ;;  %v9139_v28 = vpack.c.bf16 %v7595_v40, %v7592_v37  ;;  %v8046_v40 = vld [vmem:[#allocation2 + $0x187] sm:$0xff] }
 0x126   : > { %v1205_v29 = vpack.c.bf16 %v7638_v63, %v7619_v55  ;;  %v1206_v36 = vpack.c.bf16 %v7643_v3, %v7641_v0  ;;  %v1207_v37 = vpack.c.bf16 %v7660_v11, %v7645_v4  ;;  %v1209_v55 = vpack.c.bf16 %v7686_v26, %v7671_v19  ;;  %v2933_v63 = vld [vmem:[#allocation2 + $0x1a7] sm:$0xff]  ;;  %v2934_v0 = vld [vmem:[#allocation2 + $0x1af] sm:$0xff]  ;;  %v3321_v3 = vld [vmem:[#allocation2 + $0x38] sm:$0xff] }
 0x127   : > { %v1210_v4 = vpack.c.bf16 %v7695_v38, %v7691_v30  ;;  %v2958_v11 = vpack.c.bf16 %v2934_v0, %v2933_v63  ;;  %v3323_v19 = vld [vmem:[#allocation2 + $0x48] sm:$0xff]  ;;  %v3324_v26 = vld [vmem:[#allocation2 + $0x50] sm:$0xff]  ;;  %v1212_v30 = vpack.c.bf16 %v7717_v61, %v7715_v53  ;;  %v3330_v53 = vld [vmem:[#allocation2 + $0x80] sm:$0xff]  ;;  %v1214_v61 = vpack.c.bf16 %v7742_v24, %v7736_v15 }
 0x128   : > { %v3370_v38 = vpack.c.bf16 %v3324_v26, %v3323_v19  ;;  %v1216_v15 = vpack.c.bf16 %v7774_v31, %v7763_v2  ;;  %v1218_v2 = vpack.c.bf16 %v7809_v42, %v7803_v47  ;;  %v3339_v10 = vld [vmem:[#allocation2 + $0xc8] sm:$0xff]  ;;  %v9144_v47 = vld [vmem:[#allocation34_spill] sm:$0xff]  ;;  %v9151_v63 = vld [vmem:[#allocation8_spill] sm:$0xff] }
 0x129   : > { %v9152_v0 = vld [vmem:[#allocation19_spill] sm:$0xff]  ;;  %v9156_v19 = vld [vmem:[#allocation9_spill] sm:$0xff]  ;;  %v7148_v26 = vld [vmem:[%s7377_s20 + $0x40] sm:$0xff]  }
 0x12c   : > { %6202 = vmatmul.mubr.msk.bf16.gmra.mrb[44].mxu1 %vm544_vm2, %v450_v22  ;;  %6438 = vmatmul.mubr.msk.bf16.gmra.mrb[20].mxu0 %vm544_vm2, %v441_v1  ;;  %v3328_v1 = vld [vmem:[#allocation2 + $0x70] sm:$0xff] }
 0x12d   : > { %6209 = vmatprep.mubr.msk.bf16.mxu1 %vm544_vm2, %v1199_v7  ;;  %6441 = vmatprep.mubr.msk.bf16.mxu0 %vm544_vm2, %v442_v46  ;;  %v3373_v46 = vpack.c.bf16 %v3330_v53, %v3329_v17  ;;  %v3337_v7 = vld [vmem:[#allocation2 + $0xb8] sm:$0xff]  ;;  %v9163_v17 = vld [vmem:[#allocation12_spill] sm:$0xff]  ;;  %v9164_v53 = vld [vmem:[#allocation27_spill] sm:$0xff] }
 0x134   : > { %6210 = vmatmul.mubr.msk.bf16.vlgmr.msra.gmra.mrb[0].mxu1 %vm544_vm2, %v1200_v56  ;;  %6442 = vmatmul.mubr.msk.bf16.gmra.mrb[24].mxu0 %vm544_vm2, %v443_v48  ;;  %v3326_v48 = vld [vmem:[#allocation2 + $0x60] sm:$0xff]  ;;  %v3332_v56 = vld [vmem:[#allocation2 + $0x90] sm:$0xff] }
 0x135   : > { %6258 = vmatpush3.bf16.msra.mxu1 %v7772_v9  ;;  %6213 = vmatprep.mubr.msk.bf16.mxu1 %vm544_vm2, %v9138_v45  ;;  %v9140_v9 = vpack.c.bf16 %v7608_v49, %v7597_v41  ;;  %v8048_v41 = vld [vmem:[#allocation2 + $0x18f] sm:$0xff]  ;;  %v2932_v49 = vld [vmem:[#allocation2 + $0x19f] sm:$0xff] }
 0x136   : > { %6445 = vmatprep.mubr.msk.bf16.mxu0 %vm544_vm2, %v444_v57  ;;  %6259 = vmatprep.subr.bf16.mxu1 %v7145_v21  ;;  %v3334_v57 = vld [vmem:[#allocation2 + $0xa0] sm:$0xff]  ;;  %v3340_v45 = vld [vmem:[#allocation2 + $0xd0] sm:$0xff] }
 0x137   : > { %v3378_v42 = vpack.c.bf16 %v3340_v45, %v3339_v10 }
 0x139   : > { %6260 = vmatpush3.bf16.msra.mxu1 %v7145_v21  ;;  %v3338_v21 = vld [vmem:[#allocation2 + $0xc0] sm:$0xff] }
 0x13a   : > { %6569 = vmatprep.subr.bf16.mxu1 %v7535_v34  ;;  %v9141_v34 = vpack.c.bf16 %v7617_v54, %v7613_v50  ;;  %v1208_v50 = vpack.c.bf16 %v7669_v18, %v7665_v13  ;;  %v2956_v54 = vpack.c.bf16 %v8048_v41, %v8046_v40  ;;  %v1211_v13 = vpack.c.bf16 %v7712_v52, %v7697_v39  ;;  %v7147_v52 = vld [vmem:[%s7377_s20 + $0x88] sm:$0xff]  }
 0x13b   : > { %v3369_v18 = vpack.c.bf16 %v7545_v51, %v3321_v3  ;;  %v1213_v39 = vpack.c.bf16 %v7734_v14, %v7719_v62  ;;  %v1215_v14 = vpack.c.bf16 %v7761_v60, %v7744_v25  ;;  %v1217_v25 = vpack.c.bf16 %v7800_v12, %v7776_v32  ;;  %v9153_v3 = vld [vmem:[#allocation20_spill] sm:$0xff] }
 0x13c   : > { %6214 = vmatmul.mubr.msk.bf16.gmra.mrb[4].mxu1 %vm544_vm2, %v9139_v28  ;;  %6446 = vmatmul.mubr.msk.bf16.gmra.mrb[28].mxu0 %vm544_vm2, %v445_v44  ;;  %v8050_v44 = vld [vmem:[#allocation2 + $0x197] sm:$0xff]  ;;  %v1219_v12 = vpack.c.bf16 %v7834_v8, %v7811_v43  ;;  %v3377_v32 = vpack.c.bf16 %v3338_v21, %v3337_v7  ;;  %v9145_v8 = vld [vmem:[#allocation6_spill] sm:$0xff]  ;;  %v8167_v21 = vld [vmem:[#allocation2 + $0x188] sm:$0xff] }
 0x13d   : > { %6217 = vmatprep.mubr.msk.bf16.mxu1 %vm544_vm2, %v9140_v9  ;;  %6449 = vmatprep.mubr.msk.bf16.mxu0 %vm544_vm2, %v446_v16  ;;  %v3327_v16 = vld [vmem:[#allocation2 + $0x68] sm:$0xff]  ;;  %v3341_v28 = vld [vmem:[#allocation2 + $0xd8] sm:$0xff]  ;;  %v9142_v9 = vld [vmem:[#allocation30_spill] sm:$0xff] }
 0x13e   : > { %v3372_v62 = vpack.c.bf16 %v3328_v1, %v3327_v16  ;;  %v3379_v43 = vpack.c.bf16 %v9145_v8, %v3341_v28  ;;  %v9162_v1 = vld [vmem:[#allocation11_spill] sm:$0xff]  ;;  %v9175_v7 = vld [vmem:[#allocation16_spill] sm:$0xff]  ;;  %v9177_v28 = vld [vmem:[#allocation41_spill] sm:$0xff] }
 0x13f   : > { %v9179_v8 = vld [vmem:[#allocation43_spill] sm:$0xff] }
 0x144   : > { %6218 = vmatmul.mubr.msk.bf16.gmra.mrb[8].mxu1 %vm544_vm2, %v9141_v34  ;;  %6450 = vmatmul.mubr.msk.bf16.gmra.mrb[32].mxu0 %vm544_vm2, %v447_v27  ;;  %v3325_v27 = vld [vmem:[#allocation2 + $0x58] sm:$0xff] }
 0x145   : > { %6221 = vmatprep.mubr.msk.bf16.mxu1 %vm544_vm2, %v1205_v29  ;;  %6453 = vmatprep.mubr.msk.bf16.mxu0 %vm544_vm2, %v448_v6  ;;  %v3371_v51 = vpack.c.bf16 %v3326_v48, %v3325_v27  ;;  %v3336_v6 = vld [vmem:[#allocation2 + $0xb0] sm:$0xff]  ;;  %v9143_v29 = vld [vmem:[#allocation33_spill] sm:$0xff]  ;;  %v9157_v27 = vld [vmem:[#allocation10_spill] sm:$0xff] }
 0x146   : > { %v3376_v31 = vpack.c.bf16 %v3336_v6, %v3335_v33  ;;  %v1220_v34 = vpack.c.bf16 %v9143_v29, %v9142_v9  ;;  %v7149_v48 = vld [vmem:[%s7377_s20 + $0x48] sm:$0xff]   ;;  %v9178_v9 = vld [vmem:[#allocation42_spill] sm:$0xff] }
 0x147   : > { %v9174_v6 = vld [vmem:[#allocation15_spill] sm:$0xff]  ;;  %v1643_v29 = vpack.c.bf16 %v9178_v9, %v9177_v28  ;;  %v9196_v9 = vld [vmem:[#allocation60_spill] sm:$0xff] }
 0x148   : > { %v9195_v28 = vld [vmem:[#allocation59_spill] sm:$0xff] }
 0x14c   : > { %6222 = vmatmul.mubr.msk.bf16.gmra.mrb[12].mxu1 %vm544_vm2, %v1206_v36  ;;  %6454 = vmatmul.mubr.msk.bf16.gmra.mrb[36].mxu0 %vm544_vm2, %v449_v59  ;;  %v2957_v59 = vpack.c.bf16 %v2932_v49, %v8050_v44  ;;  %v1221_v36 = vpack.c.bf16 %v7868_v23, %v9144_v47  ;;  %v9147_v49 = vld [vmem:[#allocation40_spill] sm:$0xff]  ;;  %v9150_v23 = vld [vmem:[#allocation7_spill] sm:$0xff] }
 0x14d   : > { %6225 = vmatprep.mubr.msk.bf16.mxu1 %vm544_vm2, %v1207_v37  ;;  %6457 = vmatprep.mubr.msk.bf16.mxu0 %vm544_vm2, %v450_v22  ;;  %v3333_v22 = vld [vmem:[#allocation2 + $0x98] sm:$0xff]  ;;  %v3368_v47 = vld [vmem:[#allocation2 + $0x1b0] sm:$0xff] }
 0x14e   : > { %v3375_v60 = vpack.c.bf16 %v3334_v57, %v3333_v22  ;;  %v9146_v37 = vld [vmem:[#allocation37_spill] sm:$0xff]  ;;  %v9169_v22 = vld [vmem:[#allocation14_spill] sm:$0xff]  ;;  %v9170_v57 = vld [vmem:[#allocation32_spill] sm:$0xff] }
 0x154   : > { %6226 = vmatmul.mubr.msk.bf16.gmra.mrb[16].mxu1 %vm544_vm2, %v1208_v50  ;;  %6458 = vmatmul.mubr.msk.bf16.gmra.mrb[40].mxu0 %vm544_vm2, %v2956_v54  ;;  %v1222_v50 = vpack.c.bf16 %v9147_v49, %v9146_v37  ;;  %v9148_v54 = vld [vmem:[#allocation17_spill] sm:$0xff] }
 0x155   : > { %6229 = vmatprep.mubr.msk.bf16.mxu1 %vm544_vm2, %v1209_v55  ;;  %6461 = vmatprep.mubr.msk.bf16.mxu0 %vm544_vm2, %v2957_v59  ;;  %v9149_v55 = vld [vmem:[#allocation18_spill] sm:$0xff] }
 0x156   : > { %v1633_v59 = vpack.c.bf16 %v9149_v55, %v9148_v54  ;;  %v9182_v54 = vld [vmem:[#allocation46_spill] sm:$0xff] }
 0x15c   : > { %6230 = vmatmul.mubr.msk.bf16.gmra.mrb[20].mxu1 %vm544_vm2, %v1210_v4  ;;  %6462 = vmatmul.mubr.msk.bf16.gmra.mrb[44].mxu0 %vm544_vm2, %v2958_v11  ;;  %v1634_v4 = vpack.c.bf16 %v9153_v3, %v9152_v0  ;;  %v9154_v11 = vld [vmem:[#allocation21_spill] sm:$0xff]  ;;  %v3760_v3 = vld [vmem:[#allocation2 + $0x61] sm:$0xff] }
 0x15d   : > { %6233 = vmatprep.mubr.msk.bf16.mxu1 %vm544_vm2, %v1211_v13  ;;  %6469 = vmatprep.mubr.msk.bf16.mxu0 %vm544_vm2, %v3369_v18  ;;  %v9155_v13 = vld [vmem:[#allocation22_spill] sm:$0xff] }
 0x15e   : > { %v1635_v18 = vpack.c.bf16 %v9155_v13, %v9154_v11  ;;  %v3759_v0 = vld [vmem:[#allocation2 + $0x59] sm:$0xff]  ;;  %v9184_v11 = vld [vmem:[#allocation48_spill] sm:$0xff] }
 0x164   : > { %6234 = vmatmul.mubr.msk.bf16.gmra.mrb[24].mxu1 %vm544_vm2, %v1212_v30  ;;  %6470 = vmatmul.mubr.msk.bf16.vlgmr.msra.gmra.mrb[0].mxu0 %vm544_vm2, %v3370_v38  ;;  %v9158_v30 = vld [vmem:[#allocation23_spill] sm:$0xff]  ;;  %v9159_v38 = vld [vmem:[#allocation24_spill] sm:$0xff] }
 0x165   : > { %6237 = vmatprep.mubr.msk.bf16.mxu1 %vm544_vm2, %v1213_v39  ;;  %6518 = vmatpush3.bf16.msra.mxu0 %v7936_v5  ;;  %v3331_v5 = vld [vmem:[#allocation2 + $0x88] sm:$0xff]  ;;  %v1636_v39 = vpack.c.bf16 %v9159_v38, %v9158_v30  ;;  %v3762_v38 = vld [vmem:[#allocation2 + $0x71] sm:$0xff] }
 0x166   : > { %6473 = vmatprep.mubr.msk.bf16.mxu0 %vm544_vm2, %v3371_v51  ;;  %6519 = vmatprep.subr.bf16.mxu0 %v7147_v52  ;;  %v3374_v24 = vpack.c.bf16 %v3332_v56, %v3331_v5  ;;  %v9160_v51 = vld [vmem:[#allocation25_spill] sm:$0xff]  ;;  %v3761_v30 = vld [vmem:[#allocation2 + $0x69] sm:$0xff] }
 0x167   : > { %v9168_v56 = vld [vmem:[#allocation13_spill] sm:$0xff] }
 0x169   : > { %6520 = vmatpush3.bf16.msra.mxu0 %v7147_v52  ;;  %v9161_v52 = vld [vmem:[#allocation26_spill] sm:$0xff] }
 0x16a   : > { %v1637_v16 = vpack.c.bf16 %v9161_v52, %v9160_v51  ;;  %v3764_v51 = vld [vmem:[#allocation2 + $0x81] sm:$0xff] }
 0x16b   : > { %v9187_v52 = vld [vmem:[#allocation51_spill] sm:$0xff] }
 0x16c   : > { %6238 = vmatmul.mubr.msk.bf16.gmra.mrb[28].mxu1 %vm544_vm2, %v1214_v61  ;;  %6474 = vmatmul.mubr.msk.bf16.gmra.mrb[4].mxu0 %vm544_vm2, %v3372_v62  ;;  %v9165_v61 = vld [vmem:[#allocation28_spill] sm:$0xff] }
 0x16d   : > { %6241 = vmatprep.mubr.msk.bf16.mxu1 %vm544_vm2, %v1215_v14  ;;  %6477 = vmatprep.mubr.msk.bf16.mxu0 %vm544_vm2, %v3373_v46  ;;  %v1638_v62 = vpack.c.bf16 %v9165_v61, %v9164_v53  ;;  %v9166_v14 = vld [vmem:[#allocation29_spill] sm:$0xff]  ;;  %v9167_v46 = vld [vmem:[#allocation31_spill] sm:$0xff]  ;;  %v9190_v61 = vld [vmem:[#allocation54_spill] sm:$0xff] }
 0x16e   : > { %v1639_v5 = vpack.c.bf16 %v9167_v46, %v9166_v14  ;;  %v9189_v53 = vld [vmem:[#allocation53_spill] sm:$0xff]  ;;  %v3765_v46 = vld [vmem:[#allocation2 + $0x89] sm:$0xff] }
 0x174   : > { %6242 = vmatmul.mubr.msk.bf16.gmra.mrb[32].mxu1 %vm544_vm2, %v1216_v15  ;;  %6478 = vmatmul.mubr.msk.bf16.gmra.mrb[8].mxu0 %vm544_vm2, %v3374_v24  ;;  %v9171_v15 = vld [vmem:[#allocation35_spill] sm:$0xff] }
 0x175   : > { %6245 = vmatprep.mubr.msk.bf16.mxu1 %vm544_vm2, %v1217_v25  ;;  %6481 = vmatprep.mubr.msk.bf16.mxu0 %vm544_vm2, %v3375_v60  ;;  %v1640_v24 = vpack.c.bf16 %v9171_v15, %v9170_v57  ;;  %v9172_v25 = vld [vmem:[#allocation36_spill] sm:$0xff]  ;;  %v9173_v60 = vld [vmem:[#allocation38_spill] sm:$0xff]  ;;  %v9191_v57 = vld [vmem:[#allocation55_spill] sm:$0xff] }
 0x176   : > { %v1641_v33 = vpack.c.bf16 %v9173_v60, %v9172_v25  ;;  %v9192_v15 = vld [vmem:[#allocation56_spill] sm:$0xff]  ;;  %v9193_v60 = vld [vmem:[#allocation57_spill] sm:$0xff] }
 0x17c   : > { %6246 = vmatmul.mubr.msk.bf16.gmra.mrb[36].mxu1 %vm544_vm2, %v1218_v2  ;;  %6482 = vmatmul.mubr.msk.bf16.gmra.mrb[12].mxu0 %vm544_vm2, %v3376_v31  ;;  %v8169_v2 = vld [vmem:[#allocation2 + $0x190] sm:$0xff]  ;;  %v8171_v31 = vld [vmem:[#allocation2 + $0x198] sm:$0xff] }
 0x17d   : > { %6249 = vmatprep.mubr.msk.bf16.mxu1 %vm544_vm2, %v1219_v12  ;;  %6485 = vmatprep.mubr.msk.bf16.mxu0 %vm544_vm2, %v3377_v32  ;;  %v3366_v12 = vld [vmem:[#allocation2 + $0x1a0] sm:$0xff]  ;;  %v9176_v32 = vld [vmem:[#allocation39_spill] sm:$0xff]  ;;  %v3390_v45 = vpack.c.bf16 %v8169_v2, %v8167_v21 }
 0x17e   : > { %v1642_v10 = vpack.c.bf16 %v7889_v20, %v9176_v32  ;;  %v3756_v20 = vld [vmem:[#allocation2 + $0x41] sm:$0xff]  ;;  %v3770_v32 = vld [vmem:[#allocation2 + $0xb1] sm:$0xff] }
 0x184   : > { %6250 = vmatmul.mubr.msk.bf16.gmra.mrb[40].mxu1 %vm544_vm2, %v1220_v34  ;;  %6486 = vmatmul.mubr.msk.bf16.gmra.mrb[16].mxu0 %vm544_vm2, %v3378_v42  ;;  %v3391_v34 = vpack.c.bf16 %v3366_v12, %v8171_v31  ;;  %v3367_v42 = vld [vmem:[#allocation2 + $0x1a8] sm:$0xff] }
 0x185   : > { %6253 = vmatprep.mubr.msk.bf16.mxu1 %vm544_vm2, %v1221_v36  ;;  %6489 = vmatprep.mubr.msk.bf16.mxu0 %vm544_vm2, %v3379_v43  ;;  %v3755_v36 = vld [vmem:[#allocation2 + $0x39] sm:$0xff]  ;;  %v9180_v43 = vld [vmem:[#allocation44_spill] sm:$0xff]  ;;  %v3392_v49 = vpack.c.bf16 %v3368_v47, %v3367_v42 }
 0x186   : > { %v1644_v37 = vpack.c.bf16 %v9180_v43, %v9179_v8  ;;  %v3769_v12 = vld [vmem:[#allocation2 + $0xa9] sm:$0xff]  ;;  %v9197_v42 = vld [vmem:[#allocation61_spill] sm:$0xff]  ;;  %v9198_v47 = vld [vmem:[#allocation62_spill] sm:$0xff] }
 0x187   : > { %v3773_v8 = vld [vmem:[#allocation2 + $0xc9] sm:$0xff]  ;;  %v3774_v43 = vld [vmem:[#allocation2 + $0xd1] sm:$0xff] }
 0x18c   : > { %6254 = vmatmul.mubr.msk.bf16.gmra.mrb[44].mxu1 %vm544_vm2, %v1222_v50  ;;  %6490 = vmatmul.mubr.msk.bf16.gmra.mrb[20].mxu0 %vm544_vm2, %v9150_v23  ;;  %v9181_v50 = vld [vmem:[#allocation45_spill] sm:$0xff]  ;;  %v3757_v23 = vld [vmem:[#allocation2 + $0x49] sm:$0xff] }
 0x18d   : > { %6261 = vmatprep.mubr.msk.bf16.mxu1 %vm544_vm2, %v1633_v59  ;;  %6493 = vmatprep.mubr.msk.bf16.mxu0 %vm544_vm2, %v9151_v63  ;;  %v1645_v55 = vpack.c.bf16 %v9182_v54, %v9181_v50  ;;  %v3803_v59 = vpack.c.bf16 %v3756_v20, %v3755_v36  ;;  %v3758_v63 = vld [vmem:[#allocation2 + $0x51] sm:$0xff]  ;;  %v1653_v36 = vpack.c.bf16 %v9198_v47, %v9197_v42  ;;  %v9199_v50 = vld [vmem:[#allocation63_spill] sm:$0xff] }
 0x18e   : > { %v1654_v54 = vpack.c.bf16 %v7997_v35, %v9199_v50  ;;  %v1656_v35 = vpack.c.bf16 %v8050_v44, %v8048_v41  ;;  %v3793_v42 = vld [vmem:[#allocation2 + $0x169] sm:$0xff]  ;;  %v3794_v47 = vld [vmem:[#allocation2 + $0x171] sm:$0xff] }
 0x194   : > { %6262 = vmatmul.mubr.msk.bf16.vlgmr.msra.gmra.mrb[0].mxu1 %vm544_vm2, %v1634_v4  ;;  %6494 = vmatmul.mubr.msk.bf16.gmra.mrb[24].mxu0 %vm544_vm2, %v9156_v19  ;;  %v9183_v4 = vld [vmem:[#allocation47_spill] sm:$0xff]  ;;  %v9185_v19 = vld [vmem:[#allocation49_spill] sm:$0xff] }
 0x195   : > { %6571 = vmatpush3.bf16.msra.mxu1 %v7148_v26  ;;  %6265 = vmatprep.mubr.msk.bf16.mxu1 %vm544_vm2, %v1635_v18  ;;  %v1646_v13 = vpack.c.bf16 %v9184_v11, %v9183_v4  ;;  %v3804_v18 = vpack.c.bf16 %v3758_v63, %v3757_v23  ;;  %v9186_v26 = vld [vmem:[#allocation50_spill] sm:$0xff]  ;;  %v3777_v63 = vld [vmem:[#allocation2 + $0xe9] sm:$0xff] }
 0x196   : > { %6497 = vmatprep.mubr.msk.bf16.mxu0 %vm544_vm2, %v9157_v27  ;;  %6570 = vmatprep.subr.bf16.mxu1 %v7149_v48  ;;  %v1647_v27 = vpack.c.bf16 %v9186_v26, %v9185_v19  ;;  %v2044_v4 = vld [vmem:[#allocation2 + $0xe8] sm:$0xff]  ;;  %v3779_v11 = vld [vmem:[#allocation2 + $0xf9] sm:$0xff]  ;;  %v2045_v19 = vld [vmem:[#allocation2 + $0xf0] sm:$0xff] }
 0x197   : > { %v2046_v26 = vld [vmem:[#allocation2 + $0xf8] sm:$0xff] }
 0x198   : > { %v2080_v41 = vpack.c.bf16 %v2046_v26, %v2045_v19  ;;  %v2090_v19 = vpack.c.bf16 %v8171_v31, %v8169_v2 }
 0x199   : > { %6572 = vmatpush3.bf16.msra.mxu1 %v7149_v48  ;;  %v3805_v48 = vpack.c.bf16 %v3760_v3, %v3759_v0  ;;  %v3778_v0 = vld [vmem:[#allocation2 + $0xf1] sm:$0xff]  ;;  %v2043_v3 = vld [vmem:[#allocation2 + $0xe0] sm:$0xff] }
 0x19c   : > { %6266 = vmatmul.mubr.msk.bf16.gmra.mrb[4].mxu1 %vm544_vm2, %v1636_v39  ;;  %6498 = vmatmul.mubr.msk.bf16.gmra.mrb[28].mxu0 %vm544_vm2, %v9162_v1  ;;  %v3763_v39 = vld [vmem:[#allocation2 + $0x79] sm:$0xff] }
 0x19d   : > { %6269 = vmatprep.mubr.msk.bf16.mxu1 %vm544_vm2, %v1637_v16  ;;  %6501 = vmatprep.mubr.msk.bf16.mxu0 %vm544_vm2, %v9163_v17  ;;  %v9188_v16 = vld [vmem:[#allocation52_spill] sm:$0xff]  ;;  %v3806_v17 = vpack.c.bf16 %v3762_v38, %v3761_v30  ;;  %v3807_v14 = vpack.c.bf16 %v3764_v51, %v3763_v39  ;;  %v2047_v30 = vld [vmem:[#allocation2 + $0x100] sm:$0xff]  ;;  %v2048_v38 = vld [vmem:[#allocation2 + $0x108] sm:$0xff] }
 0x19e   : > { %v1648_v1 = vpack.c.bf16 %v9188_v16, %v9187_v52  ;;  %v3783_v39 = vld [vmem:[#allocation2 + $0x119] sm:$0xff]  ;;  %v3784_v51 = vld [vmem:[#allocation2 + $0x121] sm:$0xff]  ;;  %v2081_v52 = vpack.c.bf16 %v2048_v38, %v2047_v30 }
 0x19f   : > { %v3817_v16 = vpack.c.bf16 %v3784_v51, %v3783_v39 }
 0x1a4   : > { %6270 = vmatmul.mubr.msk.bf16.gmra.mrb[8].mxu1 %vm544_vm2, %v1638_v62  ;;  %6502 = vmatmul.mubr.msk.bf16.gmra.mrb[32].mxu0 %vm544_vm2, %v9168_v56  ;;  %v1649_v62 = vpack.c.bf16 %v9190_v61, %v9189_v53  ;;  %v3767_v56 = vld [vmem:[#allocation2 + $0x99] sm:$0xff]  ;;  %v3785_v53 = vld [vmem:[#allocation2 + $0x129] sm:$0xff]  ;;  %v3786_v61 = vld [vmem:[#allocation2 + $0x131] sm:$0xff] }
 0x1a5   : > { %6273 = vmatprep.mubr.msk.bf16.mxu1 %vm544_vm2, %v1639_v5  ;;  %6505 = vmatprep.mubr.msk.bf16.mxu0 %vm544_vm2, %v9169_v22  ;;  %v3766_v5 = vld [vmem:[#allocation2 + $0x91] sm:$0xff]  ;;  %v3768_v22 = vld [vmem:[#allocation2 + $0xa1] sm:$0xff] }
 0x1a6   : > { %v3808_v25 = vpack.c.bf16 %v3766_v5, %v3765_v46  ;;  %v3787_v46 = vld [vmem:[#allocation2 + $0x139] sm:$0xff]  ;;  %v3788_v5 = vld [vmem:[#allocation2 + $0x141] sm:$0xff] }
 0x1ac   : > { %6274 = vmatmul.mubr.msk.bf16.gmra.mrb[12].mxu1 %vm544_vm2, %v1640_v24  ;;  %6506 = vmatmul.mubr.msk.bf16.gmra.mrb[36].mxu0 %vm544_vm2, %v9174_v6  ;;  %v1650_v24 = vpack.c.bf16 %v9192_v15, %v9191_v57  ;;  %v3819_v15 = vpack.c.bf16 %v3788_v5, %v3787_v46 }
 0x1ad   : > { %6277 = vmatprep.mubr.msk.bf16.mxu1 %vm544_vm2, %v1641_v33  ;;  %6509 = vmatprep.mubr.msk.bf16.mxu0 %vm544_vm2, %v9175_v7  ;;  %v9194_v33 = vld [vmem:[#allocation58_spill] sm:$0xff]  ;;  %v3809_v7 = vpack.c.bf16 %v3768_v22, %v3767_v56  ;;  %v3818_v22 = vpack.c.bf16 %v3786_v61, %v3785_v53 }
 0x1ae   : > { %v1651_v6 = vpack.c.bf16 %v9194_v33, %v9193_v60  ;;  %v3789_v60 = vld [vmem:[#allocation2 + $0x149] sm:$0xff]  ;;  %v3790_v33 = vld [vmem:[#allocation2 + $0x151] sm:$0xff] }
 0x1b4   : > { %6278 = vmatmul.mubr.msk.bf16.gmra.mrb[16].mxu1 %vm544_vm2, %v1642_v10  ;;  %6510 = vmatmul.mubr.msk.bf16.gmra.mrb[40].mxu0 %vm544_vm2, %v3390_v45  ;;  %v3771_v10 = vld [vmem:[#allocation2 + $0xb9] sm:$0xff]  ;;  %v3772_v45 = vld [vmem:[#allocation2 + $0xc1] sm:$0xff] }
 0x1b5   : > { %6281 = vmatprep.mubr.msk.bf16.mxu1 %vm544_vm2, %v1643_v29  ;;  %6513 = vmatprep.mubr.msk.bf16.mxu0 %vm544_vm2, %v3391_v34  ;;  %v1652_v29 = vpack.c.bf16 %v9196_v9, %v9195_v28  ;;  %v3810_v34 = vpack.c.bf16 %v3770_v32, %v3769_v12  ;;  %v3811_v20 = vpack.c.bf16 %v3772_v45, %v3771_v10  ;;  %v3791_v12 = vld [vmem:[#allocation2 + $0x159] sm:$0xff]  ;;  %v3792_v32 = vld [vmem:[#allocation2 + $0x161] sm:$0xff] }
 0x1b6   : > { %v3820_v45 = vpack.c.bf16 %v3790_v33, %v3789_v60  ;;  %v3821_v9 = vpack.c.bf16 %v3792_v32, %v3791_v12 }
 0x1bc   : > { %6282 = vmatmul.mubr.msk.bf16.gmra.mrb[20].mxu1 %vm544_vm2, %v1644_v37  ;;  %6514 = vmatmul.mubr.msk.bf16.gmra.mrb[44].mxu0 %vm544_vm2, %v3392_v49  ;;  %v3775_v37 = vld [vmem:[#allocation2 + $0xd9] sm:$0xff]  ;;  %v3776_v49 = vld [vmem:[#allocation2 + $0xe1] sm:$0xff] }
 0x1bd   : > { %6285 = vmatprep.mubr.msk.bf16.mxu1 %vm544_vm2, %v1645_v55  ;;  %6521 = vmatprep.mubr.msk.bf16.mxu0 %vm544_vm2, %v3803_v59  ;;  %v3812_v55 = vpack.c.bf16 %v3774_v43, %v3773_v8  ;;  %v1655_v59 = vpack.c.bf16 %v8046_v40, %v7999_v58  ;;  %v3813_v23 = vpack.c.bf16 %v3776_v49, %v3775_v37  ;;  %v3795_v8 = vld [vmem:[#allocation2 + $0x179] sm:$0xff]  ;;  %v3796_v43 = vld [vmem:[#allocation2 + $0x181] sm:$0xff] }
 0x1be   : > { %v2079_v58 = vpack.c.bf16 %v2044_v4, %v2043_v3  ;;  %v3822_v49 = vpack.c.bf16 %v3794_v47, %v3793_v42  ;;  %v3799_v3 = vld [vmem:[#allocation2 + $0x199] sm:$0xff]  ;;  %v3800_v4 = vld [vmem:[#allocation2 + $0x1a1] sm:$0xff] }
 0x1c4   : > { %6286 = vmatmul.mubr.msk.bf16.gmra.mrb[24].mxu1 %vm544_vm2, %v1646_v13  ;;  %6522 = vmatmul.mubr.msk.bf16.vlgmr.msra.gmra.mrb[0].mxu0 %vm544_vm2, %v3804_v18  ;;  %v3780_v13 = vld [vmem:[#allocation2 + $0x101] sm:$0xff]  ;;  %v3814_v18 = vpack.c.bf16 %v3778_v0, %v3777_v63  ;;  %v3798_v63 = vld [vmem:[#allocation2 + $0x191] sm:$0xff] }
 0x1c5   : > { %6289 = vmatprep.mubr.msk.bf16.mxu1 %vm544_vm2, %v1647_v27  ;;  %6525 = vmatprep.mubr.msk.bf16.mxu0 %vm544_vm2, %v3805_v48  ;;  %v3815_v40 = vpack.c.bf16 %v3780_v13, %v3779_v11  ;;  %v3781_v27 = vld [vmem:[#allocation2 + $0x109] sm:$0xff]  ;;  %v3782_v48 = vld [vmem:[#allocation2 + $0x111] sm:$0xff]  ;;  %v2063_v0 = vld [vmem:[#allocation2 + $0x180] sm:$0xff] }
 0x1c6   : > { %v3816_v44 = vpack.c.bf16 %v3782_v48, %v3781_v27 }
 0x1cc   : > { %6290 = vmatmul.mubr.msk.bf16.gmra.mrb[28].mxu1 %vm544_vm2, %v1648_v1  ;;  %6526 = vmatmul.mubr.msk.bf16.gmra.mrb[4].mxu0 %vm544_vm2, %v3806_v17  ;;  %v2049_v1 = vld [vmem:[#allocation2 + $0x110] sm:$0xff]  ;;  %v2050_v17 = vld [vmem:[#allocation2 + $0x118] sm:$0xff] }
 0x1cd   : > { %6293 = vmatprep.mubr.msk.bf16.mxu1 %vm544_vm2, %v1649_v62  ;;  %6529 = vmatprep.mubr.msk.bf16.mxu0 %vm544_vm2, %v3807_v14  ;;  %v2051_v62 = vld [vmem:[#allocation2 + $0x120] sm:$0xff]  ;;  %v2052_v14 = vld [vmem:[#allocation2 + $0x128] sm:$0xff]  ;;  %v2082_v56 = vpack.c.bf16 %v2050_v17, %v2049_v1 }
 0x1ce   : > { %v2083_v57 = vpack.c.bf16 %v2052_v14, %v2051_v62 }
 0x1d4   : > { %6294 = vmatmul.mubr.msk.bf16.gmra.mrb[32].mxu1 %vm544_vm2, %v1650_v24  ;;  %6530 = vmatmul.mubr.msk.bf16.gmra.mrb[8].mxu0 %vm544_vm2, %v3808_v25  ;;  %v2053_v24 = vld [vmem:[#allocation2 + $0x130] sm:$0xff]  ;;  %v2054_v25 = vld [vmem:[#allocation2 + $0x138] sm:$0xff] }
 0x1d5   : > { %6297 = vmatprep.mubr.msk.bf16.mxu1 %vm544_vm2, %v1651_v6  ;;  %6533 = vmatprep.mubr.msk.bf16.mxu0 %vm544_vm2, %v3809_v7  ;;  %v2055_v6 = vld [vmem:[#allocation2 + $0x140] sm:$0xff]  ;;  %v2056_v7 = vld [vmem:[#allocation2 + $0x148] sm:$0xff]  ;;  %v2084_v10 = vpack.c.bf16 %v2054_v25, %v2053_v24 }
 0x1d6   : > { %v2085_v28 = vpack.c.bf16 %v2056_v7, %v2055_v6  ;;  %v8278_v24 = vld [vmem:[%s231_s27] ss:$0 sm:$0xff] }
 0x1dc   : > { %6298 = vmatmul.mubr.msk.bf16.gmra.mrb[36].mxu1 %vm544_vm2, %v1652_v29  ;;  %6534 = vmatmul.mubr.msk.bf16.gmra.mrb[12].mxu0 %vm544_vm2, %v3810_v34  ;;  %v2057_v29 = vld [vmem:[#allocation2 + $0x150] sm:$0xff]  ;;  %v2058_v34 = vld [vmem:[#allocation2 + $0x158] sm:$0xff] }
 0x1dd   : > { %6301 = vmatprep.mubr.msk.bf16.mxu1 %vm544_vm2, %v1653_v36  ;;  %6537 = vmatprep.mubr.msk.bf16.mxu0 %vm544_vm2, %v3811_v20  ;;  %v2059_v36 = vld [vmem:[#allocation2 + $0x160] sm:$0xff]  ;;  %v2060_v20 = vld [vmem:[#allocation2 + $0x168] sm:$0xff]  ;;  %v2086_v37 = vpack.c.bf16 %v2058_v34, %v2057_v29 }
 0x1de   : > { %v2087_v50 = vpack.c.bf16 %v2060_v20, %v2059_v36 }
 0x1e4   : > { %6302 = vmatmul.mubr.msk.bf16.gmra.mrb[40].mxu1 %vm544_vm2, %v1654_v54  ;;  %6538 = vmatmul.mubr.msk.bf16.gmra.mrb[16].mxu0 %vm544_vm2, %v3812_v55  ;;  %v3823_v54 = vpack.c.bf16 %v3796_v43, %v3795_v8  ;;  %v2061_v55 = vld [vmem:[#allocation2 + $0x170] sm:$0xff] }
 0x1e5   : > { %6305 = vmatprep.mubr.msk.bf16.mxu1 %vm544_vm2, %v1655_v59  ;;  %6541 = vmatprep.mubr.msk.bf16.mxu0 %vm544_vm2, %v3813_v23  ;;  %v2062_v59 = vld [vmem:[#allocation2 + $0x178] sm:$0xff]  ;;  %v3797_v23 = vld [vmem:[#allocation2 + $0x189] sm:$0xff] }
 0x1e6   : > { %v2088_v11 = vpack.c.bf16 %v2062_v59, %v2061_v55  ;;  %v3824_v13 = vpack.c.bf16 %v3798_v63, %v3797_v23 }
 0x1ec   : > { %6306 = vmatmul.mubr.msk.bf16.gmra.mrb[44].mxu1 %vm544_vm2, %v1656_v35  ;;  %6542 = vmatmul.mubr.msk.bf16.gmra.mrb[20].mxu0 %vm544_vm2, %v3814_v18  ;;  %v2089_v35 = vpack.c.bf16 %v8167_v21, %v2063_v0  ;;  %v3825_v18 = vpack.c.bf16 %v3800_v4, %v3799_v3 }
 0x1ed   : > { %6337 = vmatprep.mubr.msk.bf16.mxu1 %vm544_vm2, %v2079_v58  ;;  %6545 = vmatprep.mubr.msk.bf16.mxu0 %vm544_vm2, %v3815_v40  ;;  %v3801_v58 = vld [vmem:[#allocation2 + $0x1a9] sm:$0xff]  ;;  %v3802_v40 = vld [vmem:[#allocation2 + $0x1b1] sm:$0xff] }
 0x1ee   : > { %v3826_v26 = vpack.c.bf16 %v3802_v40, %v3801_v58 }
 0x1f4   : > { %6338 = vmatmul.mubr.msk.bf16.vlgmr.msra.gmra.mrb[24].mxu1 %vm544_vm2, %v2080_v41  ;;  %6546 = vmatmul.mubr.msk.bf16.gmra.mrb[24].mxu0 %vm544_vm2, %v3816_v44 }
 0x1f5   : > { %6341 = vmatprep.mubr.msk.bf16.mxu1 %vm544_vm2, %v2081_v52  ;;  %6549 = vmatprep.mubr.msk.bf16.mxu0 %vm544_vm2, %v3817_v16 }
 0x1fc   : > { %6342 = vmatmul.mubr.msk.bf16.gmra.mrb[28].mxu1 %vm544_vm2, %v2082_v56  ;;  %6550 = vmatmul.mubr.msk.bf16.gmra.mrb[28].mxu0 %vm544_vm2, %v3818_v22 }
 0x1fd   : > { %6345 = vmatprep.mubr.msk.bf16.mxu1 %vm544_vm2, %v2083_v57  ;;  %6553 = vmatprep.mubr.msk.bf16.mxu0 %vm544_vm2, %v3819_v15 }
 0x204   : > { %6346 = vmatmul.mubr.msk.bf16.gmra.mrb[32].mxu1 %vm544_vm2, %v2084_v10  ;;  %6554 = vmatmul.mubr.msk.bf16.gmra.mrb[32].mxu0 %vm544_vm2, %v3820_v45 }
 0x205   : > { %6349 = vmatprep.mubr.msk.bf16.mxu1 %vm544_vm2, %v2085_v28  ;;  %6557 = vmatprep.mubr.msk.bf16.mxu0 %vm544_vm2, %v3821_v9 }
 0x20c   : > { %6350 = vmatmul.mubr.msk.bf16.gmra.mrb[36].mxu1 %vm544_vm2, %v2086_v37  ;;  %6558 = vmatmul.mubr.msk.bf16.gmra.mrb[36].mxu0 %vm544_vm2, %v3822_v49 }
 0x20d   : > { %6353 = vmatprep.mubr.msk.bf16.mxu1 %vm544_vm2, %v2087_v50  ;;  %6561 = vmatprep.mubr.msk.bf16.mxu0 %vm544_vm2, %v3823_v54 }
 0x214   : > { %6354 = vmatmul.mubr.msk.bf16.gmra.mrb[40].mxu1 %vm544_vm2, %v2088_v11  ;;  %6562 = vmatmul.mubr.msk.bf16.gmra.mrb[40].mxu0 %vm544_vm2, %v3824_v13 }
 0x215   : > { %6357 = vmatprep.mubr.msk.bf16.mxu1 %vm544_vm2, %v2089_v35  ;;  %6565 = vmatprep.mubr.msk.bf16.mxu0 %vm544_vm2, %v3825_v18 }
 0x21c   : > { %6358 = vmatmul.mubr.msk.bf16.gmra.mrb[44].mxu1 %vm544_vm2, %v2090_v19  ;;  %6566 = vmatmul.mubr.msk.bf16.gmra.mrb[44].mxu0 %vm544_vm2, %v3826_v26 }
 0x267   : > { %v6263_v21 = vpop.f32.mrb[0].mxu1 }
 0x268   : > { %v1780_v27 = vpop.f32.mrb[1].mxu1 }
 0x269   : > { %v6264_v48 = vpop.f32.mrb[2].mxu1 }
 0x26a   : > { %v1783_v30 = vpop.f32.mrb[3].mxu1 }
 0x26f   : > { %v6267_v38 = vpop.f32.mrb[4].mxu1 }
 0x270   : > { %v1796_v39 = vpop.f32.mrb[5].mxu1 }
 0x271   : > { %v6268_v51 = vpop.f32.mrb[6].mxu1 }
 0x272   : > { %v1799_v41 = vpop.f32.mrb[7].mxu1 }
 0x277   : > { %v6271_v44 = vpop.f32.mrb[8].mxu1 }
 0x278   : > { %v1812_v52 = vpop.f32.mrb[9].mxu1 }
 0x279   : > { %v6272_v16 = vpop.f32.mrb[10].mxu1 }
 0x27a   : > { %v1815_v1 = vpop.f32.mrb[11].mxu1 }
 0x27f   : > { %v6275_v17 = vpop.f32.mrb[12].mxu1 }
 0x280   : > { %v1828_v2 = vpop.f32.mrb[13].mxu1 }
 0x281   : > { %v6276_v31 = vpop.f32.mrb[14].mxu1 }
 0x282   : > { %v1831_v53 = vpop.f32.mrb[15].mxu1 }
 0x287   : > { %v6279_v61 = vpop.f32.mrb[16].mxu1 }
 0x288   : > { %v1844_v62 = vpop.f32.mrb[17].mxu1 }
 0x289   : > { %v6280_v14 = vpop.f32.mrb[18].mxu1 }
 0x28a   : > { %v8263_v46 = vpop.f32.mrb[19].mxu1 }
 0x28f   : > { %v8265_v5 = vpop.f32.mrb[20].mxu1 }
 0x290   : > { %v8267_v56 = vpop.f32.mrb[21].mxu1 }
 0x291   : > { %v8269_v22 = vpop.f32.mrb[22].mxu1 }
 0x292   : > { %v8271_v57 = vpop.f32.mrb[23].mxu1 }
 0x297   : > { %v6523_v15 = vpop.f32.mrb[0].mxu0 }
 0x298   : > { %v6573_v25 = vadd.f32 %v6523_v15, %v6263_v21  ;;  %v3950_v60 = vpop.f32.mrb[1].mxu0 }
 0x299   : > { %v6574_v33 = vadd.f32 %v3950_v60, %v1780_v27  ;;  %v6524_v6 = vpop.f32.mrb[2].mxu0 }
 0x29a   : > { %v8281_v7 = vadd.f32 %v6573_v25, %v8278_v24  ;;  %v6575_v12 = vadd.f32 %v6524_v6, %v6264_v48  ;;  %v3953_v32 = vpop.f32.mrb[3].mxu0 }
 0x29b   : > { %v8284_v10 = vadd.f32 %v6574_v33, %v8278_v24  ;;  %v6576_v45 = vadd.f32 %v3953_v32, %v1783_v30 }
 0x29c   : > { %v8287_v28 = vadd.f32 %v6575_v12, %v8278_v24 }
 0x29d   : > { %v8290_v9 = vadd.f32 %v6576_v45, %v8278_v24 }
 0x29f   : > { %v6527_v29 = vpop.f32.mrb[4].mxu0 }
 0x2a0   : > { %v6577_v34 = vadd.f32 %v6527_v29, %v6267_v38  ;;  %v3966_v42 = vpop.f32.mrb[5].mxu0 }
 0x2a1   : > { %v6578_v47 = vadd.f32 %v3966_v42, %v1796_v39  ;;  %v6528_v36 = vpop.f32.mrb[6].mxu0 }
 0x2a2   : > { %v8293_v20 = vadd.f32 %v6577_v34, %v8278_v24  ;;  %v6579_v8 = vadd.f32 %v6528_v36, %v6268_v51  ;;  %v3969_v43 = vpop.f32.mrb[7].mxu0 }
 0x2a3   : > { %v8296_v37 = vadd.f32 %v6578_v47, %v8278_v24  ;;  %v6580_v49 = vadd.f32 %v3969_v43, %v1799_v41 }
 0x2a4   : > { %v8299_v50 = vadd.f32 %v6579_v8, %v8278_v24 }
 0x2a5   : > { %v8302_v54 = vadd.f32 %v6580_v49, %v8278_v24 }
 0x2a7   : > { %v6531_v55 = vpop.f32.mrb[8].mxu0 }
 0x2a8   : > { %v6581_v59 = vadd.f32 %v6531_v55, %v6271_v44  ;;  %v3982_v23 = vpop.f32.mrb[9].mxu0 }
 0x2a9   : > { %v6582_v63 = vadd.f32 %v3982_v23, %v1812_v52  ;;  %v6532_v0 = vpop.f32.mrb[10].mxu0 }
 0x2aa   : > { %v8305_v3 = vadd.f32 %v6581_v59, %v8278_v24  ;;  %v6583_v4 = vadd.f32 %v6532_v0, %v6272_v16  ;;  %v3985_v11 = vpop.f32.mrb[11].mxu0 }
 0x2ab   : > { %v8308_v13 = vadd.f32 %v6582_v63, %v8278_v24  ;;  %v6584_v35 = vadd.f32 %v3985_v11, %v1815_v1 }
 0x2ac   : > { %v8311_v18 = vadd.f32 %v6583_v4, %v8278_v24 }
 0x2ad   : > { %v8314_v58 = vadd.f32 %v6584_v35, %v8278_v24 }
 0x2af   : > { %v6535_v40 = vpop.f32.mrb[12].mxu0 }
 0x2b0   : > { %v6585_v19 = vadd.f32 %v6535_v40, %v6275_v17  ;;  %v3998_v26 = vpop.f32.mrb[13].mxu0 }
 0x2b1   : > { %v6586_v21 = vadd.f32 %v3998_v26, %v1828_v2  ;;  %v6536_v27 = vpop.f32.mrb[14].mxu0 }
 0x2b2   : > { %v8317_v48 = vadd.f32 %v6585_v19, %v8278_v24  ;;  %v6587_v30 = vadd.f32 %v6536_v27, %v6276_v31  ;;  %v4001_v38 = vpop.f32.mrb[15].mxu0 }
 0x2b3   : > { %v8320_v39 = vadd.f32 %v6586_v21, %v8278_v24  ;;  %v6588_v51 = vadd.f32 %v4001_v38, %v1831_v53 }
 0x2b4   : > { %v8323_v41 = vadd.f32 %v6587_v30, %v8278_v24 }
 0x2b5   : > { %v8326_v44 = vadd.f32 %v6588_v51, %v8278_v24 }
 0x2b7   : > { %v6539_v52 = vpop.f32.mrb[16].mxu0 }
 0x2b8   : > { %v6589_v16 = vadd.f32 %v6539_v52, %v6279_v61  ;;  %v4014_v1 = vpop.f32.mrb[17].mxu0 }
 0x2b9   : > { %v6590_v17 = vadd.f32 %v4014_v1, %v1844_v62  ;;  %v6540_v2 = vpop.f32.mrb[18].mxu0 }
 0x2ba   : > { %v8329_v15 = vadd.f32 %v6589_v16, %v8278_v24  ;;  %v6591_v31 = vadd.f32 %v6540_v2, %v6280_v14  ;;  %v4017_v25 = vpop.f32.mrb[19].mxu0 }
 0x2bb   : > { %v8332_v60 = vadd.f32 %v6590_v17, %v8278_v24  ;;  %v6592_v53 = vadd.f32 %v4017_v25, %v8263_v46 }
 0x2bc   : > { %v8336_v33 = vadd.f32 %v6591_v31, %v8278_v24 }
 0x2bd   : > { %v8339_v6 = vadd.f32 %v6592_v53, %v8278_v24 }
 0x2bf   : > { %v6543_v61 = vpop.f32.mrb[20].mxu0 }
 0x2c0   : > { %v6593_v62 = vadd.f32 %v6543_v61, %v8265_v5  ;;  %v4030_v12 = vpop.f32.mrb[21].mxu0 }
 0x2c1   : > { %v6594_v32 = vadd.f32 %v4030_v12, %v8267_v56  ;;  %v6544_v45 = vpop.f32.mrb[22].mxu0 }
 0x2c2   : > { %v8344_v14 = vadd.f32 %v6593_v62, %v8278_v24  ;;  %v6595_v29 = vadd.f32 %v6544_v45, %v8269_v22  ;;  %v4033_v34 = vpop.f32.mrb[23].mxu0 }
 0x2c3   : > { %v8348_v46 = vadd.f32 %v6594_v32, %v8278_v24  ;;  %v6596_v42 = vadd.f32 %v4033_v34, %v8271_v57 }
 0x2c4   : > { %v8352_v47 = vadd.f32 %v6595_v29, %v8278_v24 }
 0x2c5   : > { %v8355_v5 = vadd.f32 %v6596_v42, %v8278_v24 }
 0x2c7   : > { %v6339_v36 = vpop.f32.mrb[24].mxu1  ;;  %v6547_v56 = vpop.f32.mrb[24].mxu0 }
 0x2c8   : > { %v2310_v8 = vpop.f32.mrb[25].mxu1  ;;  %v6597_v43 = vadd.f32 %v6547_v56, %v6339_v36  ;;  %v4046_v49 = vpop.f32.mrb[25].mxu0 }
 0x2c9   : > { %v6340_v55 = vpop.f32.mrb[26].mxu1  ;;  %v6598_v59 = vadd.f32 %v4046_v49, %v2310_v8  ;;  %v6548_v22 = vpop.f32.mrb[26].mxu0 }
 0x2ca   : > { %v2313_v23 = vpop.f32.mrb[27].mxu1  ;;  %v8358_v63 = vadd.f32 %v6597_v43, %v8278_v24  ;;  %v6599_v0 = vadd.f32 %v6548_v22, %v6340_v55  ;;  %v4049_v57 = vpop.f32.mrb[27].mxu0 }
 0x2cb   : > { %v8361_v4 = vadd.f32 %v6598_v59, %v8278_v24  ;;  %v6600_v11 = vadd.f32 %v4049_v57, %v2313_v23 }
 0x2cc   : > { %v8364_v35 = vadd.f32 %v6599_v0, %v8278_v24 }
 0x2cd   : > { %v8367_v40 = vadd.f32 %v6600_v11, %v8278_v24 }
 0x2cf   : > { %v6343_v19 = vpop.f32.mrb[28].mxu1  ;;  %v6551_v26 = vpop.f32.mrb[28].mxu0 }
 0x2d0   : > { %v2326_v21 = vpop.f32.mrb[29].mxu1  ;;  %v6601_v27 = vadd.f32 %v6551_v26, %v6343_v19  ;;  %v4062_v30 = vpop.f32.mrb[29].mxu0 }
 0x2d1   : > { %v6344_v38 = vpop.f32.mrb[30].mxu1  ;;  %v6602_v51 = vadd.f32 %v4062_v30, %v2326_v21  ;;  %v6552_v52 = vpop.f32.mrb[30].mxu0 }
 0x2d2   : > { %v2329_v16 = vpop.f32.mrb[31].mxu1  ;;  %v8370_v1 = vadd.f32 %v6601_v27, %v8278_v24  ;;  %v6603_v17 = vadd.f32 %v6552_v52, %v6344_v38  ;;  %v4065_v2 = vpop.f32.mrb[31].mxu0 }
 0x2d3   : > { %v8373_v31 = vadd.f32 %v6602_v51, %v8278_v24  ;;  %v6604_v25 = vadd.f32 %v4065_v2, %v2329_v16 }
 0x2d4   : > { %v8376_v53 = vadd.f32 %v6603_v17, %v8278_v24 }
 0x2d5   : > { %v8379_v61 = vadd.f32 %v6604_v25, %v8278_v24 }
 0x2d7   : > { %v6347_v62 = vpop.f32.mrb[32].mxu1  ;;  %v6555_v12 = vpop.f32.mrb[32].mxu0 }
 0x2d8   : > { %v2342_v32 = vpop.f32.mrb[33].mxu1  ;;  %v6605_v45 = vadd.f32 %v6555_v12, %v6347_v62  ;;  %v4078_v29 = vpop.f32.mrb[33].mxu0 }
 0x2d9   : > { %v6348_v34 = vpop.f32.mrb[34].mxu1  ;;  %v6606_v42 = vadd.f32 %v4078_v29, %v2342_v32  ;;  %v6556_v36 = vpop.f32.mrb[34].mxu0 }
 0x2da   : > { %v2345_v56 = vpop.f32.mrb[35].mxu1  ;;  %v8382_v8 = vadd.f32 %v6605_v45, %v8278_v24  ;;  %v6607_v43 = vadd.f32 %v6556_v36, %v6348_v34  ;;  %v4081_v49 = vpop.f32.mrb[35].mxu0 }
 0x2db   : > { %v8385_v55 = vadd.f32 %v6606_v42, %v8278_v24  ;;  %v6608_v59 = vadd.f32 %v4081_v49, %v2345_v56 }
 0x2dc   : > { %9200 = vst [vmem:[#allocation30_spill] sm:$0xff] %v8382_v8  ;;  %v8388_v22 = vadd.f32 %v6607_v43, %v8278_v24 }
 0x2dd   : > { %9201 = vst [vmem:[#allocation33_spill] sm:$0xff] %v8385_v55  ;;  %v8391_v23 = vadd.f32 %v6608_v59, %v8278_v24 }
 0x2de   : > { %9202 = vst [vmem:[#allocation34_spill] sm:$0xff] %v8388_v22 }
 0x2df   : > { %9203 = vst [vmem:[#allocation6_spill] sm:$0xff] %v8391_v23  ;;  %v6351_v0 = vpop.f32.mrb[36].mxu1  ;;  %v6559_v57 = vpop.f32.mrb[36].mxu0 }
 0x2e0   : > { %v2358_v11 = vpop.f32.mrb[37].mxu1  ;;  %v6609_v19 = vadd.f32 %v6559_v57, %v6351_v0  ;;  %v4094_v26 = vpop.f32.mrb[37].mxu0 }
 0x2e1   : > { %v6352_v21 = vpop.f32.mrb[38].mxu1  ;;  %v6610_v27 = vadd.f32 %v4094_v26, %v2358_v11  ;;  %v6560_v30 = vpop.f32.mrb[38].mxu0 }
 0x2e2   : > { %v2361_v38 = vpop.f32.mrb[39].mxu1  ;;  %v8394_v51 = vadd.f32 %v6609_v19, %v8278_v24  ;;  %v6611_v52 = vadd.f32 %v6560_v30, %v6352_v21  ;;  %v4097_v16 = vpop.f32.mrb[39].mxu0 }
 0x2e3   : > { %v8397_v17 = vadd.f32 %v6610_v27, %v8278_v24  ;;  %v6612_v2 = vadd.f32 %v4097_v16, %v2361_v38 }
 0x2e4   : > { %9204 = vst [vmem:[#allocation37_spill] sm:$0xff] %v8394_v51  ;;  %v8400_v25 = vadd.f32 %v6611_v52, %v8278_v24 }
 0x2e5   : > { %9205 = vst [vmem:[#allocation40_spill] sm:$0xff] %v8397_v17  ;;  %v8403_v62 = vadd.f32 %v6612_v2, %v8278_v24 }
 0x2e6   : > { %9206 = vst [vmem:[#allocation17_spill] sm:$0xff] %v8400_v25 }
 0x2e7   : > { %9207 = vst [vmem:[#allocation18_spill] sm:$0xff] %v8403_v62  ;;  %v6355_v12 = vpop.f32.mrb[40].mxu1  ;;  %v6563_v32 = vpop.f32.mrb[40].mxu0 }
 0x2e8   : > { %v2374_v45 = vpop.f32.mrb[41].mxu1  ;;  %v6613_v29 = vadd.f32 %v6563_v32, %v6355_v12  ;;  %v4110_v34 = vpop.f32.mrb[41].mxu0 }
 0x2e9   : > { %v6356_v42 = vpop.f32.mrb[42].mxu1  ;;  %v6614_v36 = vadd.f32 %v4110_v34, %v2374_v45  ;;  %v6564_v56 = vpop.f32.mrb[42].mxu0 }
 0x2ea   : > { %v2377_v43 = vpop.f32.mrb[43].mxu1  ;;  %v8406_v49 = vadd.f32 %v6613_v29, %v8278_v24  ;;  %v6615_v59 = vadd.f32 %v6564_v56, %v6356_v42  ;;  %v4113_v0 = vpop.f32.mrb[43].mxu0 }
 0x2eb   : > { %v8409_v57 = vadd.f32 %v6614_v36, %v8278_v24  ;;  %v6616_v11 = vadd.f32 %v4113_v0, %v2377_v43 }
 0x2ec   : > { %9208 = vst [vmem:[#allocation7_spill] sm:$0xff] %v8406_v49  ;;  %v8412_v19 = vadd.f32 %v6615_v59, %v8278_v24  ;;  %v4248_v59 = vlaneseq (!%p5861_p6) }
 0x2ed   : > { %9209 = vst [vmem:[#allocation8_spill] sm:$0xff] %v8409_v57  ;;  %v8415_v26 = vadd.f32 %v6616_v11, %v8278_v24 }
 0x2ee   : > { %9210 = vst [vmem:[#allocation19_spill] sm:$0xff] %v8412_v19 }
 0x2ef   : > { %9211 = vst [vmem:[#allocation20_spill] sm:$0xff] %v8415_v26  ;;  %v6359_v21 = vpop.f32.mrb[44].mxu1  ;;  %v6567_v27 = vpop.f32.mrb[44].mxu0 }
 0x2f0   : > { %v2390_v30 = vpop.f32.mrb[45].mxu1  ;;  %v6617_v38 = vadd.f32 %v6567_v27, %v6359_v21  ;;  %v4126_v52 = vpop.f32.mrb[45].mxu0 }
 0x2f1   : > { %v6360_v16 = vpop.f32.mrb[46].mxu1  ;;  %v6618_v2 = vadd.f32 %v4126_v52, %v2390_v30  ;;  %v6568_v12 = vpop.f32.mrb[46].mxu0  ;;  %4247 = sbr.rel (%p5861_p6) target bundleno = 918 (0x396), region = 44 }
 0x2f2   : > { %v2393_v32 = vpop.f32.mrb[47].mxu1  ;;  %v8418_v45 = vadd.f32 %v6617_v38, %v8278_v24  ;;  %v6619_v29 = vadd.f32 %v6568_v12, %v6360_v16  ;;  %v4129_v34 = vpop.f32.mrb[47].mxu0  ;;  %v8435_v38 = vshrl.u32 (!%p5861_p6), %v4248_v59, 7 }
 0x2f3   : > { %v8421_v42 = vadd.f32 %v6618_v2, %v8278_v24  ;;  %v6620_v36 = vadd.f32 %v4129_v34, %v2393_v32 }
 0x2f4   : > { %9212 = vst [vmem:[#allocation21_spill] sm:$0xff] %v8418_v45  ;;  %v8424_v56 = vadd.f32 %v6619_v29, %v8278_v24  ;;  %v4250_v59 = vadd.s32 (!%p5861_p6), 8, %v8435_v38  ;;  %v4251_v52 = vadd.s32 (!%p5861_p6), 16, %v8435_v38  ;;  %v4253_v16 = vadd.s32 (!%p5861_p6), 32, %v8435_v38 }
 0x2f5   : > { %9213 = vst [vmem:[#allocation22_spill] sm:$0xff] %v8421_v42  ;;  %v8427_v43 = vadd.f32 %v6620_v36, %v8278_v24  ;;  %v8445_v34 = vmul.u32.u64.low (!%p5861_p6), 2863311531, %v8435_v38  ;;  %v8446_v36 = vmul.u32.u64.high 2863311531, %v8435_v38, %v8445_v34  ;;  %v4252_v24 = vadd.s32 (!%p5861_p6), 24, %v8435_v38 }
 0x2f6   : > { %9214 = vst [vmem:[#allocation9_spill] sm:$0xff] %v8424_v56  ;;  %v8453_v2 = vadd.s32 (!%p5861_p6), 40, %v8435_v38  ;;  %v8456_v12 = vadd.s32 (!%p5861_p6), 48, %v8435_v38  ;;  %v8458_v32 = vmul.u32.u64.low (!%p5861_p6), 2863311531, %v4250_v59  ;;  %v8459_v29 = vmul.u32.u64.high 2863311531, %v4250_v59, %v8458_v32 }
 0x2f7   : > { %9215 = vst [vmem:[#allocation10_spill] sm:$0xff] %v8427_v43  ;;  %v8461_v30 = vmul.u32.u64.low (!%p5861_p6), 2863311531, %v4251_v52  ;;  %v8462_v27 = vmul.u32.u64.high 2863311531, %v4251_v52, %v8461_v30  ;;  %v8464_v34 = vmul.u32.u64.low (!%p5861_p6), 2863311531, %v4252_v24  ;;  %v8465_v21 = vmul.u32.u64.high 2863311531, %v4252_v24, %v8464_v34 }
 0x2f8   : > { %v8467_v11 = vmul.u32.u64.low 2863311531, %v4253_v16  ;;  %v8468_v0 = vmul.u32.u64.high 2863311531, %v4253_v16, %v8467_v11  ;;  %v4303_v56 = vshrl.u32 %v8446_v36, 4  ;;  %v8476_v42 = vadd.s32 56, %v8435_v38 }
 0x2f9   : > { %v8472_v45 = vmul.u32.u64.low 2863311531, %v8453_v2  ;;  %v8473_v43 = vmul.u32.u64.high 2863311531, %v8453_v2, %v8472_v45  ;;  %v8479_v32 = vmul.u32.u64.low 2863311531, %v8456_v12  ;;  %v8480_v19 = vmul.u32.u64.high 2863311531, %v8456_v12, %v8479_v32 }
 0x2fa   : > { %v8483_v30 = vadd.s32 64, %v8435_v38  ;;  %v8486_v34 = vadd.s32 72, %v8435_v38  ;;  %v4304_v11 = vmul.u32 24, %v4303_v56  ;;  %v4314_v36 = vshrl.u32 %v8459_v29, 4 }
 0x2fb   : > { %v4325_v49 = vshrl.u32 %v8462_v27, 4  ;;  %v8491_v45 = vadd.s32 80, %v8435_v38  ;;  %v4336_v26 = vshrl.u32 %v8465_v21, 4  ;;  %v4347_v57 = vshrl.u32 %v8468_v0, 4 }
 0x2fc   : > { %v8496_v32 = vmul.u32.u64.low 2863311531, %v8476_v42  ;;  %v8497_v25 = vmul.u32.u64.high 2863311531, %v8476_v42, %v8496_v32  ;;  %v4305_v51 = vsub.s32 %v8435_v38, %v4304_v11  ;;  %v4315_v62 = vmul.u32 24, %v4314_v36 }
 0x2fd   : > { %v4326_v17 = vmul.u32 24, %v4325_v49  ;;  %v4358_v56 = vshrl.u32 %v8473_v43, 4  ;;  %v4337_v29 = vmul.u32 24, %v4336_v26  ;;  %v4369_v27 = vshrl.u32 %v8480_v19, 4 }
 0x2fe   : > { %v4348_v22 = vmul.u32 24, %v4347_v57  ;;  %v8503_v8 = vadd.s32 88, %v8435_v38  ;;  %vm4825_vm3 = vcmp.ne.s32.totalorder %v4305_v51, 0  ;;  %vm4873_vm4 = vcmp.lt.s32.totalorder %v4305_v51, 0 }
 0x2ff   : > { %v4969_v0 = vadd.s32 24, %v4305_v51  ;;  %v4316_v21 = vsub.s32 %v4250_v59, %v4315_v62  ;;  %vm4921_vm5 = vmand %vm4873_vm4, %vm4825_vm3  ;;  %v4327_v23 = vsub.s32 %v4251_v52, %v4326_v17  ;;  %v4338_v32 = vsub.s32 %v4252_v24, %v4337_v29 }
 0x300   : > { %v4349_v55 = vsub.s32 %v4253_v16, %v4348_v22  ;;  %v4359_v11 = vmul.u32 24, %v4358_v56  ;;  %v9216_v19 = vmax.f32 %v8284_v10, 0.0  ;;  %v9217_v17 = vmax.f32 %v8290_v9, 0.0 }
 0x301   : > { %v5017_v36 = vsel %vm4921_vm5, %v4969_v0, %v4305_v51  ;;  %vm4826_vm6 = vcmp.ne.s32.totalorder %v4316_v21, 0  ;;  %vm4874_vm7 = vcmp.lt.s32.totalorder %v4316_v21, 0  ;;  %v4970_v49 = vadd.s32 24, %v4316_v21 }
 0x302   : > { %vm5065_vm8 = vcmp.lt.s32.totalorder %v5017_v36, 16  ;;  %vm4922_vm9 = vmand %vm4874_vm7, %vm4826_vm6  ;;  %vm4827_vm10 = vcmp.ne.s32.totalorder %v4327_v23, 0  ;;  %vm4875_vm11 = vcmp.lt.s32.totalorder %v4327_v23, 0  ;;  %v4971_v57 = vadd.s32 24, %v4327_v23 }
 0x303   : > { %v5257_v26 = vsel %vm5065_vm8, %v9216_v19, 0.0  ;;  %v5018_v43 = vsel %vm4922_vm9, %v4970_v49, %v4316_v21  ;;  %vm4923_vm12 = vmand %vm4875_vm11, %vm4827_vm10  ;;  %vm4828_vm13 = vcmp.ne.s32.totalorder %v4338_v32, 0  ;;  %vm4876_vm14 = vcmp.lt.s32.totalorder %v4338_v32, 0 }
 0x304   : > { %5305 = vst.msk [vmem:[#allocation2 + $0x20] sm:$0xff] %vm544_vm2, %v5257_v26  ;;  %vm5066_vm15 = vcmp.lt.s32.totalorder %v5018_v43, 16  ;;  %v5019_v22 = vsel %vm4923_vm12, %v4971_v57, %v4327_v23  ;;  %vm4924_vm0 = vmand %vm4876_vm14, %vm4828_vm13  ;;  %v4972_v51 = vadd.s32 24, %v4338_v32  ;;  %vm4829_vm1 = vcmp.ne.s32.totalorder %v4349_v55, 0 }
 0x305   : > { %v5258_v62 = vsel %vm5066_vm15, %v9217_v17, 0.0  ;;  %vm5067_vm3 = vcmp.lt.s32.totalorder %v5019_v22, 16  ;;  %vm4877_vm4 = vcmp.lt.s32.totalorder %v4349_v55, 0  ;;  %v4973_v52 = vadd.s32 24, %v4349_v55 }
 0x306   : > { %5306 = vst.msk [vmem:[#allocation2 + $0x28] sm:$0xff] %vm544_vm2, %v5258_v62  ;;  %v9218_v24 = vmax.f32 %v8281_v7, 0.0  ;;  %v5020_v59 = vsel %vm4924_vm0, %v4972_v51, %v4338_v32  ;;  %vm4925_vm5 = vmand %vm4877_vm4, %vm4829_vm1  ;;  %v4360_v56 = vsub.s32 %v8453_v2, %v4359_v11  ;;  %v4370_v29 = vmul.u32 24, %v4369_v27 }
 0x307   : > { %vm5068_vm6 = vcmp.lt.s32.totalorder %v5020_v59, 16  ;;  %v5021_v23 = vsel %vm4925_vm5, %v4973_v52, %v4349_v55  ;;  %v4380_v0 = vshrl.u32 %v8497_v25, 4  ;;  %v8517_v21 = vadd.s32 96, %v8435_v38 }
 0x308   : > { %v5259_v16 = vsel %vm5067_vm3, %v9218_v24, 0.0  ;;  %v9219_v36 = vmax.f32 %v8287_v28, 0.0  ;;  %vm5069_vm7 = vcmp.lt.s32.totalorder %v5021_v23, 16  ;;  %vm4830_vm8 = vcmp.ne.s32.totalorder %v4360_v56, 0 }
 0x309   : > { %5307 = vst.msk [vmem:[#allocation2 + $0x30] sm:$0xff] %vm544_vm2, %v5259_v16  ;;  %vm4878_vm9 = vcmp.lt.s32.totalorder %v4360_v56, 0  ;;  %v9220_v7 = vmax.f32 %v8296_v37, 0.0  ;;  %v4974_v27 = vadd.s32 24, %v4360_v56  ;;  %v4371_v55 = vsub.s32 %v8456_v12, %v4370_v29 }
 0x30a   : > { %v5260_v49 = vsel %vm5068_vm6, %v9219_v36, 0.0  ;;  %vm4926_vm10 = vmand %vm4878_vm9, %vm4830_vm8  ;;  %v4381_v32 = vmul.u32 24, %v4380_v0  ;;  %v8527_v25 = vmul.u32.u64.low 2863311531, %v8483_v30  ;;  %v8528_v11 = vmul.u32.u64.high 2863311531, %v8483_v30, %v8527_v25 }
 0x30b   : > { %5308 = vst.msk [vmem:[#allocation2 + $0x38] sm:$0xff] %vm544_vm2, %v5260_v49  ;;  %v5261_v2 = vsel %vm5069_vm7, %v9220_v7, 0.0  ;;  %v8531_v57 = vmul.u32.u64.low 2863311531, %v8486_v34  ;;  %v8532_v19 = vmul.u32.u64.high 2863311531, %v8486_v34, %v8531_v57  ;;  %v5022_v26 = vsel %vm4926_vm10, %v4974_v27, %v4360_v56 }
 0x30c   : > { %5309 = vst.msk [vmem:[#allocation2 + $0x40] sm:$0xff] %vm544_vm2, %v5261_v2  ;;  %vm4831_vm11 = vcmp.ne.s32.totalorder %v4371_v55, 0  ;;  %vm4879_vm12 = vcmp.lt.s32.totalorder %v4371_v55, 0  ;;  %v4975_v43 = vadd.s32 24, %v4371_v55  ;;  %vm5070_vm13 = vcmp.lt.s32.totalorder %v5022_v26, 16 }
 0x30d   : > { %vm4927_vm14 = vmand %vm4879_vm12, %vm4831_vm11  ;;  %v4382_v22 = vsub.s32 %v8476_v42, %v4381_v32  ;;  %v8536_v12 = vmul.u32.u64.low 2863311531, %v8491_v45  ;;  %v8537_v51 = vmul.u32.u64.high 2863311531, %v8491_v45, %v8536_v12  ;;  %v9221_v17 = vmax.f32 %v8302_v54, 0.0 }
 0x30e   : > { %v5023_v52 = vsel %vm4927_vm14, %v4975_v43, %v4371_v55  ;;  %v8542_v24 = vmul.u32.u64.low 2863311531, %v8503_v8  ;;  %v8543_v16 = vmul.u32.u64.high 2863311531, %v8503_v8, %v8542_v24  ;;  %v9222_v42 = vmax.f32 %v8293_v20, 0.0 }
 0x30f   : > { %v5262_v62 = vsel %vm5070_vm13, %v9221_v17, 0.0  ;;  %vm5071_vm15 = vcmp.lt.s32.totalorder %v5023_v52, 16  ;;  %vm4832_vm0 = vcmp.ne.s32.totalorder %v4382_v22, 0  ;;  %vm4880_vm1 = vcmp.lt.s32.totalorder %v4382_v22, 0 }
 0x310   : > { %5310 = vst.msk [vmem:[#allocation2 + $0x48] sm:$0xff] %vm544_vm2, %v5262_v62  ;;  %v4976_v59 = vadd.s32 24, %v4382_v22  ;;  %v5263_v56 = vsel %vm5071_vm15, %v9222_v42, 0.0  ;;  %vm4928_vm3 = vmand %vm4880_vm1, %vm4832_vm0  ;;  %v4391_v29 = vshrl.u32 %v8528_v11, 4  ;;  %v4402_v54 = vshrl.u32 %v8532_v19, 4 }
 0x311   : > { %v8551_v23 = vadd.s32 104, %v8435_v38  ;;  %5311 = vst.msk [vmem:[#allocation2 + $0x50] sm:$0xff] %vm544_vm2, %v5263_v56  ;;  %v4413_v36 = vshrl.u32 %v8537_v51, 4  ;;  %v8556_v49 = vmul.u32.u64.low 2863311531, %v8517_v21  ;;  %v8557_v7 = vmul.u32.u64.high 2863311531, %v8517_v21, %v8556_v49 }
 0x312   : > { %v5024_v0 = vsel %vm4928_vm3, %v4976_v59, %v4382_v22  ;;  %v4392_v2 = vmul.u32 24, %v4391_v29  ;;  %v4403_v27 = vmul.u32 24, %v4402_v54  ;;  %v4424_v55 = vshrl.u32 %v8543_v16, 4 }
 0x313   : > { %vm5072_vm4 = vcmp.lt.s32.totalorder %v5024_v0, 16  ;;  %v9223_v32 = vmax.f32 %v8299_v50, 0.0  ;;  %v4414_v11 = vmul.u32 24, %v4413_v36  ;;  %v5125_v12 = vmax.f32 %v8320_v39, 0.0 }
 0x314   : > { %v8563_v57 = vmul.u32.u64.low 2863311531, %v8551_v23  ;;  %v8564_v19 = vmul.u32.u64.high 2863311531, %v8551_v23, %v8563_v57  ;;  %v4393_v26 = vsub.s32 %v8483_v30, %v4392_v2  ;;  %v4404_v43 = vsub.s32 %v8486_v34, %v4403_v27 }
 0x315   : > { %v5264_v25 = vsel %vm5072_vm4, %v9223_v32, 0.0  ;;  %v4425_v22 = vmul.u32 24, %v4424_v55  ;;  %v4415_v51 = vsub.s32 %v8491_v45, %v4414_v11  ;;  %v4435_v17 = vshrl.u32 %v8557_v7, 4 }
 0x316   : > { %5312 = vst.msk [vmem:[#allocation2 + $0x58] sm:$0xff] %vm544_vm2, %v5264_v25  ;;  %v5126_v62 = vmax.f32 %v8326_v44, 0.0  ;;  %v8574_v52 = vadd.s32 112, %v8435_v38  ;;  %vm4833_vm5 = vcmp.ne.s32.totalorder %v4393_v26, 0  ;;  %vm4881_vm6 = vcmp.lt.s32.totalorder %v4393_v26, 0 }
 0x317   : > { %v4977_v24 = vadd.s32 24, %v4393_v26  ;;  %vm4834_vm7 = vcmp.ne.s32.totalorder %v4404_v43, 0  ;;  %vm4929_vm8 = vmand %vm4881_vm6, %vm4833_vm5  ;;  %vm4882_vm9 = vcmp.lt.s32.totalorder %v4404_v43, 0  ;;  %v4978_v30 = vadd.s32 24, %v4404_v43 }
 0x318   : > { %vm4835_vm10 = vcmp.ne.s32.totalorder %v4415_v51, 0  ;;  %vm4883_vm11 = vcmp.lt.s32.totalorder %v4415_v51, 0  ;;  %vm4930_vm12 = vmand %vm4882_vm9, %vm4834_vm7  ;;  %v4979_v16 = vadd.s32 24, %v4415_v51  ;;  %v4426_v45 = vsub.s32 %v8503_v8, %v4425_v22 }
 0x319   : > { %v5025_v34 = vsel %vm4929_vm8, %v4977_v24, %v4393_v26  ;;  %v4436_v59 = vmul.u32 24, %v4435_v17  ;;  %v5026_v42 = vsel %vm4930_vm12, %v4978_v30, %v4404_v43  ;;  %vm4931_vm14 = vmand %vm4883_vm11, %vm4835_vm10  ;;  %v4446_v56 = vshrl.u32 %v8564_v19, 4 }
 0x31a   : > { %vm5073_vm13 = vcmp.lt.s32.totalorder %v5025_v34, 16  ;;  %v4264_v29 = vadd.s32 120, %v8435_v38  ;;  %v9224_v54 = vmax.f32 %v8308_v13, 0.0  ;;  %vm5074_vm15 = vcmp.lt.s32.totalorder %v5026_v42, 16 }
 0x31b   : > { %v5027_v36 = vsel %vm4931_vm14, %v4979_v16, %v4415_v51  ;;  %vm4836_vm0 = vcmp.ne.s32.totalorder %v4426_v45, 0  ;;  %v9225_v49 = vmax.f32 %v8314_v58, 0.0  ;;  %vm4884_vm3 = vcmp.lt.s32.totalorder %v4426_v45, 0 }
 0x31c   : > { %v5265_v0 = vsel %vm5073_vm13, %v9224_v54, 0.0  ;;  %vm5075_vm1 = vcmp.lt.s32.totalorder %v5027_v36, 16  ;;  %v4980_v8 = vadd.s32 24, %v4426_v45  ;;  %v9226_v2 = vmax.f32 %v8305_v3, 0.0  ;;  %vm4932_vm4 = vmand %vm4884_vm3, %vm4836_vm0 }
 0x31d   : > { %5313 = vst.msk [vmem:[#allocation2 + $0x60] sm:$0xff] %vm544_vm2, %v5265_v0  ;;  %v5266_v7 = vsel %vm5074_vm15, %v9225_v49, 0.0  ;;  %v4437_v13 = vsub.s32 %v8517_v21, %v4436_v59  ;;  %v4447_v55 = vmul.u32 24, %v4446_v56  ;;  %v4265_v32 = vadd.s32 128, %v8435_v38 }
 0x31e   : > { %5314 = vst.msk [vmem:[#allocation2 + $0x68] sm:$0xff] %vm544_vm2, %v5266_v7  ;;  %v5267_v27 = vsel %vm5075_vm1, %v9226_v2, 0.0  ;;  %v5028_v25 = vsel %vm4932_vm4, %v4980_v8, %v4426_v45  ;;  %v8591_v11 = vmul.u32.u64.low 2863311531, %v8574_v52  ;;  %v8592_v57 = vmul.u32.u64.high 2863311531, %v8574_v52, %v8591_v11 }
 0x31f   : > { %5315 = vst.msk [vmem:[#allocation2 + $0x70] sm:$0xff] %vm544_vm2, %v5267_v27  ;;  %v5127_v19 = vmax.f32 %v8317_v48, 0.0  ;;  %vm5076_vm5 = vcmp.lt.s32.totalorder %v5028_v25, 16  ;;  %vm4837_vm6 = vcmp.ne.s32.totalorder %v4437_v13, 0  ;;  %vm4885_vm7 = vcmp.lt.s32.totalorder %v4437_v13, 0 }
 0x320   : > { %v4981_v26 = vadd.s32 24, %v4437_v13  ;;  %v9227_v43 = vmax.f32 %v8311_v18, 0.0  ;;  %vm4933_vm8 = vmand %vm4885_vm7, %vm4837_vm6  ;;  %v4448_v21 = vsub.s32 %v8551_v23, %v4447_v55  ;;  %v4266_v16 = vadd.s32 136, %v8435_v38 }
 0x321   : > { %v8598_v51 = vmul.u32.u64.low 2863311531, %v4264_v29  ;;  %v8599_v17 = vmul.u32.u64.high 2863311531, %v4264_v29, %v8598_v51  ;;  %v8602_v30 = vmul.u32.u64.low 2863311531, %v4265_v32  ;;  %v8603_v34 = vmul.u32.u64.high 2863311531, %v4265_v32, %v8602_v30 }
 0x322   : > { %v5268_v22 = vsel %vm5076_vm5, %v9227_v43, 0.0  ;;  %v5029_v24 = vsel %vm4933_vm8, %v4981_v26, %v4437_v13  ;;  %vm4838_vm10 = vcmp.ne.s32.totalorder %v4448_v21, 0  ;;  %vm4886_vm11 = vcmp.lt.s32.totalorder %v4448_v21, 0 }
 0x323   : > { %5316 = vst.msk [vmem:[#allocation2 + $0x78] sm:$0xff] %vm544_vm2, %v5268_v22  ;;  %vm5077_vm9 = vcmp.lt.s32.totalorder %v5029_v24, 16  ;;  %v4982_v45 = vadd.s32 24, %v4448_v21  ;;  %vm4934_vm12 = vmand %vm4886_vm11, %vm4838_vm10  ;;  %v4457_v59 = vshrl.u32 %v8592_v57, 4  ;;  %v4468_v54 = vshrl.u32 %v8599_v17, 4 }
 0x324   : > { %v5269_v18 = vsel %vm5077_vm9, %v5125_v12, 0.0  ;;  %v8607_v23 = vmul.u32.u64.low 2863311531, %v4266_v16  ;;  %v8608_v42 = vmul.u32.u64.high 2863311531, %v4266_v16, %v8607_v23  ;;  %v5128_v0 = vmax.f32 %v8323_v41, 0.0 }
 0x325   : > { %5317 = vst.msk [vmem:[#allocation2 + $0x80] sm:$0xff] %vm544_vm2, %v5269_v18  ;;  %v5030_v56 = vsel %vm4934_vm12, %v4982_v45, %v4448_v21  ;;  %v4267_v36 = vadd.s32 144, %v8435_v38  ;;  %v4458_v49 = vmul.u32 24, %v4457_v59  ;;  %v4479_v7 = vshrl.u32 %v8603_v34, 4 }
 0x326   : > { %vm5078_vm13 = vcmp.lt.s32.totalorder %v5030_v56, 16  ;;  %v5129_v12 = vmax.f32 %v8332_v60, 0.0  ;;  %v4469_v2 = vmul.u32 24, %v4468_v54  ;;  %v4490_v11 = vshrl.u32 %v8608_v42, 4 }
 0x327   : > { %v5270_v8 = vsel %vm5078_vm13, %v5126_v62, 0.0  ;;  %v8618_v27 = vmul.u32.u64.low 2863311531, %v4267_v36  ;;  %v8619_v13 = vmul.u32.u64.high 2863311531, %v4267_v36, %v8618_v27  ;;  %v4459_v55 = vsub.s32 %v8574_v52, %v4458_v49 }
 0x328   : > { %5318 = vst.msk [vmem:[#allocation2 + $0x88] sm:$0xff] %vm544_vm2, %v5270_v8  ;;  %v4480_v25 = vmul.u32 24, %v4479_v7  ;;  %v5130_v57 = vmax.f32 %v8339_v6, 0.0  ;;  %v4470_v26 = vsub.s32 %v4264_v29, %v4469_v2  ;;  %v5131_v43 = vmax.f32 %v8329_v15, 0.0 }
 0x329   : > { %v8627_v22 = vadd.s32 152, %v8435_v38  ;;  %v8630_v62 = vadd.s32 160, %v8435_v38  ;;  %vm4839_vm14 = vcmp.ne.s32.totalorder %v4459_v55, 0  ;;  %vm4887_vm15 = vcmp.lt.s32.totalorder %v4459_v55, 0 }
 0x32a   : > { %v4983_v21 = vadd.s32 24, %v4459_v55  ;;  %v4481_v51 = vsub.s32 %v4265_v32, %v4480_v25  ;;  %vm4935_vm0 = vmand %vm4887_vm15, %vm4839_vm14  ;;  %vm4840_vm1 = vcmp.ne.s32.totalorder %v4470_v26, 0  ;;  %vm4888_vm3 = vcmp.lt.s32.totalorder %v4470_v26, 0 }
 0x32b   : > { %v4984_v52 = vadd.s32 24, %v4470_v26  ;;  %v4491_v17 = vmul.u32 24, %v4490_v11  ;;  %vm4936_vm4 = vmand %vm4888_vm3, %vm4840_vm1  ;;  %v4501_v34 = vshrl.u32 %v8619_v13, 4  ;;  %v4270_v18 = vadd.s32 168, %v8435_v38 }
 0x32c   : > { %v5031_v24 = vsel %vm4935_vm0, %v4983_v21, %v4459_v55  ;;  %vm4841_vm5 = vcmp.ne.s32.totalorder %v4481_v51, 0  ;;  %vm4889_vm6 = vcmp.lt.s32.totalorder %v4481_v51, 0  ;;  %v4985_v6 = vadd.s32 24, %v4481_v51 }
 0x32d   : > { %vm5079_vm7 = vcmp.lt.s32.totalorder %v5031_v24, 16  ;;  %v5032_v29 = vsel %vm4936_vm4, %v4984_v52, %v4470_v26  ;;  %vm4937_vm8 = vmand %vm4889_vm6, %vm4841_vm5  ;;  %v4492_v30 = vsub.s32 %v4266_v16, %v4491_v17  ;;  %v4502_v42 = vmul.u32 24, %v4501_v34 }
 0x32e   : > { %v5271_v45 = vsel %vm5079_vm7, %v5127_v19, 0.0  ;;  %vm5080_vm9 = vcmp.lt.s32.totalorder %v5032_v29, 16  ;;  %v5033_v32 = vsel %vm4937_vm8, %v4985_v6, %v4481_v51  ;;  %v5132_v56 = vmax.f32 %v8336_v33, 0.0 }
 0x32f   : > { %5319 = vst.msk [vmem:[#allocation2 + $0x90] sm:$0xff] %vm544_vm2, %v5271_v45  ;;  %v5272_v59 = vsel %vm5080_vm9, %v5128_v0, 0.0  ;;  %vm5081_vm10 = vcmp.lt.s32.totalorder %v5033_v32, 16  ;;  %vm4842_vm11 = vcmp.ne.s32.totalorder %v4492_v30, 0  ;;  %vm4890_vm12 = vcmp.lt.s32.totalorder %v4492_v30, 0 }
 0x330   : > { %5320 = vst.msk [vmem:[#allocation2 + $0x98] sm:$0xff] %vm544_vm2, %v5272_v59  ;;  %v5273_v23 = vsel %vm5081_vm10, %v5129_v12, 0.0  ;;  %vm4938_vm13 = vmand %vm4890_vm12, %vm4842_vm11  ;;  %v4986_v16 = vadd.s32 24, %v4492_v30  ;;  %v8641_v48 = vmul.u32.u64.low 2863311531, %v8627_v22  ;;  %v8642_v19 = vmul.u32.u64.high 2863311531, %v8627_v22, %v8641_v48 }
 0x331   : > { %5321 = vst.msk [vmem:[#allocation2 + $0xa0] sm:$0xff] %vm544_vm2, %v5273_v23  ;;  %v8645_v54 = vmul.u32.u64.low 2863311531, %v8630_v62  ;;  %v8646_v0 = vmul.u32.u64.high 2863311531, %v8630_v62, %v8645_v54  ;;  %v4503_v7 = vsub.s32 %v4267_v36, %v4502_v42  ;;  %v5133_v12 = vmax.f32 %v8348_v46, 0.0 }
 0x332   : > { %v5034_v49 = vsel %vm4938_vm13, %v4986_v16, %v4492_v30  ;;  %v8648_v8 = vmul.u32.u64.low 2863311531, %v4270_v18  ;;  %v8649_v2 = vmul.u32.u64.high 2863311531, %v4270_v18, %v8648_v8  ;;  %v4271_v27 = vadd.s32 176, %v8435_v38 }
 0x333   : > { %vm5082_vm14 = vcmp.lt.s32.totalorder %v5034_v49, 16  ;;  %v4272_v13 = vadd.s32 184, %v8435_v38  ;;  %vm4843_vm15 = vcmp.ne.s32.totalorder %v4503_v7, 0  ;;  %vm4891_vm0 = vcmp.lt.s32.totalorder %v4503_v7, 0 }
 0x334   : > { %v5274_v55 = vsel %vm5082_vm14, %v5130_v57, 0.0  ;;  %v4987_v25 = vadd.s32 24, %v4503_v7  ;;  %vm4939_vm1 = vmand %vm4891_vm0, %vm4843_vm15  ;;  %v4512_v11 = vshrl.u32 %v8642_v19, 4  ;;  %v4523_v36 = vshrl.u32 %v8646_v0, 4 }
 0x335   : > { %5322 = vst.msk [vmem:[#allocation2 + $0xa8] sm:$0xff] %vm544_vm2, %v5274_v55  ;;  %v8657_v26 = vmul.u32.u64.low 2863311531, %v4271_v27  ;;  %v8658_v21 = vmul.u32.u64.high 2863311531, %v4271_v27, %v8657_v26  ;;  %v4534_v46 = vshrl.u32 %v8649_v2, 4  ;;  %v5134_v6 = vmax.f32 %v8355_v5, 0.0 }
 0x336   : > { %v5035_v51 = vsel %vm4939_vm1, %v4987_v25, %v4503_v7  ;;  %v8661_v52 = vmul.u32.u64.low 2863311531, %v4272_v13  ;;  %v8662_v17 = vmul.u32.u64.high 2863311531, %v4272_v13, %v8661_v52  ;;  %v4513_v57 = vmul.u32 24, %v4512_v11 }
 0x337   : > { %vm5083_vm3 = vcmp.lt.s32.totalorder %v5035_v51, 16  ;;  %v4524_v24 = vmul.u32 24, %v4523_v36  ;;  %v4535_v30 = vmul.u32 24, %v4534_v46  ;;  %v5135_v34 = vmax.f32 %v8344_v14, 0.0 }
 0x338   : > { %v5275_v29 = vsel %vm5083_vm3, %v5131_v43, 0.0  ;;  %v4273_v45 = vadd.s32 192, %v8435_v38  ;;  %v4514_v32 = vsub.s32 %v8627_v22, %v4513_v57  ;;  %v4545_v23 = vshrl.u32 %v8658_v21, 4 }
 0x339   : > { %5323 = vst.msk [vmem:[#allocation2 + $0xb0] sm:$0xff] %vm544_vm2, %v5275_v29  ;;  %v4525_v59 = vsub.s32 %v8630_v62, %v4524_v24  ;;  %v5136_v16 = vmax.f32 %v8352_v47, 0.0  ;;  %v4536_v42 = vsub.s32 %v4270_v18, %v4535_v30  ;;  %v4556_v48 = vshrl.u32 %v8662_v17, 4 }
 0x33a   : > { %v8675_v19 = vmul.u32.u64.low 2863311531, %v4273_v45  ;;  %v8676_v43 = vmul.u32.u64.high 2863311531, %v4273_v45, %v8675_v19  ;;  %vm4844_vm4 = vcmp.ne.s32.totalorder %v4514_v32, 0  ;;  %vm4892_vm5 = vcmp.lt.s32.totalorder %v4514_v32, 0 }
 0x33b   : > { %v4988_v54 = vadd.s32 24, %v4514_v32  ;;  %vm4845_vm6 = vcmp.ne.s32.totalorder %v4525_v59, 0  ;;  %vm4940_vm7 = vmand %vm4892_vm5, %vm4844_vm4  ;;  %vm4893_vm8 = vcmp.lt.s32.totalorder %v4525_v59, 0  ;;  %v4989_v0 = vadd.s32 24, %v4525_v59 }
 0x33c   : > { %vm4846_vm9 = vcmp.ne.s32.totalorder %v4536_v42, 0  ;;  %vm4894_vm10 = vcmp.lt.s32.totalorder %v4536_v42, 0  ;;  %vm4941_vm11 = vmand %vm4893_vm8, %vm4845_vm6  ;;  %v4990_v62 = vadd.s32 24, %v4536_v42  ;;  %v4546_v49 = vmul.u32 24, %v4545_v23 }
 0x33d   : > { %v5036_v22 = vsel %vm4940_vm7, %v4988_v54, %v4514_v32  ;;  %v4557_v47 = vmul.u32 24, %v4556_v48  ;;  %v5037_v18 = vsel %vm4941_vm11, %v4989_v0, %v4525_v59  ;;  %vm4942_vm13 = vmand %vm4894_vm10, %vm4846_vm9  ;;  %v4567_v7 = vshrl.u32 %v8676_v43, 4 }
 0x33e   : > { %vm5084_vm12 = vcmp.lt.s32.totalorder %v5036_v22, 16  ;;  %v4274_v8 = vadd.s32 200, %v8435_v38  ;;  %vm5085_vm14 = vcmp.lt.s32.totalorder %v5037_v18, 16  ;;  %v5038_v55 = vsel %vm4942_vm13, %v4990_v62, %v4536_v42 }
 0x33f   : > { %v5276_v2 = vsel %vm5084_vm12, %v5132_v56, 0.0  ;;  %v4547_v25 = vsub.s32 %v4271_v27, %v4546_v49  ;;  %v5277_v11 = vsel %vm5085_vm14, %v5133_v12, 0.0  ;;  %vm5086_vm15 = vcmp.lt.s32.totalorder %v5038_v55, 16 }
 0x340   : > { %5324 = vst.msk [vmem:[#allocation2 + $0xb8] sm:$0xff] %vm544_vm2, %v5276_v2  ;;  %v4558_v36 = vsub.s32 %v4272_v13, %v4557_v47  ;;  %v4568_v26 = vmul.u32 24, %v4567_v7  ;;  %5325 = vst.msk [vmem:[#allocation2 + $0xc0] sm:$0xff] %vm544_vm2, %v5277_v11  ;;  %v5278_v21 = vsel %vm5086_vm15, %v5134_v6, 0.0  ;;  %v4275_v13 = vadd.s32 208, %v8435_v38 }
 0x341   : > { %vm4847_vm0 = vcmp.ne.s32.totalorder %v4547_v25, 0  ;;  %vm4895_vm1 = vcmp.lt.s32.totalorder %v4547_v25, 0  ;;  %v4991_v51 = vadd.s32 24, %v4547_v25  ;;  %5326 = vst.msk [vmem:[#allocation2 + $0xc8] sm:$0xff] %vm544_vm2, %v5278_v21  ;;  %v5137_v6 = vmax.f32 %v8361_v4, 0.0 }
 0x342   : > { %vm4943_vm3 = vmand %vm4895_vm1, %vm4847_vm0  ;;  %vm4848_vm4 = vcmp.ne.s32.totalorder %v4558_v36, 0  ;;  %vm4896_vm5 = vcmp.lt.s32.totalorder %v4558_v36, 0  ;;  %v4992_v56 = vadd.s32 24, %v4558_v36  ;;  %v4569_v46 = vsub.s32 %v4273_v45, %v4568_v26 }
 0x343   : > { %v5039_v27 = vsel %vm4943_vm3, %v4991_v51, %v4547_v25  ;;  %vm4944_vm6 = vmand %vm4896_vm5, %vm4848_vm4  ;;  %v8685_v52 = vmul.u32.u64.low 2863311531, %v4274_v8  ;;  %v8686_v12 = vmul.u32.u64.high 2863311531, %v4274_v8, %v8685_v52  ;;  %v4276_v32 = vadd.s32 216, %v8435_v38 }
 0x344   : > { %vm5087_vm7 = vcmp.lt.s32.totalorder %v5039_v27, 16  ;;  %v5040_v17 = vsel %vm4944_vm6, %v4992_v56, %v4558_v36  ;;  %vm4849_vm8 = vcmp.ne.s32.totalorder %v4569_v46, 0  ;;  %vm4897_vm9 = vcmp.lt.s32.totalorder %v4569_v46, 0 }
 0x345   : > { %v5279_v57 = vsel %vm5087_vm7, %v5135_v34, 0.0  ;;  %vm5088_vm10 = vcmp.lt.s32.totalorder %v5040_v17, 16  ;;  %vm4945_vm11 = vmand %vm4897_vm9, %vm4849_vm8  ;;  %v4993_v24 = vadd.s32 24, %v4569_v46  ;;  %v4578_v23 = vshrl.u32 %v8686_v12, 4 }
 0x346   : > { %5327 = vst.msk [vmem:[#allocation2 + $0xd0] sm:$0xff] %vm544_vm2, %v5279_v57  ;;  %v5280_v29 = vsel %vm5088_vm10, %v5136_v16, 0.0  ;;  %v8691_v30 = vmul.u32.u64.low 2863311531, %v4275_v13  ;;  %v8692_v45 = vmul.u32.u64.high 2863311531, %v4275_v13, %v8691_v30  ;;  %v5138_v34 = vmax.f32 %v8367_v40, 0.0 }
 0x347   : > { %5328 = vst.msk [vmem:[#allocation2 + $0xd8] sm:$0xff] %vm544_vm2, %v5280_v29  ;;  %v5041_v59 = vsel %vm4945_vm11, %v4993_v24, %v4569_v46  ;;  %v4277_v42 = vadd.s32 224, %v8435_v38  ;;  %v5139_v48 = vmax.f32 %v8358_v63, 0.0  ;;  %v4579_v54 = vmul.u32 24, %v4578_v23 }
 0x348   : > { %vm5089_vm12 = vcmp.lt.s32.totalorder %v5041_v59, 16  ;;  %v8700_v19 = vmul.u32.u64.low 2863311531, %v4276_v32  ;;  %v8701_v43 = vmul.u32.u64.high 2863311531, %v4276_v32, %v8700_v19  ;;  %v4589_v62 = vshrl.u32 %v8692_v45, 4 }
 0x349   : > { %v5281_v16 = vsel %vm5089_vm12, %v5137_v6, 0.0  ;;  %v8703_v0 = vmul.u32.u64.low 2863311531, %v4277_v42  ;;  %v8704_v22 = vmul.u32.u64.high 2863311531, %v4277_v42, %v8703_v0  ;;  %v5140_v49 = vmax.f32 %v8364_v35, 0.0 }
 0x34a   : > { %5329 = vst.msk [vmem:[#allocation2 + $0xe0] sm:$0xff] %vm544_vm2, %v5281_v16  ;;  %v4278_v47 = vadd.s32 232, %v8435_v38  ;;  %v4279_v18 = vadd.s32 240, %v8435_v38  ;;  %v4580_v7 = vsub.s32 %v4274_v8, %v4579_v54  ;;  %v5141_v63 = vmax.f32 %v8373_v31, 0.0 }
 0x34b   : > { %v5142_v2 = vmax.f32 %v8379_v61, 0.0  ;;  %v8714_v55 = vadd.s32 248, %v8435_v38  ;;  %v4590_v25 = vmul.u32 24, %v4589_v62  ;;  %v4600_v11 = vshrl.u32 %v8701_v43, 4 }
 0x34c   : > { %v8717_v36 = vmul.u32.u64.low 2863311531, %v4278_v47  ;;  %v8718_v26 = vmul.u32.u64.high 2863311531, %v4278_v47, %v8717_v36  ;;  %vm4850_vm13 = vcmp.ne.s32.totalorder %v4580_v7, 0  ;;  %vm4898_vm14 = vcmp.lt.s32.totalorder %v4580_v7, 0 }
 0x34d   : > { %v4994_v21 = vadd.s32 24, %v4580_v7  ;;  %v4611_v51 = vshrl.u32 %v8704_v22, 4  ;;  %vm4946_vm15 = vmand %vm4898_vm14, %vm4850_vm13  ;;  %v4591_v8 = vsub.s32 %v4275_v13, %v4590_v25  ;;  %v4601_v56 = vmul.u32 24, %v4600_v11 }
 0x34e   : > { %v8721_v46 = vmul.u32.u64.low 2863311531, %v4279_v18  ;;  %v8722_v27 = vmul.u32.u64.high 2863311531, %v4279_v18, %v8721_v46  ;;  %v8725_v17 = vmul.u32.u64.low 2863311531, %v8714_v55  ;;  %v8726_v57 = vmul.u32.u64.high 2863311531, %v8714_v55, %v8725_v17 }
 0x34f   : > { %v5042_v52 = vsel %vm4946_vm15, %v4994_v21, %v4580_v7  ;;  %v4612_v12 = vmul.u32 24, %v4611_v51  ;;  %vm4851_vm1 = vcmp.ne.s32.totalorder %v4591_v8, 0  ;;  %vm4899_vm3 = vcmp.lt.s32.totalorder %v4591_v8, 0 }
 0x350   : > { %vm5090_vm0 = vcmp.lt.s32.totalorder %v5042_v52, 16  ;;  %v4995_v24 = vadd.s32 24, %v4591_v8  ;;  %vm4947_vm4 = vmand %vm4899_vm3, %vm4851_vm1  ;;  %v4602_v29 = vsub.s32 %v4276_v32, %v4601_v56  ;;  %v4622_v13 = vshrl.u32 %v8718_v26, 4 }
 0x351   : > { %v5282_v6 = vsel %vm5090_vm0, %v5138_v34, 0.0  ;;  %v4613_v30 = vsub.s32 %v4277_v42, %v4612_v12  ;;  %v4633_v59 = vshrl.u32 %v8722_v27, 4  ;;  %v5143_v23 = vmax.f32 %v8370_v1, 0.0 }
 0x352   : > { %5330 = vst.msk [vmem:[#allocation2 + $0xe8] sm:$0xff] %vm544_vm2, %v5282_v6  ;;  %v5043_v45 = vsel %vm4947_vm4, %v4995_v24, %v4591_v8  ;;  %v4281_v19 = vadd.s32 256, %v8435_v38  ;;  %vm4852_vm6 = vcmp.ne.s32.totalorder %v4602_v29, 0  ;;  %vm4900_vm7 = vcmp.lt.s32.totalorder %v4602_v29, 0  ;;  %v9228_v24 = vld [vmem:[#allocation33_spill] sm:$0xff] }
 0x353   : > { %vm5091_vm5 = vcmp.lt.s32.totalorder %v5043_v45, 16  ;;  %v4996_v43 = vadd.s32 24, %v4602_v29  ;;  %vm4948_vm8 = vmand %vm4900_vm7, %vm4852_vm6  ;;  %vm4853_vm9 = vcmp.ne.s32.totalorder %v4613_v30, 0  ;;  %vm4901_vm10 = vcmp.lt.s32.totalorder %v4613_v30, 0 }
 0x354   : > { %v5283_v16 = vsel %vm5091_vm5, %v5139_v48, 0.0  ;;  %v4997_v32 = vadd.s32 24, %v4613_v30  ;;  %vm4949_vm11 = vmand %vm4901_vm10, %vm4853_vm9  ;;  %v4623_v42 = vmul.u32 24, %v4622_v13  ;;  %v4634_v54 = vmul.u32 24, %v4633_v59 }
 0x355   : > { %5331 = vst.msk [vmem:[#allocation2 + $0xf0] sm:$0xff] %vm544_vm2, %v5283_v16  ;;  %v5044_v34 = vsel %vm4948_vm8, %v4996_v43, %v4602_v29  ;;  %v4644_v0 = vshrl.u32 %v8726_v57, 4  ;;  %v8735_v62 = vmul.u32.u64.low 2863311531, %v4281_v19  ;;  %v8736_v7 = vmul.u32.u64.high 2863311531, %v4281_v19, %v8735_v62  ;;  %v9230_v16 = vld [vmem:[#allocation30_spill] sm:$0xff] }
 0x356   : > { %vm5092_vm12 = vcmp.lt.s32.totalorder %v5044_v34, 16  ;;  %v5045_v22 = vsel %vm4949_vm11, %v4997_v32, %v4613_v30  ;;  %v4624_v48 = vsub.s32 %v4278_v47, %v4623_v42  ;;  %v4635_v11 = vsub.s32 %v4279_v18, %v4634_v54 }
 0x357   : > { %v5284_v25 = vsel %vm5092_vm12, %v5140_v49, 0.0  ;;  %vm5093_vm13 = vcmp.lt.s32.totalorder %v5045_v22, 16  ;;  %v4645_v26 = vmul.u32 24, %v4644_v0  ;;  %v5144_v21 = vmax.f32 %v8376_v53, 0.0 }
 0x358   : > { %5332 = vst.msk [vmem:[#allocation2 + $0xf8] sm:$0xff] %vm544_vm2, %v5284_v25  ;;  %v5285_v36 = vsel %vm5093_vm13, %v5141_v63, 0.0  ;;  %v4282_v51 = vadd.s32 264, %v8435_v38  ;;  %vm4854_vm14 = vcmp.ne.s32.totalorder %v4624_v48, 0  ;;  %vm4902_vm15 = vcmp.lt.s32.totalorder %v4624_v48, 0 }
 0x359   : > { %5333 = vst.msk [vmem:[#allocation2 + $0x100] sm:$0xff] %vm544_vm2, %v5285_v36  ;;  %v4998_v8 = vadd.s32 24, %v4624_v48  ;;  %vm4855_vm0 = vcmp.ne.s32.totalorder %v4635_v11, 0  ;;  %vm4950_vm1 = vmand %vm4902_vm15, %vm4854_vm14  ;;  %vm4903_vm3 = vcmp.lt.s32.totalorder %v4635_v11, 0  ;;  %v4999_v49 = vadd.s32 24, %v4635_v11 }
 0x35a   : > { %v4646_v47 = vsub.s32 %v8714_v55, %v4645_v26  ;;  %v4655_v18 = vshrl.u32 %v8736_v7, 4  ;;  %vm4951_vm4 = vmand %vm4903_vm3, %vm4855_vm0  ;;  %v8744_v63 = vmul.u32.u64.low 2863311531, %v4282_v51  ;;  %v8745_v46 = vmul.u32.u64.high 2863311531, %v4282_v51, %v8744_v63  ;;  %v9231_v26 = vld [vmem:[#allocation34_spill] sm:$0xff] }
 0x35b   : > { %v5046_v56 = vsel %vm4950_vm1, %v4998_v8, %v4624_v48  ;;  %v4283_v27 = vadd.s32 272, %v8435_v38  ;;  %v5047_v52 = vsel %vm4951_vm4, %v4999_v49, %v4635_v11  ;;  %v5145_v6 = vmax.f32 %v9228_v24, 0.0 }
 0x35c   : > { %vm5094_vm5 = vcmp.lt.s32.totalorder %v5046_v56, 16  ;;  %vm4856_vm6 = vcmp.ne.s32.totalorder %v4646_v47, 0  ;;  %vm4904_vm7 = vcmp.lt.s32.totalorder %v4646_v47, 0  ;;  %vm5095_vm8 = vcmp.lt.s32.totalorder %v5047_v52, 16 }
 0x35d   : > { %v5286_v12 = vsel %vm5094_vm5, %v5142_v2, 0.0  ;;  %vm4952_vm9 = vmand %vm4904_vm7, %vm4856_vm6  ;;  %v5000_v17 = vadd.s32 24, %v4646_v47  ;;  %v4656_v55 = vmul.u32 24, %v4655_v18  ;;  %v5287_v57 = vsel %vm5095_vm8, %v5143_v23, 0.0  ;;  %v9229_v2 = vld [vmem:[#allocation6_spill] sm:$0xff] }
 0x35e   : > { %5334 = vst.msk [vmem:[#allocation2 + $0x108] sm:$0xff] %vm544_vm2, %v5286_v12  ;;  %v8752_v29 = vmul.u32.u64.low 2863311531, %v4283_v27  ;;  %v8753_v30 = vmul.u32.u64.high 2863311531, %v4283_v27, %v8752_v29  ;;  %5335 = vst.msk [vmem:[#allocation2 + $0x110] sm:$0xff] %vm544_vm2, %v5287_v57  ;;  %v4666_v59 = vshrl.u32 %v8745_v46, 4  ;;  %v4284_v61 = vadd.s32 280, %v8435_v38 }
 0x35f   : > { %v5048_v13 = vsel %vm4952_vm9, %v5000_v17, %v4646_v47  ;;  %v4657_v45 = vsub.s32 %v4281_v19, %v4656_v55  ;;  %v5146_v43 = vmax.f32 %v9229_v2, 0.0  ;;  %v5147_v32 = vmax.f32 %v9230_v16, 0.0 }
 0x360   : > { %vm5096_vm10 = vcmp.lt.s32.totalorder %v5048_v13, 16  ;;  %v4285_v23 = vadd.s32 288, %v8435_v38  ;;  %v4667_v54 = vmul.u32 24, %v4666_v59  ;;  %v4677_v19 = vshrl.u32 %v8753_v30, 4  ;;  %v9232_v30 = vld [vmem:[#allocation40_spill] sm:$0xff] }
 0x361   : > { %v5288_v34 = vsel %vm5096_vm10, %v5144_v21, 0.0  ;;  %vm4857_vm11 = vcmp.ne.s32.totalorder %v4657_v45, 0  ;;  %vm4905_vm12 = vcmp.lt.s32.totalorder %v4657_v45, 0  ;;  %v5001_v42 = vadd.s32 24, %v4657_v45 }
 0x362   : > { %5336 = vst.msk [vmem:[#allocation2 + $0x118] sm:$0xff] %vm544_vm2, %v5288_v34  ;;  %vm4953_vm13 = vmand %vm4905_vm12, %vm4857_vm11  ;;  %v8763_v0 = vmul.u32.u64.low 2863311531, %v4284_v61  ;;  %v8764_v22 = vmul.u32.u64.high 2863311531, %v4284_v61, %v8763_v0  ;;  %v8766_v7 = vmul.u32.u64.low 2863311531, %v4285_v23  ;;  %v8767_v25 = vmul.u32.u64.high 2863311531, %v4285_v23, %v8766_v7 }
 0x363   : > { %v5049_v62 = vsel %vm4953_vm13, %v5001_v42, %v4657_v45  ;;  %v4286_v48 = vadd.s32 296, %v8435_v38  ;;  %v4668_v11 = vsub.s32 %v4282_v51, %v4667_v54  ;;  %v4678_v36 = vmul.u32 24, %v4677_v19  ;;  %v9234_v7 = vld [vmem:[#allocation37_spill] sm:$0xff] }
 0x364   : > { %vm5097_vm14 = vcmp.lt.s32.totalorder %v5049_v62, 16  ;;  %v5148_v21 = vmax.f32 %v9231_v26, 0.0  ;;  %v4287_v18 = vadd.s32 304, %v8435_v38  ;;  %v4688_v46 = vshrl.u32 %v8764_v22, 4 }
 0x365   : > { %v5289_v8 = vsel %vm5097_vm14, %v5145_v6, 0.0  ;;  %v8771_v49 = vmul.u32.u64.low 2863311531, %v4286_v48  ;;  %v8772_v47 = vmul.u32.u64.high 2863311531, %v4286_v48, %v8771_v49  ;;  %vm4858_vm15 = vcmp.ne.s32.totalorder %v4668_v11, 0 }
 0x366   : > { %5337 = vst.msk [vmem:[#allocation2 + $0x120] sm:$0xff] %vm544_vm2, %v5289_v8  ;;  %vm4906_vm0 = vcmp.lt.s32.totalorder %v4668_v11, 0  ;;  %v5002_v56 = vadd.s32 24, %v4668_v11  ;;  %v4679_v63 = vsub.s32 %v4283_v27, %v4678_v36  ;;  %v4699_v51 = vshrl.u32 %v8767_v25, 4 }
 0x367   : > { %vm4954_vm1 = vmand %vm4906_vm0, %vm4858_vm15  ;;  %v8778_v52 = vmul.u32.u64.low 2863311531, %v4287_v18  ;;  %v8779_v12 = vmul.u32.u64.high 2863311531, %v4287_v18, %v8778_v52  ;;  %v4689_v57 = vmul.u32 24, %v4688_v46  ;;  %v4710_v6 = vshrl.u32 %v8772_v47, 4 }
 0x368   : > { %v5050_v17 = vsel %vm4954_vm1, %v5002_v56, %v4668_v11  ;;  %vm4859_vm3 = vcmp.ne.s32.totalorder %v4679_v63, 0  ;;  %vm4907_vm4 = vcmp.lt.s32.totalorder %v4679_v63, 0  ;;  %v5003_v55 = vadd.s32 24, %v4679_v63 }
 0x369   : > { %vm5098_vm5 = vcmp.lt.s32.totalorder %v5050_v17, 16  ;;  %vm4955_vm6 = vmand %vm4907_vm4, %vm4859_vm3  ;;  %v4700_v24 = vmul.u32 24, %v4699_v51  ;;  %v5149_v13 = vmax.f32 %v9232_v30, 0.0  ;;  %v4288_v45 = vadd.s32 312, %v8435_v38  ;;  %v9235_v17 = vld [vmem:[#allocation17_spill] sm:$0xff]  ;;  %v9236_v30 = vld [vmem:[#allocation8_spill] sm:$0xff] }
 0x36a   : > { %v5290_v29 = vsel %vm5098_vm5, %v5146_v43, 0.0  ;;  %v5051_v27 = vsel %vm4955_vm6, %v5003_v55, %v4679_v63  ;;  %v4690_v59 = vsub.s32 %v4284_v61, %v4689_v57  ;;  %v4711_v16 = vmul.u32 24, %v4710_v6 }
 0x36b   : > { %5338 = vst.msk [vmem:[#allocation2 + $0x128] sm:$0xff] %vm544_vm2, %v5290_v29  ;;  %vm5099_vm7 = vcmp.lt.s32.totalorder %v5051_v27, 16  ;;  %v4701_v2 = vsub.s32 %v4285_v23, %v4700_v24  ;;  %v4721_v42 = vshrl.u32 %v8779_v12, 4  ;;  %v9233_v23 = vld [vmem:[#allocation18_spill] sm:$0xff]  ;;  %v5151_v25 = vmax.f32 %v9234_v7, 0.0 }
 0x36c   : > { %v5291_v34 = vsel %vm5099_vm7, %v5147_v32, 0.0  ;;  %v8786_v54 = vmul.u32.u64.low 2863311531, %v4288_v45  ;;  %v8787_v19 = vmul.u32.u64.high 2863311531, %v4288_v45, %v8786_v54  ;;  %vm4860_vm8 = vcmp.ne.s32.totalorder %v4690_v59, 0 }
 0x36d   : > { %5339 = vst.msk [vmem:[#allocation2 + $0x130] sm:$0xff] %vm544_vm2, %v5291_v34  ;;  %vm4908_vm9 = vcmp.lt.s32.totalorder %v4690_v59, 0  ;;  %v5004_v43 = vadd.s32 24, %v4690_v59  ;;  %vm4861_vm10 = vcmp.ne.s32.totalorder %v4701_v2, 0  ;;  %vm4909_vm12 = vcmp.lt.s32.totalorder %v4701_v2, 0 }
 0x36e   : > { %vm4956_vm11 = vmand %vm4908_vm9, %vm4860_vm8  ;;  %v5005_v0 = vadd.s32 24, %v4701_v2  ;;  %v4712_v22 = vsub.s32 %v4286_v48, %v4711_v16  ;;  %v4722_v62 = vmul.u32 24, %v4721_v42  ;;  %v5150_v32 = vmax.f32 %v9233_v23, 0.0 }
 0x36f   : > { %v5052_v61 = vsel %vm4956_vm11, %v5004_v43, %v4690_v59  ;;  %vm4957_vm13 = vmand %vm4909_vm12, %vm4861_vm10  ;;  %v4289_v11 = vadd.s32 320, %v8435_v38  ;;  %v4732_v47 = vshrl.u32 %v8787_v19, 4  ;;  %v4290_v52 = vadd.s32 328, %v8435_v38 }
 0x370   : > { %vm5100_vm14 = vcmp.lt.s32.totalorder %v5052_v61, 16  ;;  %v5053_v36 = vsel %vm4957_vm13, %v5005_v0, %v4701_v2  ;;  %vm4862_vm15 = vcmp.ne.s32.totalorder %v4712_v22, 0  ;;  %vm4910_vm0 = vcmp.lt.s32.totalorder %v4712_v22, 0 }
 0x371   : > { %v5292_v26 = vsel %vm5100_vm14, %v5148_v21, 0.0  ;;  %vm5101_vm1 = vcmp.lt.s32.totalorder %v5053_v36, 16  ;;  %vm4958_vm3 = vmand %vm4910_vm0, %vm4862_vm15  ;;  %v5006_v8 = vadd.s32 24, %v4712_v22  ;;  %v4723_v49 = vsub.s32 %v4287_v18, %v4722_v62 }
 0x372   : > { %5340 = vst.msk [vmem:[#allocation2 + $0x138] sm:$0xff] %vm544_vm2, %v5292_v26  ;;  %v5293_v48 = vsel %vm5101_vm1, %v5149_v13, 0.0  ;;  %v8795_v56 = vmul.u32.u64.low 2863311531, %v4289_v11  ;;  %v8796_v63 = vmul.u32.u64.high 2863311531, %v4289_v11, %v8795_v56  ;;  %v4733_v21 = vmul.u32 24, %v4732_v47 }
 0x373   : > { %5341 = vst.msk [vmem:[#allocation2 + $0x140] sm:$0xff] %vm544_vm2, %v5293_v48  ;;  %v5054_v46 = vsel %vm4958_vm3, %v5006_v8, %v4712_v22  ;;  %vm4863_vm4 = vcmp.ne.s32.totalorder %v4723_v49, 0  ;;  %vm4911_vm5 = vcmp.lt.s32.totalorder %v4723_v49, 0  ;;  %v5007_v51 = vadd.s32 24, %v4723_v49  ;;  %v9237_v22 = vld [vmem:[#allocation20_spill] sm:$0xff]  ;;  %v9239_v48 = vld [vmem:[#allocation19_spill] sm:$0xff] }
 0x374   : > { %vm5102_vm6 = vcmp.lt.s32.totalorder %v5054_v46, 16  ;;  %vm4959_vm7 = vmand %vm4911_vm5, %vm4863_vm4  ;;  %v5152_v55 = vmax.f32 %v9235_v17, 0.0  ;;  %v4291_v57 = vadd.s32 336, %v8435_v38  ;;  %v4734_v24 = vsub.s32 %v4288_v45, %v4733_v21 }
 0x375   : > { %v5294_v18 = vsel %vm5102_vm6, %v5150_v32, 0.0  ;;  %v5055_v12 = vsel %vm4959_vm7, %v5007_v51, %v4723_v49  ;;  %v4743_v6 = vshrl.u32 %v8796_v63, 4  ;;  %v4292_v29 = vadd.s32 344, %v8435_v38  ;;  %v9238_v32 = vld [vmem:[#allocation7_spill] sm:$0xff] }
 0x376   : > { %5342 = vst.msk [vmem:[#allocation2 + $0x148] sm:$0xff] %vm544_vm2, %v5294_v18  ;;  %vm5103_vm8 = vcmp.lt.s32.totalorder %v5055_v12, 16  ;;  %v5153_v13 = vmax.f32 %v9236_v30, 0.0  ;;  %v8806_v59 = vmul.u32.u64.low 2863311531, %v4290_v52  ;;  %v8807_v2 = vmul.u32.u64.high 2863311531, %v4290_v52, %v8806_v59 }
 0x377   : > { %v5295_v27 = vsel %vm5103_vm8, %v5151_v25, 0.0  ;;  %vm4864_vm9 = vcmp.ne.s32.totalorder %v4734_v24, 0  ;;  %vm4912_vm10 = vcmp.lt.s32.totalorder %v4734_v24, 0  ;;  %v5008_v16 = vadd.s32 24, %v4734_v24 }
 0x378   : > { %5343 = vst.msk [vmem:[#allocation2 + $0x150] sm:$0xff] %vm544_vm2, %v5295_v27  ;;  %v4744_v34 = vmul.u32 24, %v4743_v6  ;;  %vm4960_vm11 = vmand %vm4912_vm10, %vm4864_vm9  ;;  %v8810_v42 = vmul.u32.u64.low 2863311531, %v4291_v57  ;;  %v8811_v54 = vmul.u32.u64.high 2863311531, %v4291_v57, %v8810_v42  ;;  %v5154_v62 = vmax.f32 %v9237_v22, 0.0 }
 0x379   : > { %v8813_v45 = vmul.u32.u64.low 2863311531, %v4292_v29  ;;  %v8814_v19 = vmul.u32.u64.high 2863311531, %v4292_v29, %v8813_v45  ;;  %v5056_v43 = vsel %vm4960_vm11, %v5008_v16, %v4734_v24  ;;  %v4293_v61 = vadd.s32 352, %v8435_v38 }
 0x37a   : > { %v4745_v0 = vsub.s32 %v4289_v11, %v4744_v34  ;;  %vm5104_vm12 = vcmp.lt.s32.totalorder %v5056_v43, 16  ;;  %v4754_v23 = vshrl.u32 %v8807_v2, 4  ;;  %v5155_v7 = vmax.f32 %v9238_v32, 0.0 }
 0x37b   : > { %v8821_v25 = vadd.s32 360, %v8435_v38  ;;  %v5296_v36 = vsel %vm5104_vm12, %v5152_v55, 0.0  ;;  %v4765_v8 = vshrl.u32 %v8811_v54, 4  ;;  %v4776_v49 = vshrl.u32 %v8814_v19, 4  ;;  %v9240_v19 = vld [vmem:[#allocation22_spill] sm:$0xff] }
 0x37c   : > { %vm4865_vm13 = vcmp.ne.s32.totalorder %v4745_v0, 0  ;;  %vm4913_vm14 = vcmp.lt.s32.totalorder %v4745_v0, 0  ;;  %v5009_v26 = vadd.s32 24, %v4745_v0  ;;  %5344 = vst.msk [vmem:[#allocation2 + $0x158] sm:$0xff] %vm544_vm2, %v5296_v36  ;;  %v4755_v11 = vmul.u32 24, %v4754_v23 }
 0x37d   : > { %vm4961_vm15 = vmand %vm4913_vm14, %vm4865_vm13  ;;  %v5156_v47 = vmax.f32 %v9239_v48, 0.0  ;;  %v8827_v63 = vmul.u32.u64.low 2863311531, %v4293_v61  ;;  %v8828_v46 = vmul.u32.u64.high 2863311531, %v4293_v61, %v8827_v63  ;;  %v4295_v51 = vadd.s32 368, %v8435_v38 }
 0x37e   : > { %v5057_v56 = vsel %vm4961_vm15, %v5009_v26, %v4745_v0  ;;  %v4756_v21 = vsub.s32 %v4290_v52, %v4755_v11  ;;  %v4766_v18 = vmul.u32 24, %v4765_v8  ;;  %v4777_v12 = vmul.u32 24, %v4776_v49 }
 0x37f   : > { %vm5105_vm0 = vcmp.lt.s32.totalorder %v5057_v56, 16  ;;  %v8832_v55 = vmul.u32.u64.low 2863311531, %v8821_v25  ;;  %v8833_v24 = vmul.u32.u64.high 2863311531, %v8821_v25, %v8832_v55  ;;  %v8836_v6 = vadd.s32 376, %v8435_v38  ;;  %v9242_v56 = vld [vmem:[#allocation21_spill] sm:$0xff] }
 0x380   : > { %v5297_v17 = vsel %vm5105_vm0, %v5153_v13, 0.0  ;;  %vm4866_vm1 = vcmp.ne.s32.totalorder %v4756_v21, 0  ;;  %vm4914_vm3 = vcmp.lt.s32.totalorder %v4756_v21, 0  ;;  %v5010_v27 = vadd.s32 24, %v4756_v21 }
 0x381   : > { %5345 = vst.msk [vmem:[#allocation2 + $0x160] sm:$0xff] %vm544_vm2, %v5297_v17  ;;  %v4767_v30 = vsub.s32 %v4291_v57, %v4766_v18  ;;  %vm4962_vm4 = vmand %vm4914_vm3, %vm4866_vm1  ;;  %v4778_v59 = vsub.s32 %v4292_v29, %v4777_v12  ;;  %v4787_v52 = vshrl.u32 %v8828_v46, 4  ;;  %v4798_v29 = vshrl.u32 %v8833_v24, 4 }
 0x382   : > { %v8840_v2 = vmul.u32.u64.low 2863311531, %v4295_v51  ;;  %v8841_v16 = vmul.u32.u64.high 2863311531, %v4295_v51, %v8840_v2  ;;  %v5058_v13 = vsel %vm4962_vm4, %v5010_v27, %v4756_v21  ;;  %v5157_v43 = vmax.f32 %v9240_v19, 0.0 }
 0x383   : > { %vm4867_vm5 = vcmp.ne.s32.totalorder %v4767_v30, 0  ;;  %vm4915_vm6 = vcmp.lt.s32.totalorder %v4767_v30, 0  ;;  %v5011_v34 = vadd.s32 24, %v4767_v30  ;;  %vm5106_vm7 = vcmp.lt.s32.totalorder %v5058_v13, 16 }
 0x384   : > { %vm4963_vm8 = vmand %vm4915_vm6, %vm4867_vm5  ;;  %vm4868_vm9 = vcmp.ne.s32.totalorder %v4778_v59, 0  ;;  %vm4916_vm10 = vcmp.lt.s32.totalorder %v4778_v59, 0  ;;  %v5012_v38 = vadd.s32 24, %v4778_v59  ;;  %v5298_v42 = vsel %vm5106_vm7, %v5154_v62, 0.0 }
 0x385   : > { %v5059_v54 = vsel %vm4963_vm8, %v5011_v34, %v4767_v30  ;;  %vm4964_vm11 = vmand %vm4916_vm10, %vm4868_vm9  ;;  %v4788_v57 = vmul.u32 24, %v4787_v52  ;;  %5346 = vst.msk [vmem:[#allocation2 + $0x168] sm:$0xff] %vm544_vm2, %v5298_v42  ;;  %v4809_v0 = vshrl.u32 %v8841_v16, 4  ;;  %v4799_v32 = vmul.u32 24, %v4798_v29 }
 0x386   : > { %vm5107_vm12 = vcmp.lt.s32.totalorder %v5059_v54, 16  ;;  %v5060_v45 = vsel %vm4964_vm11, %v5012_v38, %v4778_v59  ;;  %v8849_v26 = vmul.u32.u64.low 2863311531, %v8836_v6  ;;  %v8850_v11 = vmul.u32.u64.high 2863311531, %v8836_v6, %v8849_v26  ;;  %v9243_v59 = vld [vmem:[#allocation9_spill] sm:$0xff] }
 0x387   : > { %v5299_v22 = vsel %vm5107_vm12, %v5155_v7, 0.0  ;;  %vm5108_vm13 = vcmp.lt.s32.totalorder %v5060_v45, 16  ;;  %v4789_v23 = vsub.s32 %v4293_v61, %v4788_v57  ;;  %v4810_v36 = vmul.u32 24, %v4809_v0  ;;  %v9241_v7 = vld [vmem:[#allocation10_spill] sm:$0xff] }
 0x388   : > { %5347 = vst.msk [vmem:[#allocation2 + $0x170] sm:$0xff] %vm544_vm2, %v5299_v22  ;;  %v5300_v62 = vsel %vm5108_vm13, %v5156_v47, 0.0  ;;  %v4800_v49 = vsub.s32 %v8821_v25, %v4799_v32  ;;  %v5158_v48 = vmax.f32 %v9241_v7, 0.0  ;;  %v5159_v63 = vmax.f32 %v9242_v56, 0.0 }
 0x389   : > { %5348 = vst.msk [vmem:[#allocation2 + $0x178] sm:$0xff] %vm544_vm2, %v5300_v62  ;;  %vm4869_vm14 = vcmp.ne.s32.totalorder %v4789_v23, 0  ;;  %vm4917_vm15 = vcmp.lt.s32.totalorder %v4789_v23, 0  ;;  %v5013_v8 = vadd.s32 24, %v4789_v23  ;;  %v4811_v61 = vsub.s32 %v4295_v51, %v4810_v36 }
 0x38a   : > { %vm4965_vm0 = vmand %vm4917_vm15, %vm4869_vm14  ;;  %vm4870_vm1 = vcmp.ne.s32.totalorder %v4800_v49, 0  ;;  %vm4918_vm3 = vcmp.lt.s32.totalorder %v4800_v49, 0  ;;  %v5014_v47 = vadd.s32 24, %v4800_v49  ;;  %v4820_v25 = vshrl.u32 %v8850_v11, 4 }
 0x38b   : > { %v5061_v46 = vsel %vm4965_vm0, %v5013_v8, %v4789_v23  ;;  %vm4966_vm5 = vmand %vm4918_vm3, %vm4870_vm1  ;;  %vm4871_vm6 = vcmp.ne.s32.totalorder %v4811_v61, 0  ;;  %vm4919_vm7 = vcmp.lt.s32.totalorder %v4811_v61, 0  ;;  %v5015_v21 = vadd.s32 24, %v4811_v61 }
 0x38c   : > { %vm5109_vm4 = vcmp.lt.s32.totalorder %v5061_v46, 16  ;;  %v5062_v12 = vsel %vm4966_vm5, %v5014_v47, %v4800_v49  ;;  %vm4967_vm8 = vmand %vm4919_vm7, %vm4871_vm6  ;;  %v4821_v55 = vmul.u32 24, %v4820_v25  ;;  %v5160_v52 = vmax.f32 %v9243_v59, 0.0 }
 0x38d   : > { %v5301_v18 = vsel %vm5109_vm4, %v5157_v43, 0.0  ;;  %vm5110_vm9 = vcmp.lt.s32.totalorder %v5062_v12, 16  ;;  %v5063_v51 = vsel %vm4967_vm8, %v5015_v21, %v4811_v61 }
 0x38e   : > { %5349 = vst.msk [vmem:[#allocation2 + $0x180] sm:$0xff] %vm544_vm2, %v5301_v18  ;;  %v5302_v17 = vsel %vm5110_vm9, %v5158_v48, 0.0  ;;  %vm5111_vm10 = vcmp.lt.s32.totalorder %v5063_v51, 16  ;;  %v4822_v27 = vsub.s32 %v8836_v6, %v4821_v55 }
 0x38f   : > { %5350 = vst.msk [vmem:[#allocation2 + $0x188] sm:$0xff] %vm544_vm2, %v5302_v17  ;;  %v5303_v24 = vsel %vm5111_vm10, %v5159_v63, 0.0 }
 0x390   : > { %5351 = vst.msk [vmem:[#allocation2 + $0x190] sm:$0xff] %vm544_vm2, %v5303_v24  ;;  %vm4872_vm11 = vcmp.ne.s32.totalorder %v4822_v27, 0  ;;  %vm4920_vm12 = vcmp.lt.s32.totalorder %v4822_v27, 0  ;;  %v5016_v30 = vadd.s32 24, %v4822_v27 }
 0x391   : > { %vm4968_vm13 = vmand %vm4920_vm12, %vm4872_vm11 }
 0x392   : > { %v5064_v2 = vsel %vm4968_vm13, %v5016_v30, %v4822_v27 }
 0x393   : > { %vm5112_vm14 = vcmp.lt.s32.totalorder %v5064_v2, 16 }
 0x394   : > { %v5304_v16 = vsel %vm5112_vm14, %v5160_v52, 0.0 }
 0x395   : > { %5352 = vst.msk [vmem:[#allocation2 + $0x198] sm:$0xff] %vm544_vm2, %v5304_v16 }
 0x396 PF: > { %p5862_p7 = scmp.ne.s32.totalorder %s7230_s15, 5 }
 0x397   : > { %v5357_v6 = vld [vmem:[%s7392_s23] sm:$0xff] (!%p5862_p7)  ;;  %vm5421_vm15 = vcmask (!%p5862_p7), 7168   ;;  %v5358_v13 = vld [vmem:[%s7392_s23 + $0x8] sm:$0xff] (!%p5862_p7)  ;;  %v5359_v34 = vld [vmem:[%s7392_s23 + $0x10] sm:$0xff] (!%p5862_p7) }
 0x398   : > { %5356 = sbr.rel (%p5862_p7) target bundleno = 940 (0x3ac), region = 48  ;;  %v5389_v38 = vsub.f32 (!%p5862_p7), %v5357_v6, %v8284_v10  ;;  %v5390_v42 = vsub.f32 (!%p5862_p7), %v5358_v13, %v8290_v9  ;;  %v5391_v54 = vsub.f32 (!%p5862_p7), %v5359_v34, %v8287_v28  ;;  %v5360_v57 = vld [vmem:[%s7392_s23 + $0x18] sm:$0xff] (!%p5862_p7)  ;;  %v5361_v29 = vld [vmem:[%s7392_s23 + $0x20] sm:$0xff] (!%p5862_p7)  ;;  %v5362_v45 = vld [vmem:[%s7392_s23 + $0x28] sm:$0xff] (!%p5862_p7) }
 0x399   : > { %v5392_v19 = vsub.f32 (!%p5862_p7), %v5360_v57, %v8296_v37  ;;  %v5393_v43 = vsub.f32 (!%p5862_p7), %v5361_v29, %v8293_v20  ;;  %v5394_v0 = vsub.f32 (!%p5862_p7), %v5362_v45, %v8299_v50  ;;  %v5363_v10 = vld [vmem:[%s7392_s23 + $0x30] sm:$0xff] (!%p5862_p7)  ;;  %v5364_v22 = vld [vmem:[%s7392_s23 + $0x38] sm:$0xff] (!%p5862_p7)  ;;  %v5365_v9 = vld [vmem:[%s7392_s23 + $0x40] sm:$0xff] (!%p5862_p7) }
 0x39a   : > { %5422 = vst.msk [vmem:[%s7401_s4] sm:$0xff] (!%p5862_p7), %vm5421_vm15, %v5389_v38  ;;  %5423 = vst.msk [vmem:[%s7401_s4 + $0x8] sm:$0xff] (!%p5862_p7), %vm5421_vm15, %v5390_v42  ;;  %v5395_v28 = vsub.f32 (!%p5862_p7), %v5363_v10, %v8314_v58  ;;  %v5396_v20 = vsub.f32 (!%p5862_p7), %v5364_v22, %v8305_v3  ;;  %v5397_v37 = vsub.f32 (!%p5862_p7), %v5365_v9, %v8320_v39  ;;  %v5366_v50 = vld [vmem:[%s7392_s23 + $0x48] sm:$0xff] (!%p5862_p7)  ;;  %v5367_v23 = vld [vmem:[%s7392_s23 + $0x50] sm:$0xff] (!%p5862_p7) }
 0x39b   : > { %5424 = vst.msk [vmem:[%s7401_s4 + $0x10] sm:$0xff] (!%p5862_p7), %vm5421_vm15, %v5391_v54  ;;  %v5368_v32 = vld [vmem:[%s7392_s23 + $0x58] sm:$0xff] (!%p5862_p7)  ;;  %5425 = vst.msk [vmem:[%s7401_s4 + $0x18] sm:$0xff] (!%p5862_p7), %vm5421_vm15, %v5392_v19  ;;  %v5398_v58 = vsub.f32 (!%p5862_p7), %v5366_v50, %v8326_v44  ;;  %v5399_v3 = vsub.f32 (!%p5862_p7), %v5367_v23, %v8323_v41  ;;  %v5369_v62 = vld [vmem:[%s7392_s23 + $0x60] sm:$0xff] (!%p5862_p7) }
 0x39c   : > { %5426 = vst.msk [vmem:[%s7401_s4 + $0x20] sm:$0xff] (!%p5862_p7), %vm5421_vm15, %v5393_v43  ;;  %5427 = vst.msk [vmem:[%s7401_s4 + $0x28] sm:$0xff] (!%p5862_p7), %vm5421_vm15, %v5394_v0  ;;  %v5400_v39 = vsub.f32 (!%p5862_p7), %v5368_v32, %v8332_v60  ;;  %v5370_v36 = vld [vmem:[%s7392_s23 + $0x68] sm:$0xff] (!%p5862_p7)  ;;  %v5371_v26 = vld [vmem:[%s7392_s23 + $0x70] sm:$0xff] (!%p5862_p7)  ;;  %v5401_v44 = vsub.f32 (!%p5862_p7), %v5369_v62, %v8329_v15 }
 0x39d   : > { %5428 = vst.msk [vmem:[%s7401_s4 + $0x30] sm:$0xff] (!%p5862_p7), %vm5421_vm15, %v5395_v28  ;;  %5429 = vst.msk [vmem:[%s7401_s4 + $0x38] sm:$0xff] (!%p5862_p7), %vm5421_vm15, %v5396_v20  ;;  %v5402_v41 = vsub.f32 (!%p5862_p7), %v5370_v36, %v8336_v33  ;;  %v5403_v60 = vsub.f32 (!%p5862_p7), %v5371_v26, %v8355_v5  ;;  %v5372_v11 = vld [vmem:[%s7392_s23 + $0x78] sm:$0xff] (!%p5862_p7)  ;;  %v5373_v8 = vld [vmem:[%s7392_s23 + $0x80] sm:$0xff] (!%p5862_p7) }
 0x39e   : > { %5430 = vst.msk [vmem:[%s7401_s4 + $0x40] sm:$0xff] (!%p5862_p7), %vm5421_vm15, %v5397_v37  ;;  %v5374_v49 = vld [vmem:[%s7392_s23 + $0x88] sm:$0xff] (!%p5862_p7)  ;;  %5431 = vst.msk [vmem:[%s7401_s4 + $0x48] sm:$0xff] (!%p5862_p7), %vm5421_vm15, %v5398_v58  ;;  %v5404_v15 = vsub.f32 (!%p5862_p7), %v5372_v11, %v8344_v14  ;;  %v5405_v33 = vsub.f32 (!%p5862_p7), %v5373_v8, %v8361_v4  ;;  %v5375_v7 = vld [vmem:[%s7392_s23 + $0x90] sm:$0xff] (!%p5862_p7) }
 0x39f   : > { %5432 = vst.msk [vmem:[%s7401_s4 + $0x50] sm:$0xff] %vm5421_vm15, %v5399_v3  ;;  %5433 = vst.msk [vmem:[%s7401_s4 + $0x58] sm:$0xff] %vm5421_vm15, %v5400_v39  ;;  %v5406_v5 = vsub.f32 %v5374_v49, %v8367_v40  ;;  %v5376_v48 = vld [vmem:[%s7392_s23 + $0x98] sm:$0xff]  ;;  %v5377_v61 = vld [vmem:[%s7392_s23 + $0xa0] sm:$0xff]  ;;  %v5407_v14 = vsub.f32 %v5375_v7, %v8364_v35 }
 0x3a0   : > { %5434 = vst.msk [vmem:[%s7401_s4 + $0x60] sm:$0xff] %vm5421_vm15, %v5401_v44  ;;  %5435 = vst.msk [vmem:[%s7401_s4 + $0x68] sm:$0xff] %vm5421_vm15, %v5402_v41  ;;  %v5408_v4 = vsub.f32 %v5376_v48, %v8373_v31  ;;  %v5409_v40 = vsub.f32 %v5377_v61, %v8370_v1  ;;  %v5378_v56 = vld [vmem:[%s7392_s23 + $0xa8] sm:$0xff]  ;;  %v5379_v63 = vld [vmem:[%s7392_s23 + $0xb0] sm:$0xff] }
 0x3a1   : > { %5436 = vst.msk [vmem:[%s7401_s4 + $0x70] sm:$0xff] %vm5421_vm15, %v5403_v60  ;;  %v5380_v46 = vld [vmem:[%s7392_s23 + $0xb8] sm:$0xff]  ;;  %5437 = vst.msk [vmem:[%s7401_s4 + $0x78] sm:$0xff] %vm5421_vm15, %v5404_v15  ;;  %v5410_v35 = vsub.f32 %v5378_v56, %v8376_v53  ;;  %v9244_v47 = vld [vmem:[#allocation6_spill] sm:$0xff] }
 0x3a2   : > { %5438 = vst.msk [vmem:[%s7401_s4 + $0x80] sm:$0xff] %vm5421_vm15, %v5405_v33  ;;  %5439 = vst.msk [vmem:[%s7401_s4 + $0x88] sm:$0xff] %vm5421_vm15, %v5406_v5  ;;  %v5411_v31 = vsub.f32 %v5379_v63, %v9244_v47  ;;  %v9245_v21 = vld [vmem:[#allocation30_spill] sm:$0xff]  ;;  %v5382_v12 = vld [vmem:[%s7392_s23 + $0xc8] sm:$0xff] }
 0x3a3   : > { %v5412_v1 = vsub.f32 %v5380_v46, %v9245_v21  ;;  %v5381_v18 = vld [vmem:[%s7392_s23 + $0xc0] sm:$0xff]  ;;  %v5383_v25 = vld [vmem:[%s7392_s23 + $0xd0] sm:$0xff]  ;;  %5440 = vst.msk [vmem:[%s7401_s4 + $0x90] sm:$0xff] %vm5421_vm15, %v5407_v14  ;;  %5441 = vst.msk [vmem:[%s7401_s4 + $0x98] sm:$0xff] %vm5421_vm15, %v5408_v4 }
 0x3a4   : > { %5442 = vst.msk [vmem:[%s7401_s4 + $0xa0] sm:$0xff] %vm5421_vm15, %v5409_v40  ;;  %v9246_v51 = vld [vmem:[#allocation40_spill] sm:$0xff]  ;;  %v9247_v17 = vld [vmem:[#allocation18_spill] sm:$0xff]  ;;  %v9248_v24 = vld [vmem:[#allocation17_spill] sm:$0xff] }
 0x3a5   : > { %v5413_v53 = vsub.f32 %v5381_v18, %v9246_v51  ;;  %v5414_v55 = vsub.f32 %v5382_v12, %v9247_v17  ;;  %v5415_v27 = vsub.f32 %v5383_v25, %v9248_v24  ;;  %v5384_v30 = vld [vmem:[%s7392_s23 + $0xd8] sm:$0xff]  ;;  %v5385_v59 = vld [vmem:[%s7392_s23 + $0xe0] sm:$0xff]  ;;  %v5386_v52 = vld [vmem:[%s7392_s23 + $0xe8] sm:$0xff]  ;;  %5443 = vst.msk [vmem:[%s7401_s4 + $0xa8] sm:$0xff] %vm5421_vm15, %v5410_v35 }
 0x3a6   : > { %5444 = vst.msk [vmem:[%s7401_s4 + $0xb0] sm:$0xff] %vm5421_vm15, %v5411_v31  ;;  %5445 = vst.msk [vmem:[%s7401_s4 + $0xb8] sm:$0xff] %vm5421_vm15, %v5412_v1  ;;  %v9249_v2 = vld [vmem:[#allocation8_spill] sm:$0xff]  ;;  %v9250_v6 = vld [vmem:[#allocation7_spill] sm:$0xff] }
 0x3a7   : > { %v5416_v16 = vsub.f32 %v5384_v30, %v9249_v2  ;;  %v5417_v13 = vsub.f32 %v5385_v59, %v9250_v6  ;;  %v9251_v34 = vld [vmem:[#allocation19_spill] sm:$0xff]  ;;  %v5387_v42 = vld [vmem:[%s7392_s23 + $0xf0] sm:$0xff]  ;;  %v5388_v54 = vld [vmem:[%s7392_s23 + $0xf8] sm:$0xff]  ;;  %5446 = vst.msk [vmem:[%s7401_s4 + $0xc0] sm:$0xff] %vm5421_vm15, %v5413_v53 }
 0x3a8   : > { %v5418_v38 = vsub.f32 %v5386_v52, %v9251_v34  ;;  %5447 = vst.msk [vmem:[%s7401_s4 + $0xc8] sm:$0xff] %vm5421_vm15, %v5414_v55  ;;  %5448 = vst.msk [vmem:[%s7401_s4 + $0xd0] sm:$0xff] %vm5421_vm15, %v5415_v27  ;;  %v9252_v57 = vld [vmem:[#allocation10_spill] sm:$0xff]  ;;  %v9253_v45 = vld [vmem:[#allocation21_spill] sm:$0xff] }
 0x3a9   : > { %v5419_v29 = vsub.f32 %v5387_v42, %v9252_v57  ;;  %v5420_v19 = vsub.f32 %v5388_v54, %v9253_v45  ;;  %5449 = vst.msk [vmem:[%s7401_s4 + $0xd8] sm:$0xff] %vm5421_vm15, %v5416_v16  ;;  %5450 = vst.msk [vmem:[%s7401_s4 + $0xe0] sm:$0xff] %vm5421_vm15, %v5417_v13 }
 0x3aa   : > { %5451 = vst.msk [vmem:[%s7401_s4 + $0xe8] sm:$0xff] %vm5421_vm15, %v5418_v38 }
 0x3ab   : > { %5452 = vst.msk [vmem:[%s7401_s4 + $0xf0] sm:$0xff] %vm5421_vm15, %v5419_v29  ;;  %5453 = vst.msk [vmem:[%s7401_s4 + $0xf8] sm:$0xff] %vm5421_vm15, %v5420_v19 }
 0x3ac PF: > { %s16_s19 = sadd.s32 1, %s7246_s19   ;;  %s9254_s12 = smov %s7222_s13 }
 0x3ad   : > { %p13_p8 = scmp.ge.s32.totalorder %s16_s19, 14   ;;  %s9255_s13 = smov %s7226_s14 }
 0x3ae   : > { %s9256_s14 = smov %s7326_s25  ;;  %s9257_s15 = smov %s7238_s17 }
 0x3af   : > { %s9258_s16 = smov %s7242_s18  ;;  %s9259_s17 = smov %s9262_s21 }
 0x3b0   : > { %s9260_s18 = smov %s9266_s22  ;;  %15 = sbr.rel (!%p13_p8) target bundleno = 5 (0x5), region = 113 }
 0x3b7   :  { %5475 = vsyncpa [#allocation4], 1 }
 0x3b8   :  { %5477 = vsyncpa [#allocation4 + $0x1], 1 }

</bundles_post_ra>
